<compile_context>
chip_gen: v7x
topology: tpu7x:2x2x1
jax: 0.10.0
libtpu: 0.0.40
codegen_flags: <defaults>
</compile_context>

<pallas_src>
import jax
import jax.numpy as jnp
from jax import lax
from jax.experimental import pallas as pl
from jax.experimental.pallas import tpu as pltpu

HIDDEN = 768          # BERT hidden size
LSTM_HIDDEN = 64      # nn.LSTM(768, 64)
NUM_OUT = 5           # nn.Linear(64, 5)

HP = 128              # lane-padded LSTM hidden size
GATES_P = 4 * HP      # lane-padded gate dim: [i | f | g | o] blocks of 128
OUT_P = 128           # lane-padded fc1 output

UNROLL_MAX = 64       # fully unroll the recurrence (Python loop) when B <= this


def _sigmoid(x):
    # sigmoid(x) = 0.5 * (1 + tanh(x/2)): one EUP tanh on the serial chain
    # instead of an EUP exp plus a VALU divide (Newton iterations).
    return 0.5 * (1.0 + jnp.tanh(0.5 * x))


def _lstm_step(x_gates, h, c, whh):
    """One LSTM step; h/c are (1, HP) values (vreg-resident), never refs."""
    gates = x_gates + jnp.dot(h, whh, preferred_element_type=jnp.float32)  # (1, 512)
    i_g = _sigmoid(gates[:, 0 * HP:1 * HP])
    f_g = _sigmoid(gates[:, 1 * HP:2 * HP])
    g_g = jnp.tanh(gates[:, 2 * HP:3 * HP])
    o_g = _sigmoid(gates[:, 3 * HP:4 * HP])
    c_new = f_g * c + i_g * g_g
    h_new = o_g * jnp.tanh(c_new)
    return h_new, c_new


def bert_lstm_head_kernel(hs_ref, wih_ref, whh_ref, b_ref, wfc_ref, bfc_ref,
                          out_ref, cls_buf, xproj_ref, hseq_ref, dma_sem):
    # --- Fused CLS gather: strided DMA of hidden_states[:, 0, :] only --------
    cp = pltpu.make_async_copy(hs_ref.at[:, pl.ds(0, 1), :], cls_buf, dma_sem)
    cp.start()
    cp.wait()
    cls = cls_buf[:, 0, :]                                   # (B, 768) f32

    # --- Input projection for all timesteps at once (the only big matmul) ----
    xproj_ref[...] = (
        jnp.dot(cls, wih_ref[...], preferred_element_type=jnp.float32)
        + b_ref[...])                                        # (B, 512)

    whh = whh_ref[...]                                       # (128, 512)
    num_steps = xproj_ref.shape[0]                           # == B (static)

    h = jnp.zeros((1, HP), jnp.float32)                      # vreg-resident state
    c = jnp.zeros((1, HP), jnp.float32)

    if num_steps <= UNROLL_MAX:
        # Fully unrolled recurrence: no loop bookkeeping on the serial chain,
        # no per-step VMEM round-trip of h/c, no per-step masked h stores
        # (the whole h sequence is assembled once for fc1).
        hs = []
        for t in range(num_steps):
            h, c = _lstm_step(xproj_ref[pl.ds(t, 1), :], h, c, whh)
            hs.append(h)
        hseq = jnp.concatenate(hs, axis=0)                   # (B, 128)
    else:
        # Large-B fallback: h/c stay in the fori_loop carry (vregs); only the
        # per-step h writeback touches VMEM and it is off the dependent chain.
        # TODO(synk): chunk the CLS gather / xproj for serving-size B so the
        # B-proportional scratch stays flat (matters on v7x's 64 MiB VMEM).
        def body(t, carry):
            h_t, c_t = carry
            h_t, c_t = _lstm_step(xproj_ref[pl.ds(t, 1), :], h_t, c_t, whh)
            hseq_ref[pl.ds(t, 1), :] = h_t
            return (h_t, c_t)

        lax.fori_loop(0, num_steps, body, (h, c), unroll=8)
        hseq = hseq_ref[...]

    # --- fc1 on the whole (B, 128) h sequence; lane-dense (B, 128) store -----
    logits = (jnp.dot(hseq, wfc_ref[...], preferred_element_type=jnp.float32)
              + bfc_ref[...])
    out_ref[...] = logits.astype(out_ref.dtype)


def bert_lstm_forward(last_hidden_state, padded_params):
    """last_hidden_state: (B, S, 768) — BERT's hidden_states[-1]."""
    if last_hidden_state.dtype != jnp.float32:
        # Backbone may run in bf16; the head is defined in f32.
        last_hidden_state = last_hidden_state.astype(jnp.float32)
    B, S, H = last_hidden_state.shape
    assert H == HIDDEN
    wih_p, whh_p, b_p, wfc_p, bfc_p = padded_params

    vmem = pl.BlockSpec(memory_space=pltpu.MemorySpace.VMEM)
    hbm = pl.BlockSpec(memory_space=pl.ANY)   # stays in HBM; kernel DMAs CLS rows

    flops = 2 * B * (HIDDEN * GATES_P + HP * GATES_P + HP * OUT_P)
    transcendentals = 5 * B * HP
    bytes_accessed = 4 * (B * HIDDEN                                   # CLS rows
                          + HIDDEN * GATES_P + HP * GATES_P + GATES_P  # weights
                          + HP * OUT_P + OUT_P
                          + B * OUT_P)                                 # output

    # Explicit scoped-VMEM budget: weights (~1.9 MiB) + ~5.5 KiB per batch row
    # of scratch, with double-buffering headroom.  Keeps v5e's 16 MiB default
    # from tripping at larger B and stays well under v7x's 64 MiB physical.
    weight_bytes = 4 * (HIDDEN * GATES_P + HP * GATES_P + GATES_P
                        + HP * OUT_P + OUT_P)
    per_row_bytes = 4 * (HIDDEN + GATES_P + HP + OUT_P)
    vmem_need = 2 * weight_bytes + 2 * B * per_row_bytes + (2 << 20)
    vmem_limit = int(min(100 * 1024 * 1024, max(16 * 1024 * 1024, vmem_need)))

    out_padded = pl.pallas_call(
        bert_lstm_head_kernel,
        out_shape=jax.ShapeDtypeStruct((B, OUT_P), jnp.float32),
        in_specs=[hbm, vmem, vmem, vmem, vmem, vmem],
        out_specs=vmem,
        scratch_shapes=[
            pltpu.VMEM((B, 1, HIDDEN), jnp.float32),   # CLS rows landing buffer
            pltpu.VMEM((B, GATES_P), jnp.float32),     # x @ W_ih + b, all steps
            pltpu.VMEM((B, HP), jnp.float32),          # h writeback (large-B path)
            pltpu.SemaphoreType.DMA(()),               # CLS gather semaphore
        ],
        compiler_params=pltpu.CompilerParams(vmem_limit_bytes=vmem_limit),
        cost_estimate=pl.CostEstimate(
            flops=flops, transcendentals=transcendentals,
            bytes_accessed=bytes_accessed),
    )(last_hidden_state, wih_p, whh_p, b_p, wfc_p, bfc_p)

    # Un-pad the logits back to the real 5 classes.
    return out_padded[:, :NUM_OUT]


def init_params(key):
    """PyTorch-style init: U(-1/sqrt(hidden), 1/sqrt(hidden)) for LSTM and fc1.

    Weights are stored transposed, i.e. (in_features, out_features); gate
    order along the 4*H axis is PyTorch's [i | f | g | o].
    """
    ks = jax.random.split(key, 6)
    k = 1.0 / jnp.sqrt(jnp.float32(LSTM_HIDDEN))
    w_ih = jax.random.uniform(ks[0], (HIDDEN, 4 * LSTM_HIDDEN), jnp.float32, -k, k)
    w_hh = jax.random.uniform(ks[1], (LSTM_HIDDEN, 4 * LSTM_HIDDEN), jnp.float32, -k, k)
    b_ih = jax.random.uniform(ks[2], (4 * LSTM_HIDDEN,), jnp.float32, -k, k)
    b_hh = jax.random.uniform(ks[3], (4 * LSTM_HIDDEN,), jnp.float32, -k, k)
    w_fc = jax.random.uniform(ks[4], (LSTM_HIDDEN, NUM_OUT), jnp.float32, -k, k)
    b_fc = jax.random.uniform(ks[5], (NUM_OUT,), jnp.float32, -k, k)
    return (w_ih, w_hh, b_ih, b_hh, w_fc, b_fc)


def pad_params(params):
    """Zero-pad to lane-dense shapes (hidden 64->128, gates 256->512, out 5->128).

    Padded bias/weight entries are zero, so padded gate pre-activations are 0,
    padded hidden units stay exactly 0 through the recurrence, and they
    contribute nothing to the logits.  Done once, offline.
    """
    w_ih, w_hh, b_ih, b_hh, w_fc, b_fc = params
    pad_h = HP - LSTM_HIDDEN

    def pad_gate_cols(w):   # (..., 4*64) -> (..., 4*128), zero-padded per gate
        lead = w.shape[:-1]
        w = w.reshape(lead + (4, LSTM_HIDDEN))
        w = jnp.pad(w, [(0, 0)] * len(lead) + [(0, 0), (0, pad_h)])
        return w.reshape(lead + (4 * HP,))

    wih_p = pad_gate_cols(w_ih)                                          # (768, 512)
    whh_p = jnp.pad(pad_gate_cols(w_hh), ((0, pad_h), (0, 0)))           # (128, 512)
    b_p = pad_gate_cols((b_ih + b_hh).reshape(1, -1))                    # (1, 512)
    wfc_p = jnp.pad(w_fc, ((0, pad_h), (0, OUT_P - NUM_OUT)))            # (128, 128)
    bfc_p = jnp.pad(b_fc.reshape(1, -1), ((0, 0), (0, OUT_P - NUM_OUT))) # (1, 128)
    return wih_p, whh_p, b_p, wfc_p, bfc_p


def reference_forward(last_hidden_state, params):
    """Pure-JAX reference of the PyTorch forward (unpadded math)."""
    w_ih, w_hh, b_ih, b_hh, w_fc, b_fc = params
    x = last_hidden_state[:, 0, :]        # (B, 768); LSTM sees a length-B sequence

    def step(carry, x_t):
        h, c = carry
        gates = x_t @ w_ih + b_ih + h @ w_hh + b_hh
        i, f, g, o = jnp.split(gates, 4, axis=-1)
        i, f, g, o = (jax.nn.sigmoid(i), jax.nn.sigmoid(f),
                      jnp.tanh(g), jax.nn.sigmoid(o))
        c = f * c + i * g
        h = o * jnp.tanh(c)
        return (h, c), h

    init = (jnp.zeros((LSTM_HIDDEN,), jnp.float32),
            jnp.zeros((LSTM_HIDDEN,), jnp.float32))
    _, hs = lax.scan(step, init, x)        # (B, 64)
    return hs @ w_fc + b_fc                # (B, 5)


if __name__ == "__main__":
    key = jax.random.PRNGKey(0)
    k_hidden, k_params = jax.random.split(key)

    B, S = 8, 8   # small batch / seq
    # Synthetic "hidden_states[-1]" from the (untranslated) BERT backbone.
    last_hidden_state = jax.random.normal(k_hidden, (B, S, HIDDEN), jnp.float32)
    params = init_params(k_params)
    padded_params = pad_params(params)

    out = bert_lstm_forward(last_hidden_state, padded_params)
    out = jax.block_until_ready(out)

    ref = reference_forward(last_hidden_state, params)
    assert out.shape == (B, NUM_OUT)
    assert jnp.allclose(out, ref, atol=1e-3, rtol=1e-3), \
        float(jnp.max(jnp.abs(out - ref)))

    print("KERNEL_OK")
</pallas_src>

<mosaic_0001>
module attributes {stable_mosaic.version = 11 : i64} {
  func.func @bert_lstm_head_kernel(%arg0: memref<8x8x768xf32, #tpu.memory_space<any>>, %arg1: memref<768x512xf32, #tpu.memory_space<vmem>>, %arg2: memref<128x512xf32, #tpu.memory_space<vmem>>, %arg3: memref<1x512xf32, #tpu.memory_space<vmem>>, %arg4: memref<128x128xf32, #tpu.memory_space<vmem>>, %arg5: memref<1x128xf32, #tpu.memory_space<vmem>>, %arg6: memref<8x128xf32, #tpu.memory_space<vmem>>, %arg7: memref<8x1x768xf32, #tpu.memory_space<vmem>>, %arg8: memref<8x512xf32, #tpu.memory_space<vmem>>, %arg9: memref<8x128xf32, #tpu.memory_space<vmem>>, %arg10: memref<!tpu.dma_semaphore, #tpu.memory_space<semaphore_mem>>) attributes {dimension_semantics = [], scalar_prefetch = 0 : i64, scratch_operands = 4 : i64, tpu.core_type = #tpu.core_type<tc>} {
    %c0_i32 = arith.constant 0 : i32
    %c0_i32_0 = arith.constant 0 : i32
    %c0_i32_1 = arith.constant 0 : i32
    %0 = tpu.memref_slice %arg0[%c0_i32, %c0_i32_0, %c0_i32_1] : memref<8x8x768xf32, #tpu.memory_space<any>> -> memref<8x1x768xf32, #tpu.memory_space<any>>
    tpu.enqueue_dma source(%0 : memref<8x1x768xf32, #tpu.memory_space<any>>) target(%arg7 : memref<8x1x768xf32, #tpu.memory_space<vmem>>) target_semaphore(%arg10 : memref<!tpu.dma_semaphore, #tpu.memory_space<semaphore_mem>>)
    %c0_i32_2 = arith.constant 0 : i32
    %c0_i32_3 = arith.constant 0 : i32
    %c0_i32_4 = arith.constant 0 : i32
    %1 = tpu.memref_slice %arg0[%c0_i32_2, %c0_i32_3, %c0_i32_4] : memref<8x8x768xf32, #tpu.memory_space<any>> -> memref<8x1x768xf32, #tpu.memory_space<any>>
    tpu.wait_dma2 semaphore(%arg10 : memref<!tpu.dma_semaphore, #tpu.memory_space<semaphore_mem>>) src(%1 : memref<8x1x768xf32, #tpu.memory_space<any>>) dst(%arg7 : memref<8x1x768xf32, #tpu.memory_space<vmem>>)
    %c0 = arith.constant 0 : index
    %c0_5 = arith.constant 0 : index
    %c0_6 = arith.constant 0 : index
    %2 = vector.load %arg7[%c0, %c0_5, %c0_6] : memref<8x1x768xf32, #tpu.memory_space<vmem>>, vector<8x1x768xf32>
    %3 = vector.shape_cast %2 : vector<8x1x768xf32> to vector<8x768xf32>
    %c0_7 = arith.constant 0 : index
    %c0_8 = arith.constant 0 : index
    %4 = vector.load %arg1[%c0_7, %c0_8] : memref<768x512xf32, #tpu.memory_space<vmem>>, vector<768x512xf32>
    %cst = arith.constant dense<0.000000e+00> : vector<8x512xf32>
    %5 = tpu.matmul %3, %4, %cst {dimension_numbers = #tpu.dot_dimension_numbers<[1], [0], [0], [1], [0, 0, 1, 1], [], []>} : vector<8x768xf32>, vector<768x512xf32>, vector<8x512xf32> -> vector<8x512xf32>
    %c0_9 = arith.constant 0 : index
    %c0_10 = arith.constant 0 : index
    %6 = vector.load %arg3[%c0_9, %c0_10] : memref<1x512xf32, #tpu.memory_space<vmem>>, vector<1x512xf32>
    %7 = vector.broadcast %6 : vector<1x512xf32> to vector<8x512xf32>
    %8 = arith.addf %5, %7 : vector<8x512xf32>
    %c0_11 = arith.constant 0 : index
    %c0_12 = arith.constant 0 : index
    %9 = vector.load %arg8[%c0_11, %c0_12] : memref<8x512xf32, #tpu.memory_space<vmem>>, vector<8x512xf32>
    tpu.vector_store %arg8[%c0_11, %c0_12], %8 {strides = array<i32>} : memref<8x512xf32, #tpu.memory_space<vmem>>, vector<8x512xf32>,
    %c0_13 = arith.constant 0 : index
    %c0_14 = arith.constant 0 : index
    %10 = vector.load %arg2[%c0_13, %c0_14] : memref<128x512xf32, #tpu.memory_space<vmem>>, vector<128x512xf32>
    %cst_15 = arith.constant 0.000000e+00 : f32
    %11 = vector.broadcast %cst_15 : f32 to vector<1x128xf32>
    %cst_16 = arith.constant 0.000000e+00 : f32
    %12 = vector.broadcast %cst_16 : f32 to vector<1x128xf32>
    %c0_17 = arith.constant 0 : index
    %c0_18 = arith.constant 0 : index
    %13 = vector.load %arg8[%c0_17, %c0_18] : memref<8x512xf32, #tpu.memory_space<vmem>>, vector<1x512xf32>
    %cst_19 = arith.constant dense<0.000000e+00> : vector<1x512xf32>
    %14 = tpu.matmul %11, %10, %cst_19 {dimension_numbers = #tpu.dot_dimension_numbers<[1], [0], [0], [1], [0, 0, 1, 1], [], []>} : vector<1x128xf32>, vector<128x512xf32>, vector<1x512xf32> -> vector<1x512xf32>
    %15 = arith.addf %13, %14 : vector<1x512xf32>
    %16 = vector.extract_strided_slice %15 {offsets = [0, 0], sizes = [1, 128], strides = [1, 1]} : vector<1x512xf32> to vector<1x128xf32>
    %cst_20 = arith.constant 5.000000e-01 : f32
    %17 = vector.broadcast %cst_20 : f32 to vector<1x128xf32>
    %18 = arith.mulf %17, %16 : vector<1x128xf32>
    %19 = math.tanh %18 : vector<1x128xf32>
    %cst_21 = arith.constant 1.000000e+00 : f32
    %20 = vector.broadcast %cst_21 : f32 to vector<1x128xf32>
    %21 = arith.addf %20, %19 : vector<1x128xf32>
    %cst_22 = arith.constant 5.000000e-01 : f32
    %22 = vector.broadcast %cst_22 : f32 to vector<1x128xf32>
    %23 = arith.mulf %22, %21 : vector<1x128xf32>
    %24 = vector.extract_strided_slice %15 {offsets = [0, 128], sizes = [1, 128], strides = [1, 1]} : vector<1x512xf32> to vector<1x128xf32>
    %cst_23 = arith.constant 5.000000e-01 : f32
    %25 = vector.broadcast %cst_23 : f32 to vector<1x128xf32>
    %26 = arith.mulf %25, %24 : vector<1x128xf32>
    %27 = math.tanh %26 : vector<1x128xf32>
    %cst_24 = arith.constant 1.000000e+00 : f32
    %28 = vector.broadcast %cst_24 : f32 to vector<1x128xf32>
    %29 = arith.addf %28, %27 : vector<1x128xf32>
    %cst_25 = arith.constant 5.000000e-01 : f32
    %30 = vector.broadcast %cst_25 : f32 to vector<1x128xf32>
    %31 = arith.mulf %30, %29 : vector<1x128xf32>
    %32 = vector.extract_strided_slice %15 {offsets = [0, 256], sizes = [1, 128], strides = [1, 1]} : vector<1x512xf32> to vector<1x128xf32>
    %33 = math.tanh %32 : vector<1x128xf32>
    %34 = vector.extract_strided_slice %15 {offsets = [0, 384], sizes = [1, 128], strides = [1, 1]} : vector<1x512xf32> to vector<1x128xf32>
    %cst_26 = arith.constant 5.000000e-01 : f32
    %35 = vector.broadcast %cst_26 : f32 to vector<1x128xf32>
    %36 = arith.mulf %35, %34 : vector<1x128xf32>
    %37 = math.tanh %36 : vector<1x128xf32>
    %cst_27 = arith.constant 1.000000e+00 : f32
    %38 = vector.broadcast %cst_27 : f32 to vector<1x128xf32>
    %39 = arith.addf %38, %37 : vector<1x128xf32>
    %cst_28 = arith.constant 5.000000e-01 : f32
    %40 = vector.broadcast %cst_28 : f32 to vector<1x128xf32>
    %41 = arith.mulf %40, %39 : vector<1x128xf32>
    %42 = arith.mulf %31, %12 : vector<1x128xf32>
    %43 = arith.mulf %23, %33 : vector<1x128xf32>
    %44 = arith.addf %42, %43 : vector<1x128xf32>
    %45 = math.tanh %44 : vector<1x128xf32>
    %46 = arith.mulf %41, %45 : vector<1x128xf32>
    %c1 = arith.constant 1 : index
    %c0_29 = arith.constant 0 : index
    %47 = vector.load %arg8[%c1, %c0_29] : memref<8x512xf32, #tpu.memory_space<vmem>>, vector<1x512xf32>
    %cst_30 = arith.constant dense<0.000000e+00> : vector<1x512xf32>
    %48 = tpu.matmul %46, %10, %cst_30 {dimension_numbers = #tpu.dot_dimension_numbers<[1], [0], [0], [1], [0, 0, 1, 1], [], []>} : vector<1x128xf32>, vector<128x512xf32>, vector<1x512xf32> -> vector<1x512xf32>
    %49 = arith.addf %47, %48 : vector<1x512xf32>
    %50 = vector.extract_strided_slice %49 {offsets = [0, 0], sizes = [1, 128], strides = [1, 1]} : vector<1x512xf32> to vector<1x128xf32>
    %cst_31 = arith.constant 5.000000e-01 : f32
    %51 = vector.broadcast %cst_31 : f32 to vector<1x128xf32>
    %52 = arith.mulf %51, %50 : vector<1x128xf32>
    %53 = math.tanh %52 : vector<1x128xf32>
    %cst_32 = arith.constant 1.000000e+00 : f32
    %54 = vector.broadcast %cst_32 : f32 to vector<1x128xf32>
    %55 = arith.addf %54, %53 : vector<1x128xf32>
    %cst_33 = arith.constant 5.000000e-01 : f32
    %56 = vector.broadcast %cst_33 : f32 to vector<1x128xf32>
    %57 = arith.mulf %56, %55 : vector<1x128xf32>
    %58 = vector.extract_strided_slice %49 {offsets = [0, 128], sizes = [1, 128], strides = [1, 1]} : vector<1x512xf32> to vector<1x128xf32>
    %cst_34 = arith.constant 5.000000e-01 : f32
    %59 = vector.broadcast %cst_34 : f32 to vector<1x128xf32>
    %60 = arith.mulf %59, %58 : vector<1x128xf32>
    %61 = math.tanh %60 : vector<1x128xf32>
    %cst_35 = arith.constant 1.000000e+00 : f32
    %62 = vector.broadcast %cst_35 : f32 to vector<1x128xf32>
    %63 = arith.addf %62, %61 : vector<1x128xf32>
    %cst_36 = arith.constant 5.000000e-01 : f32
    %64 = vector.broadcast %cst_36 : f32 to vector<1x128xf32>
    %65 = arith.mulf %64, %63 : vector<1x128xf32>
    %66 = vector.extract_strided_slice %49 {offsets = [0, 256], sizes = [1, 128], strides = [1, 1]} : vector<1x512xf32> to vector<1x128xf32>
    %67 = math.tanh %66 : vector<1x128xf32>
    %68 = vector.extract_strided_slice %49 {offsets = [0, 384], sizes = [1, 128], strides = [1, 1]} : vector<1x512xf32> to vector<1x128xf32>
    %cst_37 = arith.constant 5.000000e-01 : f32
    %69 = vector.broadcast %cst_37 : f32 to vector<1x128xf32>
    %70 = arith.mulf %69, %68 : vector<1x128xf32>
    %71 = math.tanh %70 : vector<1x128xf32>
    %cst_38 = arith.constant 1.000000e+00 : f32
    %72 = vector.broadcast %cst_38 : f32 to vector<1x128xf32>
    %73 = arith.addf %72, %71 : vector<1x128xf32>
    %cst_39 = arith.constant 5.000000e-01 : f32
    %74 = vector.broadcast %cst_39 : f32 to vector<1x128xf32>
    %75 = arith.mulf %74, %73 : vector<1x128xf32>
    %76 = arith.mulf %65, %44 : vector<1x128xf32>
    %77 = arith.mulf %57, %67 : vector<1x128xf32>
    %78 = arith.addf %76, %77 : vector<1x128xf32>
    %79 = math.tanh %78 : vector<1x128xf32>
    %80 = arith.mulf %75, %79 : vector<1x128xf32>
    %c2 = arith.constant 2 : index
    %c0_40 = arith.constant 0 : index
    %81 = vector.load %arg8[%c2, %c0_40] : memref<8x512xf32, #tpu.memory_space<vmem>>, vector<1x512xf32>
    %cst_41 = arith.constant dense<0.000000e+00> : vector<1x512xf32>
    %82 = tpu.matmul %80, %10, %cst_41 {dimension_numbers = #tpu.dot_dimension_numbers<[1], [0], [0], [1], [0, 0, 1, 1], [], []>} : vector<1x128xf32>, vector<128x512xf32>, vector<1x512xf32> -> vector<1x512xf32>
    %83 = arith.addf %81, %82 : vector<1x512xf32>
    %84 = vector.extract_strided_slice %83 {offsets = [0, 0], sizes = [1, 128], strides = [1, 1]} : vector<1x512xf32> to vector<1x128xf32>
    %cst_42 = arith.constant 5.000000e-01 : f32
    %85 = vector.broadcast %cst_42 : f32 to vector<1x128xf32>
    %86 = arith.mulf %85, %84 : vector<1x128xf32>
    %87 = math.tanh %86 : vector<1x128xf32>
    %cst_43 = arith.constant 1.000000e+00 : f32
    %88 = vector.broadcast %cst_43 : f32 to vector<1x128xf32>
    %89 = arith.addf %88, %87 : vector<1x128xf32>
    %cst_44 = arith.constant 5.000000e-01 : f32
    %90 = vector.broadcast %cst_44 : f32 to vector<1x128xf32>
    %91 = arith.mulf %90, %89 : vector<1x128xf32>
    %92 = vector.extract_strided_slice %83 {offsets = [0, 128], sizes = [1, 128], strides = [1, 1]} : vector<1x512xf32> to vector<1x128xf32>
    %cst_45 = arith.constant 5.000000e-01 : f32
    %93 = vector.broadcast %cst_45 : f32 to vector<1x128xf32>
    %94 = arith.mulf %93, %92 : vector<1x128xf32>
    %95 = math.tanh %94 : vector<1x128xf32>
    %cst_46 = arith.constant 1.000000e+00 : f32
    %96 = vector.broadcast %cst_46 : f32 to vector<1x128xf32>
    %97 = arith.addf %96, %95 : vector<1x128xf32>
    %cst_47 = arith.constant 5.000000e-01 : f32
    %98 = vector.broadcast %cst_47 : f32 to vector<1x128xf32>
    %99 = arith.mulf %98, %97 : vector<1x128xf32>
    %100 = vector.extract_strided_slice %83 {offsets = [0, 256], sizes = [1, 128], strides = [1, 1]} : vector<1x512xf32> to vector<1x128xf32>
    %101 = math.tanh %100 : vector<1x128xf32>
    %102 = vector.extract_strided_slice %83 {offsets = [0, 384], sizes = [1, 128], strides = [1, 1]} : vector<1x512xf32> to vector<1x128xf32>
    %cst_48 = arith.constant 5.000000e-01 : f32
    %103 = vector.broadcast %cst_48 : f32 to vector<1x128xf32>
    %104 = arith.mulf %103, %102 : vector<1x128xf32>
    %105 = math.tanh %104 : vector<1x128xf32>
    %cst_49 = arith.constant 1.000000e+00 : f32
    %106 = vector.broadcast %cst_49 : f32 to vector<1x128xf32>
    %107 = arith.addf %106, %105 : vector<1x128xf32>
    %cst_50 = arith.constant 5.000000e-01 : f32
    %108 = vector.broadcast %cst_50 : f32 to vector<1x128xf32>
    %109 = arith.mulf %108, %107 : vector<1x128xf32>
    %110 = arith.mulf %99, %78 : vector<1x128xf32>
    %111 = arith.mulf %91, %101 : vector<1x128xf32>
    %112 = arith.addf %110, %111 : vector<1x128xf32>
    %113 = math.tanh %112 : vector<1x128xf32>
    %114 = arith.mulf %109, %113 : vector<1x128xf32>
    %c3 = arith.constant 3 : index
    %c0_51 = arith.constant 0 : index
    %115 = vector.load %arg8[%c3, %c0_51] : memref<8x512xf32, #tpu.memory_space<vmem>>, vector<1x512xf32>
    %cst_52 = arith.constant dense<0.000000e+00> : vector<1x512xf32>
    %116 = tpu.matmul %114, %10, %cst_52 {dimension_numbers = #tpu.dot_dimension_numbers<[1], [0], [0], [1], [0, 0, 1, 1], [], []>} : vector<1x128xf32>, vector<128x512xf32>, vector<1x512xf32> -> vector<1x512xf32>
    %117 = arith.addf %115, %116 : vector<1x512xf32>
    %118 = vector.extract_strided_slice %117 {offsets = [0, 0], sizes = [1, 128], strides = [1, 1]} : vector<1x512xf32> to vector<1x128xf32>
    %cst_53 = arith.constant 5.000000e-01 : f32
    %119 = vector.broadcast %cst_53 : f32 to vector<1x128xf32>
    %120 = arith.mulf %119, %118 : vector<1x128xf32>
    %121 = math.tanh %120 : vector<1x128xf32>
    %cst_54 = arith.constant 1.000000e+00 : f32
    %122 = vector.broadcast %cst_54 : f32 to vector<1x128xf32>
    %123 = arith.addf %122, %121 : vector<1x128xf32>
    %cst_55 = arith.constant 5.000000e-01 : f32
    %124 = vector.broadcast %cst_55 : f32 to vector<1x128xf32>
    %125 = arith.mulf %124, %123 : vector<1x128xf32>
    %126 = vector.extract_strided_slice %117 {offsets = [0, 128], sizes = [1, 128], strides = [1, 1]} : vector<1x512xf32> to vector<1x128xf32>
    %cst_56 = arith.constant 5.000000e-01 : f32
    %127 = vector.broadcast %cst_56 : f32 to vector<1x128xf32>
    %128 = arith.mulf %127, %126 : vector<1x128xf32>
    %129 = math.tanh %128 : vector<1x128xf32>
    %cst_57 = arith.constant 1.000000e+00 : f32
    %130 = vector.broadcast %cst_57 : f32 to vector<1x128xf32>
    %131 = arith.addf %130, %129 : vector<1x128xf32>
    %cst_58 = arith.constant 5.000000e-01 : f32
    %132 = vector.broadcast %cst_58 : f32 to vector<1x128xf32>
    %133 = arith.mulf %132, %131 : vector<1x128xf32>
    %134 = vector.extract_strided_slice %117 {offsets = [0, 256], sizes = [1, 128], strides = [1, 1]} : vector<1x512xf32> to vector<1x128xf32>
    %135 = math.tanh %134 : vector<1x128xf32>
    %136 = vector.extract_strided_slice %117 {offsets = [0, 384], sizes = [1, 128], strides = [1, 1]} : vector<1x512xf32> to vector<1x128xf32>
    %cst_59 = arith.constant 5.000000e-01 : f32
    %137 = vector.broadcast %cst_59 : f32 to vector<1x128xf32>
    %138 = arith.mulf %137, %136 : vector<1x128xf32>
    %139 = math.tanh %138 : vector<1x128xf32>
    %cst_60 = arith.constant 1.000000e+00 : f32
    %140 = vector.broadcast %cst_60 : f32 to vector<1x128xf32>
    %141 = arith.addf %140, %139 : vector<1x128xf32>
    %cst_61 = arith.constant 5.000000e-01 : f32
    %142 = vector.broadcast %cst_61 : f32 to vector<1x128xf32>
    %143 = arith.mulf %142, %141 : vector<1x128xf32>
    %144 = arith.mulf %133, %112 : vector<1x128xf32>
    %145 = arith.mulf %125, %135 : vector<1x128xf32>
    %146 = arith.addf %144, %145 : vector<1x128xf32>
    %147 = math.tanh %146 : vector<1x128xf32>
    %148 = arith.mulf %143, %147 : vector<1x128xf32>
    %c4 = arith.constant 4 : index
    %c0_62 = arith.constant 0 : index
    %149 = vector.load %arg8[%c4, %c0_62] : memref<8x512xf32, #tpu.memory_space<vmem>>, vector<1x512xf32>
    %cst_63 = arith.constant dense<0.000000e+00> : vector<1x512xf32>
    %150 = tpu.matmul %148, %10, %cst_63 {dimension_numbers = #tpu.dot_dimension_numbers<[1], [0], [0], [1], [0, 0, 1, 1], [], []>} : vector<1x128xf32>, vector<128x512xf32>, vector<1x512xf32> -> vector<1x512xf32>
    %151 = arith.addf %149, %150 : vector<1x512xf32>
    %152 = vector.extract_strided_slice %151 {offsets = [0, 0], sizes = [1, 128], strides = [1, 1]} : vector<1x512xf32> to vector<1x128xf32>
    %cst_64 = arith.constant 5.000000e-01 : f32
    %153 = vector.broadcast %cst_64 : f32 to vector<1x128xf32>
    %154 = arith.mulf %153, %152 : vector<1x128xf32>
    %155 = math.tanh %154 : vector<1x128xf32>
    %cst_65 = arith.constant 1.000000e+00 : f32
    %156 = vector.broadcast %cst_65 : f32 to vector<1x128xf32>
    %157 = arith.addf %156, %155 : vector<1x128xf32>
    %cst_66 = arith.constant 5.000000e-01 : f32
    %158 = vector.broadcast %cst_66 : f32 to vector<1x128xf32>
    %159 = arith.mulf %158, %157 : vector<1x128xf32>
    %160 = vector.extract_strided_slice %151 {offsets = [0, 128], sizes = [1, 128], strides = [1, 1]} : vector<1x512xf32> to vector<1x128xf32>
    %cst_67 = arith.constant 5.000000e-01 : f32
    %161 = vector.broadcast %cst_67 : f32 to vector<1x128xf32>
    %162 = arith.mulf %161, %160 : vector<1x128xf32>
    %163 = math.tanh %162 : vector<1x128xf32>
    %cst_68 = arith.constant 1.000000e+00 : f32
    %164 = vector.broadcast %cst_68 : f32 to vector<1x128xf32>
    %165 = arith.addf %164, %163 : vector<1x128xf32>
    %cst_69 = arith.constant 5.000000e-01 : f32
    %166 = vector.broadcast %cst_69 : f32 to vector<1x128xf32>
    %167 = arith.mulf %166, %165 : vector<1x128xf32>
    %168 = vector.extract_strided_slice %151 {offsets = [0, 256], sizes = [1, 128], strides = [1, 1]} : vector<1x512xf32> to vector<1x128xf32>
    %169 = math.tanh %168 : vector<1x128xf32>
    %170 = vector.extract_strided_slice %151 {offsets = [0, 384], sizes = [1, 128], strides = [1, 1]} : vector<1x512xf32> to vector<1x128xf32>
    %cst_70 = arith.constant 5.000000e-01 : f32
    %171 = vector.broadcast %cst_70 : f32 to vector<1x128xf32>
    %172 = arith.mulf %171, %170 : vector<1x128xf32>
    %173 = math.tanh %172 : vector<1x128xf32>
    %cst_71 = arith.constant 1.000000e+00 : f32
    %174 = vector.broadcast %cst_71 : f32 to vector<1x128xf32>
    %175 = arith.addf %174, %173 : vector<1x128xf32>
    %cst_72 = arith.constant 5.000000e-01 : f32
    %176 = vector.broadcast %cst_72 : f32 to vector<1x128xf32>
    %177 = arith.mulf %176, %175 : vector<1x128xf32>
    %178 = arith.mulf %167, %146 : vector<1x128xf32>
    %179 = arith.mulf %159, %169 : vector<1x128xf32>
    %180 = arith.addf %178, %179 : vector<1x128xf32>
    %181 = math.tanh %180 : vector<1x128xf32>
    %182 = arith.mulf %177, %181 : vector<1x128xf32>
    %c5 = arith.constant 5 : index
    %c0_73 = arith.constant 0 : index
    %183 = vector.load %arg8[%c5, %c0_73] : memref<8x512xf32, #tpu.memory_space<vmem>>, vector<1x512xf32>
    %cst_74 = arith.constant dense<0.000000e+00> : vector<1x512xf32>
    %184 = tpu.matmul %182, %10, %cst_74 {dimension_numbers = #tpu.dot_dimension_numbers<[1], [0], [0], [1], [0, 0, 1, 1], [], []>} : vector<1x128xf32>, vector<128x512xf32>, vector<1x512xf32> -> vector<1x512xf32>
    %185 = arith.addf %183, %184 : vector<1x512xf32>
    %186 = vector.extract_strided_slice %185 {offsets = [0, 0], sizes = [1, 128], strides = [1, 1]} : vector<1x512xf32> to vector<1x128xf32>
    %cst_75 = arith.constant 5.000000e-01 : f32
    %187 = vector.broadcast %cst_75 : f32 to vector<1x128xf32>
    %188 = arith.mulf %187, %186 : vector<1x128xf32>
    %189 = math.tanh %188 : vector<1x128xf32>
    %cst_76 = arith.constant 1.000000e+00 : f32
    %190 = vector.broadcast %cst_76 : f32 to vector<1x128xf32>
    %191 = arith.addf %190, %189 : vector<1x128xf32>
    %cst_77 = arith.constant 5.000000e-01 : f32
    %192 = vector.broadcast %cst_77 : f32 to vector<1x128xf32>
    %193 = arith.mulf %192, %191 : vector<1x128xf32>
    %194 = vector.extract_strided_slice %185 {offsets = [0, 128], sizes = [1, 128], strides = [1, 1]} : vector<1x512xf32> to vector<1x128xf32>
    %cst_78 = arith.constant 5.000000e-01 : f32
    %195 = vector.broadcast %cst_78 : f32 to vector<1x128xf32>
    %196 = arith.mulf %195, %194 : vector<1x128xf32>
    %197 = math.tanh %196 : vector<1x128xf32>
    %cst_79 = arith.constant 1.000000e+00 : f32
    %198 = vector.broadcast %cst_79 : f32 to vector<1x128xf32>
    %199 = arith.addf %198, %197 : vector<1x128xf32>
    %cst_80 = arith.constant 5.000000e-01 : f32
    %200 = vector.broadcast %cst_80 : f32 to vector<1x128xf32>
    %201 = arith.mulf %200, %199 : vector<1x128xf32>
    %202 = vector.extract_strided_slice %185 {offsets = [0, 256], sizes = [1, 128], strides = [1, 1]} : vector<1x512xf32> to vector<1x128xf32>
    %203 = math.tanh %202 : vector<1x128xf32>
    %204 = vector.extract_strided_slice %185 {offsets = [0, 384], sizes = [1, 128], strides = [1, 1]} : vector<1x512xf32> to vector<1x128xf32>
    %cst_81 = arith.constant 5.000000e-01 : f32
    %205 = vector.broadcast %cst_81 : f32 to vector<1x128xf32>
    %206 = arith.mulf %205, %204 : vector<1x128xf32>
    %207 = math.tanh %206 : vector<1x128xf32>
    %cst_82 = arith.constant 1.000000e+00 : f32
    %208 = vector.broadcast %cst_82 : f32 to vector<1x128xf32>
    %209 = arith.addf %208, %207 : vector<1x128xf32>
    %cst_83 = arith.constant 5.000000e-01 : f32
    %210 = vector.broadcast %cst_83 : f32 to vector<1x128xf32>
    %211 = arith.mulf %210, %209 : vector<1x128xf32>
    %212 = arith.mulf %201, %180 : vector<1x128xf32>
    %213 = arith.mulf %193, %203 : vector<1x128xf32>
    %214 = arith.addf %212, %213 : vector<1x128xf32>
    %215 = math.tanh %214 : vector<1x128xf32>
    %216 = arith.mulf %211, %215 : vector<1x128xf32>
    %c6 = arith.constant 6 : index
    %c0_84 = arith.constant 0 : index
    %217 = vector.load %arg8[%c6, %c0_84] : memref<8x512xf32, #tpu.memory_space<vmem>>, vector<1x512xf32>
    %cst_85 = arith.constant dense<0.000000e+00> : vector<1x512xf32>
    %218 = tpu.matmul %216, %10, %cst_85 {dimension_numbers = #tpu.dot_dimension_numbers<[1], [0], [0], [1], [0, 0, 1, 1], [], []>} : vector<1x128xf32>, vector<128x512xf32>, vector<1x512xf32> -> vector<1x512xf32>
    %219 = arith.addf %217, %218 : vector<1x512xf32>
    %220 = vector.extract_strided_slice %219 {offsets = [0, 0], sizes = [1, 128], strides = [1, 1]} : vector<1x512xf32> to vector<1x128xf32>
    %cst_86 = arith.constant 5.000000e-01 : f32
    %221 = vector.broadcast %cst_86 : f32 to vector<1x128xf32>
    %222 = arith.mulf %221, %220 : vector<1x128xf32>
    %223 = math.tanh %222 : vector<1x128xf32>
    %cst_87 = arith.constant 1.000000e+00 : f32
    %224 = vector.broadcast %cst_87 : f32 to vector<1x128xf32>
    %225 = arith.addf %224, %223 : vector<1x128xf32>
    %cst_88 = arith.constant 5.000000e-01 : f32
    %226 = vector.broadcast %cst_88 : f32 to vector<1x128xf32>
    %227 = arith.mulf %226, %225 : vector<1x128xf32>
    %228 = vector.extract_strided_slice %219 {offsets = [0, 128], sizes = [1, 128], strides = [1, 1]} : vector<1x512xf32> to vector<1x128xf32>
    %cst_89 = arith.constant 5.000000e-01 : f32
    %229 = vector.broadcast %cst_89 : f32 to vector<1x128xf32>
    %230 = arith.mulf %229, %228 : vector<1x128xf32>
    %231 = math.tanh %230 : vector<1x128xf32>
    %cst_90 = arith.constant 1.000000e+00 : f32
    %232 = vector.broadcast %cst_90 : f32 to vector<1x128xf32>
    %233 = arith.addf %232, %231 : vector<1x128xf32>
    %cst_91 = arith.constant 5.000000e-01 : f32
    %234 = vector.broadcast %cst_91 : f32 to vector<1x128xf32>
    %235 = arith.mulf %234, %233 : vector<1x128xf32>
    %236 = vector.extract_strided_slice %219 {offsets = [0, 256], sizes = [1, 128], strides = [1, 1]} : vector<1x512xf32> to vector<1x128xf32>
    %237 = math.tanh %236 : vector<1x128xf32>
    %238 = vector.extract_strided_slice %219 {offsets = [0, 384], sizes = [1, 128], strides = [1, 1]} : vector<1x512xf32> to vector<1x128xf32>
    %cst_92 = arith.constant 5.000000e-01 : f32
    %239 = vector.broadcast %cst_92 : f32 to vector<1x128xf32>
    %240 = arith.mulf %239, %238 : vector<1x128xf32>
    %241 = math.tanh %240 : vector<1x128xf32>
    %cst_93 = arith.constant 1.000000e+00 : f32
    %242 = vector.broadcast %cst_93 : f32 to vector<1x128xf32>
    %243 = arith.addf %242, %241 : vector<1x128xf32>
    %cst_94 = arith.constant 5.000000e-01 : f32
    %244 = vector.broadcast %cst_94 : f32 to vector<1x128xf32>
    %245 = arith.mulf %244, %243 : vector<1x128xf32>
    %246 = arith.mulf %235, %214 : vector<1x128xf32>
    %247 = arith.mulf %227, %237 : vector<1x128xf32>
    %248 = arith.addf %246, %247 : vector<1x128xf32>
    %249 = math.tanh %248 : vector<1x128xf32>
    %250 = arith.mulf %245, %249 : vector<1x128xf32>
    %c7 = arith.constant 7 : index
    %c0_95 = arith.constant 0 : index
    %251 = vector.load %arg8[%c7, %c0_95] : memref<8x512xf32, #tpu.memory_space<vmem>>, vector<1x512xf32>
    %cst_96 = arith.constant dense<0.000000e+00> : vector<1x512xf32>
    %252 = tpu.matmul %250, %10, %cst_96 {dimension_numbers = #tpu.dot_dimension_numbers<[1], [0], [0], [1], [0, 0, 1, 1], [], []>} : vector<1x128xf32>, vector<128x512xf32>, vector<1x512xf32> -> vector<1x512xf32>
    %253 = arith.addf %251, %252 : vector<1x512xf32>
    %254 = vector.extract_strided_slice %253 {offsets = [0, 0], sizes = [1, 128], strides = [1, 1]} : vector<1x512xf32> to vector<1x128xf32>
    %cst_97 = arith.constant 5.000000e-01 : f32
    %255 = vector.broadcast %cst_97 : f32 to vector<1x128xf32>
    %256 = arith.mulf %255, %254 : vector<1x128xf32>
    %257 = math.tanh %256 : vector<1x128xf32>
    %cst_98 = arith.constant 1.000000e+00 : f32
    %258 = vector.broadcast %cst_98 : f32 to vector<1x128xf32>
    %259 = arith.addf %258, %257 : vector<1x128xf32>
    %cst_99 = arith.constant 5.000000e-01 : f32
    %260 = vector.broadcast %cst_99 : f32 to vector<1x128xf32>
    %261 = arith.mulf %260, %259 : vector<1x128xf32>
    %262 = vector.extract_strided_slice %253 {offsets = [0, 128], sizes = [1, 128], strides = [1, 1]} : vector<1x512xf32> to vector<1x128xf32>
    %cst_100 = arith.constant 5.000000e-01 : f32
    %263 = vector.broadcast %cst_100 : f32 to vector<1x128xf32>
    %264 = arith.mulf %263, %262 : vector<1x128xf32>
    %265 = math.tanh %264 : vector<1x128xf32>
    %cst_101 = arith.constant 1.000000e+00 : f32
    %266 = vector.broadcast %cst_101 : f32 to vector<1x128xf32>
    %267 = arith.addf %266, %265 : vector<1x128xf32>
    %cst_102 = arith.constant 5.000000e-01 : f32
    %268 = vector.broadcast %cst_102 : f32 to vector<1x128xf32>
    %269 = arith.mulf %268, %267 : vector<1x128xf32>
    %270 = vector.extract_strided_slice %253 {offsets = [0, 256], sizes = [1, 128], strides = [1, 1]} : vector<1x512xf32> to vector<1x128xf32>
    %271 = math.tanh %270 : vector<1x128xf32>
    %272 = vector.extract_strided_slice %253 {offsets = [0, 384], sizes = [1, 128], strides = [1, 1]} : vector<1x512xf32> to vector<1x128xf32>
    %cst_103 = arith.constant 5.000000e-01 : f32
    %273 = vector.broadcast %cst_103 : f32 to vector<1x128xf32>
    %274 = arith.mulf %273, %272 : vector<1x128xf32>
    %275 = math.tanh %274 : vector<1x128xf32>
    %cst_104 = arith.constant 1.000000e+00 : f32
    %276 = vector.broadcast %cst_104 : f32 to vector<1x128xf32>
    %277 = arith.addf %276, %275 : vector<1x128xf32>
    %cst_105 = arith.constant 5.000000e-01 : f32
    %278 = vector.broadcast %cst_105 : f32 to vector<1x128xf32>
    %279 = arith.mulf %278, %277 : vector<1x128xf32>
    %280 = arith.mulf %269, %248 : vector<1x128xf32>
    %281 = arith.mulf %261, %271 : vector<1x128xf32>
    %282 = arith.addf %280, %281 : vector<1x128xf32>
    %283 = math.tanh %282 : vector<1x128xf32>
    %284 = arith.mulf %279, %283 : vector<1x128xf32>
    %285 = tpu.concatenate %46, %80, %114, %148, %182, %216, %250, %284 in 0 : vector<1x128xf32>, vector<1x128xf32>, vector<1x128xf32>, vector<1x128xf32>, vector<1x128xf32>, vector<1x128xf32>, vector<1x128xf32>, vector<1x128xf32> -> vector<8x128xf32>
    %c0_106 = arith.constant 0 : index
    %c0_107 = arith.constant 0 : index
    %286 = vector.load %arg4[%c0_106, %c0_107] : memref<128x128xf32, #tpu.memory_space<vmem>>, vector<128x128xf32>
    %cst_108 = arith.constant dense<0.000000e+00> : vector<8x128xf32>
    %287 = tpu.matmul %285, %286, %cst_108 {dimension_numbers = #tpu.dot_dimension_numbers<[1], [0], [0], [1], [0, 0, 1, 1], [], []>} : vector<8x128xf32>, vector<128x128xf32>, vector<8x128xf32> -> vector<8x128xf32>
    %c0_109 = arith.constant 0 : index
    %c0_110 = arith.constant 0 : index
    %288 = vector.load %arg5[%c0_109, %c0_110] : memref<1x128xf32, #tpu.memory_space<vmem>>, vector<1x128xf32>
    %289 = vector.broadcast %288 : vector<1x128xf32> to vector<8x128xf32>
    %290 = arith.addf %287, %289 : vector<8x128xf32>
    %c0_111 = arith.constant 0 : index
    %c0_112 = arith.constant 0 : index
    %291 = vector.load %arg6[%c0_111, %c0_112] : memref<8x128xf32, #tpu.memory_space<vmem>>, vector<8x128xf32>
    tpu.vector_store %arg6[%c0_111, %c0_112], %290 {strides = array<i32>} : memref<8x128xf32, #tpu.memory_space<vmem>>, vector<8x128xf32>,
    return
  }
}

</mosaic_0001>

<bundles_post_ra>
// kernel: tpu_custom_call.1
= control target key start
LH: loop header
LB: loop body
LE: loop exit
PB: predicated region body
PF: predicated region fallthrough
CT: control target
= control target key end

     0   :  { %11 = vsyncpa [#allocation7], 0  ;;  %s4804_s0 = inlined_call_operand.hbm [shape: f32[8,8,768], index: 0, kind: input, shape index: {}]   ;;  %s4805_s1 = inlined_call_operand.hbm [shape: f32[768,512], index: 1, kind: input, shape index: {}]   ;;  %s4806_s2 = inlined_call_operand.hbm [shape: f32[128,512], index: 2, kind: input, shape index: {}]   ;;  %s4807_s3 = inlined_call_operand.hbm [shape: f32[1,512], index: 3, kind: input, shape index: {}]   ;;  %s4808_s4 = inlined_call_operand.hbm [shape: f32[128,128], index: 4, kind: input, shape index: {}]   ;;  %s4809_s5 = inlined_call_operand.hbm [shape: f32[1,128], index: 5, kind: input, shape index: {}]   ;;  %s4810_s6 = inlined_call_operand.hbm [shape: f32[8,128], index: 6, kind: output, shape index: {}]  }
   0x1   :  { %12 = vsyncpa [#allocation10], 0 }
   0x2   :  { %13 = vsyncpa [#allocation13], 0 }
   0x3   :  { %14 = vsyncpa [#allocation8], 0  ;;  %s4174_s21 = smov [#allocation9]   ;;  %s4175_s23 = smov [#allocation12]  }
   0x4   :  { %s32_s22 = sshll.u32 %s4174_s21, 4  ;;  %s54_s24 = sshll.u32 %s4175_s23, 4  ;;  %s33_s22 = int_to_ptr.vmem [resolvable:$true] %s32_s22  ;;  %s4226_s24 = int_to_ptr.vmem [resolvable:$true] %s54_s24 }
   0x5   :  { %s4010_s27 = scalar_lea.hbm %s4806_s2, 8192 }
   0x6   :  { %p4011_p0 = scmp.ne.s32.totalorder %s4806_s2, %s4010_s27  ;;  %p4014_p1 = scmp.lt.u32.totalorder %s4010_s27, %s4806_s2 }
   0x8   :  { %p4016_p2 = pnand %p4014_p1, %p4011_p0 }
   0xa   :  { %4019 = shalt.err (!%p4016_p2)
}
   0xb   :  { %s4020_s8 = scalar_lea.vmem %s33_s22, 8192  ;;  %p4025_p4 = scmp.lt.s32.totalorder %s33_s22, %s33_s22 }
   0xc   :  { %p4021_p3 = scmp.ne.s32.totalorder %s33_s22, %s4020_s8  ;;  %p4026_p5 = scmp.lt.s32.totalorder %s4020_s8, %s4020_s8 }
   0xe   :  { %p4027_p6 = por %p4026_p5, %p4025_p4 }
  0x10   :  { %p4028_p7 = pnand %p4027_p6, %p4021_p3 }
  0x12   :  { %4031 = shalt.err (!%p4028_p7)
}
  0x13   :  { %s4176_s9 = smov 512   ;;  %s4177_s10 = smov 32  }
  0x14   :  { %38 = dma.hbm_to_vmem [thread:$0]  %s4806_s2, 8192, %s33_s22, [#allocation10], %s4176_s9, %s4176_s9, %s4177_s10  }
  0x15   :  { %s4032_s15 = scalar_lea.hbm %s4808_s4, 2048 }
  0x16   :  { %p4033_p8 = scmp.ne.s32.totalorder %s4808_s4, %s4032_s15  ;;  %p4036_p9 = scmp.lt.u32.totalorder %s4032_s15, %s4808_s4 }
  0x18   :  { %p4038_p10 = pnand %p4036_p9, %p4033_p8 }
  0x1a   :  { %4041 = shalt.err (!%p4038_p10)
}
  0x1b   :  { %s4042_s20 = scalar_lea.vmem %s4226_s24, 2048  ;;  %p4047_p12 = scmp.lt.s32.totalorder %s4226_s24, %s4226_s24 }
  0x1c   :  { %p4043_p11 = scmp.ne.s32.totalorder %s4226_s24, %s4042_s20  ;;  %p4048_p13 = scmp.lt.s32.totalorder %s4042_s20, %s4042_s20 }
  0x1e   :  { %p4049_p0 = por %p4048_p13, %p4047_p12 }
  0x20   :  { %p4050_p1 = pnand %p4049_p0, %p4043_p11 }
  0x22   :  { %4053 = shalt.err (!%p4050_p1)
}
  0x23   :  { %s4178_s2 = smov 128   ;;  %s4179_s21 = smov 8  }
  0x24   :  { %60 = dma.hbm_to_vmem [thread:$0]  %s4808_s4, 2048, %s4226_s24, [#allocation13], %s4178_s2, %s4178_s2, %s4179_s21  }
  0x25   :  { %s4180_s25 = smov [#allocation6]   ;;  %s4181_s27 = smov [#allocation11]  }
  0x26   :  { %s20_s26 = sshll.u32 %s4180_s25, 4  ;;  %s45_s28 = sshll.u32 %s4181_s27, 4  ;;  %s21_s26 = int_to_ptr.vmem [resolvable:$true] %s20_s26  ;;  %s46_s28 = int_to_ptr.vmem [resolvable:$true] %s45_s28 }
  0x27   :  { %s4054_s7 = scalar_lea.hbm %s4805_s1, 49152 }
  0x28   :  { %p4055_p2 = scmp.ne.s32.totalorder %s4805_s1, %s4054_s7  ;;  %p4058_p3 = scmp.lt.u32.totalorder %s4054_s7, %s4805_s1 }
  0x2a   :  { %p4060_p4 = pnand %p4058_p3, %p4055_p2 }
  0x2c   :  { %4063 = shalt.err (!%p4060_p4)
}
  0x2d   :  { %s4064_s4 = scalar_lea.vmem %s21_s26, 49152  ;;  %p4069_p6 = scmp.lt.s32.totalorder %s21_s26, %s21_s26 }
  0x2e   :  { %p4065_p5 = scmp.ne.s32.totalorder %s21_s26, %s4064_s4  ;;  %p4070_p7 = scmp.lt.s32.totalorder %s4064_s4, %s4064_s4 }
  0x30   :  { %p4071_p8 = por %p4070_p7, %p4069_p6 }
  0x32   :  { %p4072_p9 = pnand %p4071_p8, %p4065_p5 }
  0x34   :  { %4075 = shalt.err (!%p4072_p9)
}
  0x35   :  { %26 = dma.hbm_to_vmem [thread:$0]  %s4805_s1, 49152, %s21_s26, [#allocation7], %s4176_s9, %s4176_s9, %s4177_s10  }
  0x36   :  { %s4076_s17 = scalar_lea.hbm %s4807_s3, 64 }
  0x37   :  { %p4077_p10 = scmp.ne.s32.totalorder %s4807_s3, %s4076_s17  ;;  %p4080_p11 = scmp.lt.u32.totalorder %s4076_s17, %s4807_s3 }
  0x39   :  { %p4082_p12 = pnand %p4080_p11, %p4077_p10 }
  0x3b   :  { %4085 = shalt.err (!%p4082_p12)
}
  0x3c   :  { %s4086_s22 = scalar_lea.vmem %s46_s28, 64  ;;  %p4091_p0 = scmp.lt.s32.totalorder %s46_s28, %s46_s28 }
  0x3d   :  { %p4087_p13 = scmp.ne.s32.totalorder %s46_s28, %s4086_s22  ;;  %p4092_p1 = scmp.lt.s32.totalorder %s4086_s22, %s4086_s22 }
  0x3f   :  { %p4093_p2 = por %p4092_p1, %p4091_p0 }
  0x41   :  { %p4094_p3 = pnand %p4093_p2, %p4087_p13 }
  0x43   :  { %4097 = shalt.err (!%p4094_p3)
}
  0x44   :  { %48 = dma.hbm_to_vmem [thread:$0]  %s4807_s3, 64, %s46_s28, [#allocation10]  }
  0x45   :  { %s4182_s10 = smov [#allocation14]   ;;  %s4098_s27 = scalar_lea.hbm %s4809_s5, 16 }
  0x46   :  { %s67_s23 = sshll.u32 %s4182_s10, 4  ;;  %p4099_p4 = scmp.ne.s32.totalorder %s4809_s5, %s4098_s27  ;;  %s68_s23 = int_to_ptr.vmem [resolvable:$true] %s67_s23 }
  0x47   :  { %p4102_p5 = scmp.lt.u32.totalorder %s4098_s27, %s4809_s5 }
  0x49   :  { %p4104_p6 = pnand %p4102_p5, %p4099_p4 }
  0x4b   :  { %4107 = shalt.err (!%p4104_p6)
}
  0x4c   :  { %s4108_s11 = scalar_lea.vmem %s68_s23, 16  ;;  %s4112_s3 = scalar_lea.vmem %s68_s23, 32 }
  0x4d   :  { %p4109_p7 = scmp.ne.s32.totalorder %s68_s23, %s4108_s11  ;;  %p4113_p8 = scmp.lt.s32.totalorder %s68_s23, %s68_s23 }
  0x4e   :  { %p4114_p9 = scmp.lt.s32.totalorder %s4112_s3, %s4108_s11 }
  0x50   :  { %p4115_p10 = por %p4114_p9, %p4113_p8 }
  0x52   :  { %p4116_p11 = pnand %p4115_p10, %p4109_p7 }
  0x54   :  { %4119 = shalt.err (!%p4116_p11)
}
  0x55   :  { %70 = dma.hbm_to_vmem [thread:$0]  %s4809_s5, 16, %s68_s23, [#allocation13]  }
  0x56   :  { %4164 = dma.done.wait [#allocation7], 49152  }
  0x57   :  { %4165 = vsyncadd [#allocation7], 4294918144 }
  0x58   :  { %4166 = dma.done.wait [#allocation10], 8256  }
  0x59   :  { %4167 = vsyncadd [#allocation10], 4294959040 }
  0x5a   :  { %4168 = dma.done.wait [#allocation13], 2064  }
  0x5b   :  { %4169 = vsyncadd [#allocation13], 4294965232  ;;  %s4183_s13 = smov [#allocation2]   ;;  %s4120_s15 = scalar_lea.hbm %s4804_s0, 768 }
  0x5c   :  { %s87_s4 = sshll.u32 %s4183_s13, 4  ;;  %p4121_p12 = scmp.ne.s32.totalorder %s4804_s0, %s4120_s15  ;;  %s88_s4 = int_to_ptr.vmem [resolvable:$true] %s87_s4 }
  0x5d   :  { %s4122_s5 = scalar_lea.hbm %s4804_s0, 6144  ;;  %p4124_p0 = scmp.lt.u32.totalorder %s4120_s15, %s4804_s0 }
  0x5e   :  { %p4123_p13 = scmp.lt.u32.totalorder %s4122_s5, %s4120_s15 }
  0x60   :  { %p4125_p1 = por %p4124_p0, %p4123_p13 }
  0x62   :  { %p4126_p2 = pnand %p4125_p1, %p4121_p12 }
  0x64   :  { %4129 = shalt.err (!%p4126_p2)  }
  0x65   :  { %s4130_s22 = scalar_lea.vmem %s88_s4, 768  ;;  %p4135_p4 = scmp.lt.s32.totalorder %s88_s4, %s88_s4 }
  0x66   :  { %p4131_p3 = scmp.ne.s32.totalorder %s88_s4, %s4130_s22  ;;  %p4136_p5 = scmp.lt.s32.totalorder %s4130_s22, %s4130_s22 }
  0x68   :  { %p4137_p6 = por %p4136_p5, %p4135_p4 }
  0x6a   :  { %p4138_p7 = pnand %p4137_p6, %p4131_p3 }
  0x6c   :  { %4141 = shalt.err (!%p4138_p7)  }
  0x6d   :  { %s4184_s1 = smov 16   ;;  %s4185_s9 = smov 1  }
  0x6e   :  { %90 = dma.hbm_to_vmem [thread:$0]  %s4804_s0, 768, %s88_s4, [#allocation5], %s4178_s2, %s4184_s1, %s4185_s9 }
  0x6f   :  { %4170 = dma.done.wait [#allocation5], 768 }
  0x70   :  { %4171 = vsyncadd [#allocation5], 4294966528  ;;  %v104_v0 = vld [vmem:[#allocation6 + $0x8] sm:$0xff]  ;;  %v106_v2 = vld [vmem:[#allocation6 + $0x18] sm:$0xff]  ;;  %vm2784_vm0 = vcmask 1040384   ;;  %vm2786_vm1 = vcmask 1041408  }
  0x71   :  { %v108_v1 = vld [vmem:[#allocation6 + $0x28] sm:$0xff]  ;;  %v110_v4 = vld [vmem:[#allocation6 + $0x38] sm:$0xff]  ;;  %v103_v5 = vld [vmem:[#allocation6] sm:$0xff]  ;;  %vm2788_vm2 = vcmask 1042432   ;;  %vm2790_vm3 = vcmask 1043456   ;;  %vm2792_vm4 = vcmask 1044480  }
  0x72   :  { %v2969_v3 = vpack.c.bf16 %v108_v1, %v104_v0  ;;  %v107_v6 = vld [vmem:[#allocation6 + $0x20] sm:$0xff]  ;;  %v3161_v7 = vpack.c.bf16 %v110_v4, %v106_v2  ;;  %v105_v9 = vld [vmem:[#allocation6 + $0x10] sm:$0xff]  ;;  %v112_v11 = vld [vmem:[#allocation6 + $0x48] sm:$0xff]  ;;  %vm2794_vm5 = vcmask 1045504   ;;  %vm4189_vm6 = vmmov 0   ;;  %s4190_s0 = smov [#allocation15]  }
  0x73   :  { %v2971_v8 = vpack.c.bf16 %v107_v6, %v103_v5  ;;  %v109_v10 = vld [vmem:[#allocation6 + $0x30] sm:$0xff]  ;;  %v116_v13 = vld [vmem:[#allocation6 + $0x68] sm:$0xff]  ;;  %v114_v14 = vld [vmem:[#allocation6 + $0x58] sm:$0xff]  ;;  %vm2796_vm7 = vcmask 1046528   ;;  %s2898_s2 = sshll.u32 %s4190_s0, 4  ;;  %s2899_s2 = int_to_ptr.vmem [resolvable:$true] %s2898_s2 }
  0x74   :  { %2970 = vmatprep.subr.bf16.mxu0 %v2969_v3  ;;  %v3163_v12 = vpack.c.bf16 %v109_v10, %v105_v9  ;;  %v118_v15 = vld [vmem:[#allocation6 + $0x78] sm:$0xff]  ;;  %3162 = vmatprep.subr.bf16.mxu1 %v3161_v7  ;;  %v2973_v16 = vpack.c.bf16 %v116_v13, %v112_v11  ;;  %v111_v18 = vld [vmem:[#allocation6 + $0x40] sm:$0xff]  ;;  %v113_v20 = vld [vmem:[#allocation6 + $0x50] sm:$0xff]  ;;  %s4142_s25 = scalar_lea.vmem %s2899_s2, 128  ;;  %p4147_p9 = scmp.lt.s32.totalorder %s2899_s2, %s2899_s2 }
  0x75   :  { %2972 = vmatpush1.bf16.msra.mxu0 %v2971_v8  ;;  %v3165_v17 = vpack.c.bf16 %v118_v15, %v114_v14  ;;  %v115_v19 = vld [vmem:[#allocation6 + $0x60] sm:$0xff]  ;;  %v117_v22 = vld [vmem:[#allocation6 + $0x70] sm:$0xff]  ;;  %v120_v23 = vld [vmem:[#allocation6 + $0x88] sm:$0xff]  ;;  %p4143_p8 = scmp.ne.s32.totalorder %s2899_s2, %s4142_s25  ;;  %p4148_p10 = scmp.lt.s32.totalorder %s4142_s25, %s4142_s25 }
  0x76   :  { %3164 = vmatpush1.bf16.msra.mxu1 %v3163_v12  ;;  %v2975_v21 = vpack.c.bf16 %v115_v19, %v111_v18  ;;  %v124_v24 = vld [vmem:[#allocation6 + $0xa8] sm:$0xff]  ;;  %2974 = vmatprep.subr.bf16.mxu0 %v2973_v16  ;;  %v3167_v25 = vpack.c.bf16 %v117_v22, %v113_v20  ;;  %v122_v27 = vld [vmem:[#allocation6 + $0x98] sm:$0xff]  ;;  %v119_v29 = vld [vmem:[#allocation6 + $0x80] sm:$0xff] }
  0x77   :  { %3166 = vmatprep.subr.bf16.mxu1 %v3165_v17  ;;  %v2977_v26 = vpack.c.bf16 %v124_v24, %v120_v23  ;;  %v126_v28 = vld [vmem:[#allocation6 + $0xb8] sm:$0xff]  ;;  %v123_v31 = vld [vmem:[#allocation6 + $0xa0] sm:$0xff]  ;;  %v121_v32 = vld [vmem:[#allocation6 + $0x90] sm:$0xff]  ;;  %p4149_p11 = por %p4148_p10, %p4147_p9 }
  0x78   :  { %v3169_v30 = vpack.c.bf16 %v126_v28, %v122_v27  ;;  %v125_v33 = vld [vmem:[#allocation6 + $0xb0] sm:$0xff]  ;;  %v2979_v34 = vpack.c.bf16 %v123_v31, %v119_v29  ;;  %v128_v35 = vld [vmem:[#allocation6 + $0xc8] sm:$0xff]  ;;  %v130_v37 = vld [vmem:[#allocation6 + $0xd8] sm:$0xff] }
  0x79   :  { %2976 = vmatpush1.bf16.msra.mxu0 %v2975_v21  ;;  %v132_v36 = vld [vmem:[#allocation6 + $0xe8] sm:$0xff]  ;;  %v3171_v38 = vpack.c.bf16 %v125_v33, %v121_v32  ;;  %v134_v40 = vld [vmem:[#allocation6 + $0xf8] sm:$0xff]  ;;  %v127_v41 = vld [vmem:[#allocation6 + $0xc0] sm:$0xff]  ;;  %p4150_p12 = pnand %p4149_p11, %p4143_p8 }
  0x7a   :  { %3168 = vmatpush1.bf16.msra.mxu1 %v3167_v25  ;;  %2978 = vmatprep.subr.bf16.mxu0 %v2977_v26  ;;  %v2981_v39 = vpack.c.bf16 %v132_v36, %v128_v35  ;;  %v131_v42 = vld [vmem:[#allocation6 + $0xe0] sm:$0xff]  ;;  %v3173_v43 = vpack.c.bf16 %v134_v40, %v130_v37  ;;  %v129_v44 = vld [vmem:[#allocation6 + $0xd0] sm:$0xff]  ;;  %v136_v46 = vld [vmem:[#allocation6 + $0x108] sm:$0xff] }
  0x7b   :  { %3170 = vmatprep.subr.bf16.mxu1 %v3169_v30  ;;  %v133_v45 = vld [vmem:[#allocation6 + $0xf0] sm:$0xff]  ;;  %v140_v47 = vld [vmem:[#allocation6 + $0x128] sm:$0xff]  ;;  %v138_v48 = vld [vmem:[#allocation6 + $0x118] sm:$0xff]  ;;  %v2983_v50 = vpack.c.bf16 %v131_v42, %v127_v41 }
  0x7c   :  { %v142_v49 = vld [vmem:[#allocation6 + $0x138] sm:$0xff]  ;;  %v3175_v51 = vpack.c.bf16 %v133_v45, %v129_v44  ;;  %v2985_v52 = vpack.c.bf16 %v140_v47, %v136_v46  ;;  %v135_v53 = vld [vmem:[#allocation6 + $0x100] sm:$0xff]  ;;  %v137_v55 = vld [vmem:[#allocation6 + $0x110] sm:$0xff] }
  0x7d   :  { %2980 = vmatpush1.bf16.msra.mxu0 %v2979_v34  ;;  %v139_v54 = vld [vmem:[#allocation6 + $0x120] sm:$0xff]  ;;  %v3177_v56 = vpack.c.bf16 %v142_v49, %v138_v48  ;;  %v141_v57 = vld [vmem:[#allocation6 + $0x130] sm:$0xff]  ;;  %v144_v58 = vld [vmem:[#allocation6 + $0x148] sm:$0xff] }
  0x7e   :  { %3172 = vmatpush1.bf16.msra.mxu1 %v3171_v38  ;;  %2982 = vmatprep.subr.bf16.mxu0 %v2981_v39  ;;  %v148_v59 = vld [vmem:[#allocation6 + $0x168] sm:$0xff]  ;;  %v146_v60 = vld [vmem:[#allocation6 + $0x158] sm:$0xff]  ;;  %v2987_v62 = vpack.c.bf16 %v139_v54, %v135_v53  ;;  %v3179_v63 = vpack.c.bf16 %v141_v57, %v137_v55  ;;  %v143_v1 = vld [vmem:[#allocation6 + $0x140] sm:$0xff] }
  0x7f   :  { %3174 = vmatprep.subr.bf16.mxu1 %v3173_v43  ;;  %v150_v61 = vld [vmem:[#allocation6 + $0x178] sm:$0xff]  ;;  %v2989_v0 = vpack.c.bf16 %v148_v59, %v144_v58  ;;  %v147_v2 = vld [vmem:[#allocation6 + $0x160] sm:$0xff]  ;;  %v145_v3 = vld [vmem:[#allocation6 + $0x150] sm:$0xff]  ;;  %v489_v58 = vlaneseq  ;;  %v4186_v59 = vmov 1966171168  }
  0x80   :  { %v3181_v4 = vpack.c.bf16 %v150_v61, %v146_v60  ;;  %v149_v5 = vld [vmem:[#allocation6 + $0x170] sm:$0xff]  ;;  %v152_v6 = vld [vmem:[#allocation6 + $0x188] sm:$0xff]  ;;  %v154_v8 = vld [vmem:[#allocation6 + $0x198] sm:$0xff]  ;;  %v2991_v10 = vpack.c.bf16 %v147_v2, %v143_v1  ;;  %v526_v60 = vunpack.c.l.s4 %v4186_v59 }
  0x81   :  { %2984 = vmatpush1.bf16.msra.mxu0 %v2983_v50  ;;  %v156_v7 = vld [vmem:[#allocation6 + $0x1a8] sm:$0xff]  ;;  %v158_v9 = vld [vmem:[#allocation6 + $0x1b8] sm:$0xff]  ;;  %v3183_v11 = vpack.c.bf16 %v149_v5, %v145_v3  ;;  %v151_v13 = vld [vmem:[#allocation6 + $0x180] sm:$0xff] }
  0x82   :  { %3176 = vmatpush1.bf16.msra.mxu1 %v3175_v51  ;;  %2986 = vmatprep.subr.bf16.mxu0 %v2985_v52  ;;  %v2993_v12 = vpack.c.bf16 %v156_v7, %v152_v6  ;;  %v155_v14 = vld [vmem:[#allocation6 + $0x1a0] sm:$0xff]  ;;  %v153_v15 = vld [vmem:[#allocation6 + $0x190] sm:$0xff]  ;;  %v3185_v16 = vpack.c.bf16 %v158_v9, %v154_v8  ;;  %v160_v18 = vld [vmem:[#allocation6 + $0x1c8] sm:$0xff]  ;;  %v4317_v9 = vshrl.u32 %v489_v58, 7 }
  0x83   :  { %3178 = vmatprep.subr.bf16.mxu1 %v3177_v56  ;;  %v157_v17 = vld [vmem:[#allocation6 + $0x1b0] sm:$0xff]  ;;  %v164_v19 = vld [vmem:[#allocation6 + $0x1e8] sm:$0xff]  ;;  %v162_v20 = vld [vmem:[#allocation6 + $0x1d8] sm:$0xff]  ;;  %v2995_v22 = vpack.c.bf16 %v155_v14, %v151_v13 }
  0x84   :  { %v166_v21 = vld [vmem:[#allocation6 + $0x1f8] sm:$0xff]  ;;  %v3187_v23 = vpack.c.bf16 %v157_v17, %v153_v15  ;;  %v2997_v24 = vpack.c.bf16 %v164_v19, %v160_v18  ;;  %v159_v25 = vld [vmem:[#allocation6 + $0x1c0] sm:$0xff]  ;;  %v161_v27 = vld [vmem:[#allocation6 + $0x1d0] sm:$0xff] }
  0x85   :  { %2988 = vmatpush1.bf16.msra.mxu0 %v2987_v62  ;;  %v163_v26 = vld [vmem:[#allocation6 + $0x1e0] sm:$0xff]  ;;  %v3189_v28 = vpack.c.bf16 %v166_v21, %v162_v20  ;;  %v165_v29 = vld [vmem:[#allocation6 + $0x1f0] sm:$0xff]  ;;  %v168_v30 = vld [vmem:[#allocation6 + $0x208] sm:$0xff] }
  0x86   :  { %3180 = vmatpush1.bf16.msra.mxu1 %v3179_v63  ;;  %2990 = vmatprep.subr.bf16.mxu0 %v2989_v0  ;;  %v172_v31 = vld [vmem:[#allocation6 + $0x228] sm:$0xff]  ;;  %v170_v32 = vld [vmem:[#allocation6 + $0x218] sm:$0xff]  ;;  %v2999_v34 = vpack.c.bf16 %v163_v26, %v159_v25  ;;  %v3191_v35 = vpack.c.bf16 %v165_v29, %v161_v27  ;;  %v167_v37 = vld [vmem:[#allocation6 + $0x200] sm:$0xff] }
  0x87   :  { %3182 = vmatprep.subr.bf16.mxu1 %v3181_v4  ;;  %v174_v33 = vld [vmem:[#allocation6 + $0x238] sm:$0xff]  ;;  %v3001_v36 = vpack.c.bf16 %v172_v31, %v168_v30  ;;  %v171_v38 = vld [vmem:[#allocation6 + $0x220] sm:$0xff]  ;;  %v169_v39 = vld [vmem:[#allocation6 + $0x210] sm:$0xff] }
  0x88   :  { %v3193_v40 = vpack.c.bf16 %v174_v33, %v170_v32  ;;  %v173_v41 = vld [vmem:[#allocation6 + $0x230] sm:$0xff]  ;;  %v176_v42 = vld [vmem:[#allocation6 + $0x248] sm:$0xff]  ;;  %v178_v44 = vld [vmem:[#allocation6 + $0x258] sm:$0xff]  ;;  %v3003_v46 = vpack.c.bf16 %v171_v38, %v167_v37 }
  0x89   :  { %2992 = vmatpush1.bf16.msra.mxu0 %v2991_v10  ;;  %v180_v43 = vld [vmem:[#allocation6 + $0x268] sm:$0xff]  ;;  %v182_v45 = vld [vmem:[#allocation6 + $0x278] sm:$0xff]  ;;  %v3195_v47 = vpack.c.bf16 %v173_v41, %v169_v39  ;;  %v175_v49 = vld [vmem:[#allocation6 + $0x240] sm:$0xff]  ;;  %v527_v10 = vunpack.c.0.s8 %v526_v60 }
  0x8a   :  { %3184 = vmatpush1.bf16.msra.mxu1 %v3183_v11  ;;  %2994 = vmatprep.subr.bf16.mxu0 %v2993_v12  ;;  %v3005_v48 = vpack.c.bf16 %v180_v43, %v176_v42  ;;  %v179_v50 = vld [vmem:[#allocation6 + $0x260] sm:$0xff]  ;;  %v177_v51 = vld [vmem:[#allocation6 + $0x250] sm:$0xff]  ;;  %v3197_v52 = vpack.c.bf16 %v182_v45, %v178_v44  ;;  %v184_v54 = vld [vmem:[#allocation6 + $0x288] sm:$0xff] }
  0x8b   :  { %3186 = vmatprep.subr.bf16.mxu1 %v3185_v16  ;;  %v181_v53 = vld [vmem:[#allocation6 + $0x270] sm:$0xff]  ;;  %v188_v55 = vld [vmem:[#allocation6 + $0x2a8] sm:$0xff]  ;;  %v186_v56 = vld [vmem:[#allocation6 + $0x298] sm:$0xff]  ;;  %v3007_v61 = vpack.c.bf16 %v179_v50, %v175_v49  ;;  %v4320_v27 = vsub.s32 %v527_v10, %v4317_v9 }
  0x8c   :  { %v190_v57 = vld [vmem:[#allocation6 + $0x2b8] sm:$0xff]  ;;  %v3199_v62 = vpack.c.bf16 %v181_v53, %v177_v51  ;;  %v3009_v63 = vpack.c.bf16 %v188_v55, %v184_v54  ;;  %v183_v0 = vld [vmem:[#allocation6 + $0x280] sm:$0xff]  ;;  %v185_v2 = vld [vmem:[#allocation6 + $0x290] sm:$0xff] }
  0x8d   :  { %2996 = vmatpush1.bf16.msra.mxu0 %v2995_v22  ;;  %v187_v1 = vld [vmem:[#allocation6 + $0x2a0] sm:$0xff]  ;;  %v3201_v3 = vpack.c.bf16 %v190_v57, %v186_v56  ;;  %v189_v4 = vld [vmem:[#allocation6 + $0x2b0] sm:$0xff]  ;;  %v192_v5 = vld [vmem:[#allocation6 + $0x2c8] sm:$0xff] }
  0x8e   :  { %3188 = vmatpush1.bf16.msra.mxu1 %v3187_v23  ;;  %2998 = vmatprep.subr.bf16.mxu0 %v2997_v24  ;;  %v196_v6 = vld [vmem:[#allocation6 + $0x2e8] sm:$0xff]  ;;  %v194_v7 = vld [vmem:[#allocation6 + $0x2d8] sm:$0xff]  ;;  %v3011_v11 = vpack.c.bf16 %v187_v1, %v183_v0  ;;  %v191_v12 = vld [vmem:[#allocation6 + $0x2c0] sm:$0xff]  ;;  %v3203_v15 = vpack.c.bf16 %v189_v4, %v185_v2 }
  0x8f   :  { %3190 = vmatprep.subr.bf16.mxu1 %v3189_v28  ;;  %v198_v8 = vld [vmem:[#allocation6 + $0x2f8] sm:$0xff]  ;;  %v195_v13 = vld [vmem:[#allocation6 + $0x2e0] sm:$0xff]  ;;  %v193_v14 = vld [vmem:[#allocation6 + $0x2d0] sm:$0xff]  ;;  %v3013_v16 = vpack.c.bf16 %v196_v6, %v192_v5 }
  0x90   :  { %v197_v17 = vld [vmem:[#allocation6 + $0x2f0] sm:$0xff]  ;;  %v200_v18 = vld [vmem:[#allocation6 + $0x308] sm:$0xff]  ;;  %v3205_v20 = vpack.c.bf16 %v198_v8, %v194_v7  ;;  %v202_v21 = vld [vmem:[#allocation6 + $0x318] sm:$0xff]  ;;  %v3015_v28 = vpack.c.bf16 %v195_v13, %v191_v12 }
  0x91   :  { %3000 = vmatpush1.bf16.msra.mxu0 %v2999_v34  ;;  %v204_v19 = vld [vmem:[#allocation6 + $0x328] sm:$0xff]  ;;  %v206_v22 = vld [vmem:[#allocation6 + $0x338] sm:$0xff]  ;;  %v199_v23 = vld [vmem:[#allocation6 + $0x300] sm:$0xff]  ;;  %v3207_v29 = vpack.c.bf16 %v197_v17, %v193_v14 }
  0x92   :  { %3192 = vmatpush1.bf16.msra.mxu1 %v3191_v35  ;;  %3002 = vmatprep.subr.bf16.mxu0 %v3001_v36  ;;  %v203_v24 = vld [vmem:[#allocation6 + $0x320] sm:$0xff]  ;;  %v201_v25 = vld [vmem:[#allocation6 + $0x310] sm:$0xff]  ;;  %v3017_v30 = vpack.c.bf16 %v204_v19, %v200_v18  ;;  %v3209_v33 = vpack.c.bf16 %v206_v22, %v202_v21  ;;  %v208_v34 = vld [vmem:[#allocation6 + $0x348] sm:$0xff] }
  0x93   :  { %3194 = vmatprep.subr.bf16.mxu1 %v3193_v40  ;;  %v205_v26 = vld [vmem:[#allocation6 + $0x330] sm:$0xff]  ;;  %v3921_v32 = vld [vmem:[#allocation2 + $0xc] ss:$6 sps:$4 sm:$0xff]   ;;  %v212_v35 = vld [vmem:[#allocation6 + $0x368] sm:$0xff]  ;;  %v3019_v41 = vpack.c.bf16 %v203_v24, %v199_v23 }
  0x94   :  { %v3918_v31 = vld [vmem:[#allocation2] ss:$6 sps:$4 sm:$0xff]   ;;  %v545_v40 = vrot.slane %v3921_v32, %v4320_v27  ;;  %v3211_v42 = vpack.c.bf16 %v205_v26, %v201_v25  ;;  %v3021_v44 = vpack.c.bf16 %v212_v35, %v208_v34  ;;  %v207_v45 = vld [vmem:[#allocation6 + $0x340] sm:$0xff]  ;;  %v220_v53 = vld [vmem:[#allocation6 + $0x3a8] sm:$0xff] }
  0x95   :  { %3004 = vmatpush1.bf16.msra.mxu0 %v3003_v46  ;;  %v210_v36 = vld [vmem:[#allocation6 + $0x358] sm:$0xff]  ;;  %v3924_v38 = vld [vmem:[#allocation2 + $0x18] ss:$6 sps:$4 sm:$0xff]   ;;  %v531_v39 = vrot.slane %v3918_v31, %v4320_v27  ;;  %v211_v46 = vld [vmem:[#allocation6 + $0x360] sm:$0xff] }
  0x96   :  { %3196 = vmatpush1.bf16.msra.mxu1 %v3195_v47  ;;  %3006 = vmatprep.subr.bf16.mxu0 %v3005_v48  ;;  %v214_v37 = vld [vmem:[#allocation6 + $0x378] sm:$0xff]  ;;  %v209_v47 = vld [vmem:[#allocation6 + $0x350] sm:$0xff]  ;;  %v559_v48 = vrot.slane %v3924_v38, %v4320_v27  ;;  %v3023_v58 = vpack.c.bf16 %v211_v46, %v207_v45  ;;  %v215_v0 = vld [vmem:[#allocation6 + $0x380] sm:$0xff] }
  0x97   :  { %3198 = vmatprep.subr.bf16.mxu1 %v3197_v52  ;;  %v3927_v43 = vld [vmem:[#allocation2 + $0x24] ss:$6 sps:$4 sm:$0xff]   ;;  %v582_v49 = vcombine.high %v531_v39, %v545_v40  ;;  %v3213_v50 = vpack.c.bf16 %v214_v37, %v210_v36  ;;  %v216_v52 = vld [vmem:[#allocation6 + $0x388] sm:$0xff]  ;;  %v581_v57 = vcombine.low %v531_v39, %v545_v40  ;;  %v219_v1 = vld [vmem:[#allocation6 + $0x3a0] sm:$0xff] }
  0x98   :  { %v213_v51 = vld [vmem:[#allocation6 + $0x370] sm:$0xff]  ;;  %v573_v54 = vrot.slane %v3927_v43, %v4320_v27  ;;  %v218_v55 = vld [vmem:[#allocation6 + $0x398] sm:$0xff]  ;;  %v224_v5 = vld [vmem:[#allocation6 + $0x3c8] sm:$0xff]  ;;  %v3027_v13 = vpack.c.bf16 %v219_v1, %v215_v0 }
  0x99   :  { %3008 = vmatpush1.bf16.msra.mxu0 %v3007_v61  ;;  %v222_v56 = vld [vmem:[#allocation6 + $0x3b8] sm:$0xff]  ;;  %v4327_v60 = vrot.slane %v582_v49, %v4320_v27  ;;  %v217_v2 = vld [vmem:[#allocation6 + $0x390] sm:$0xff]  ;;  %v228_v6 = vld [vmem:[#allocation6 + $0x3e8] sm:$0xff] }
  0x9a   :  { %3200 = vmatpush1.bf16.msra.mxu1 %v3199_v62  ;;  %3010 = vmatprep.subr.bf16.mxu0 %v3009_v63  ;;  %v586_v59 = vcombine.high %v559_v48, %v573_v54  ;;  %v585_v61 = vcombine.low %v559_v48, %v573_v54  ;;  %v3215_v62 = vpack.c.bf16 %v213_v51, %v209_v47  ;;  %v221_v4 = vld [vmem:[#allocation6 + $0x3b0] sm:$0xff]  ;;  %v226_v8 = vld [vmem:[#allocation6 + $0x3d8] sm:$0xff]  ;;  %v223_v17 = vld [vmem:[#allocation6 + $0x3c0] sm:$0xff] }
  0x9b   :  { %3202 = vmatprep.subr.bf16.mxu1 %v3201_v3  ;;  %v3025_v63 = vpack.c.bf16 %v220_v53, %v216_v52  ;;  %v3217_v3 = vpack.c.bf16 %v222_v56, %v218_v55  ;;  %v230_v10 = vld [vmem:[#allocation6 + $0x3f8] sm:$0xff]  ;;  %v227_v18 = vld [vmem:[#allocation6 + $0x3e0] sm:$0xff]  ;;  %v225_v19 = vld [vmem:[#allocation6 + $0x3d0] sm:$0xff] }
  0x9c   :  { %v637_v7 = vrot.slane %v586_v59, %v4320_v27  ;;  %v623_v12 = vrot.slane %v585_v61, %v4320_v27  ;;  %v3221_v21 = vpack.c.bf16 %v230_v10, %v226_v8  ;;  %v229_v22 = vld [vmem:[#allocation6 + $0x3f0] sm:$0xff]  ;;  %v232_v23 = vld [vmem:[#allocation6 + $0x408] sm:$0xff]  ;;  %v234_v25 = vld [vmem:[#allocation6 + $0x418] sm:$0xff] }
  0x9d   :  { %3012 = vmatpush1.bf16.msra.mxu0 %v3011_v11  ;;  %v595_v11 = vrot.slane %v581_v57, %v4320_v27  ;;  %v236_v24 = vld [vmem:[#allocation6 + $0x428] sm:$0xff]  ;;  %v238_v26 = vld [vmem:[#allocation6 + $0x438] sm:$0xff]  ;;  %v231_v31 = vld [vmem:[#allocation6 + $0x400] sm:$0xff] }
  0x9e   :  { %3204 = vmatpush1.bf16.msra.mxu1 %v3203_v15  ;;  %3014 = vmatprep.subr.bf16.mxu0 %v3013_v16  ;;  %v648_v14 = vcombine.low %v4327_v60, %v637_v7  ;;  %v3219_v15 = vpack.c.bf16 %v221_v4, %v217_v2  ;;  %v3029_v16 = vpack.c.bf16 %v228_v6, %v224_v5  ;;  %v235_v32 = vld [vmem:[#allocation6 + $0x420] sm:$0xff]  ;;  %v237_v35 = vld [vmem:[#allocation6 + $0x430] sm:$0xff]  ;;  %v240_v36 = vld [vmem:[#allocation6 + $0x448] sm:$0xff] }
  0x9f   :  { %3206 = vmatprep.subr.bf16.mxu1 %v3205_v20  ;;  %v4333_v20 = vcombine.high %v595_v11, %v623_v12  ;;  %v3225_v34 = vpack.c.bf16 %v238_v26, %v234_v25  ;;  %v244_v37 = vld [vmem:[#allocation6 + $0x468] sm:$0xff]  ;;  %v645_v38 = vcombine.low %v595_v11, %v623_v12  ;;  %v242_v39 = vld [vmem:[#allocation6 + $0x458] sm:$0xff]  ;;  %v243_v45 = vld [vmem:[#allocation6 + $0x460] sm:$0xff]  ;;  %v649_v51 = vcombine.high %v4327_v60, %v637_v7 }
  0xa0   :  { %721 = vmatprep.mubr.f32.mxu0 %v648_v14  ;;  %934 = vmatprep.mubr.f32.mxu1 %v648_v14  ;;  %v246_v40 = vld [vmem:[#allocation6 + $0x478] sm:$0xff]  ;;  %v3037_v43 = vpack.c.bf16 %v244_v37, %v240_v36  ;;  %v241_v46 = vld [vmem:[#allocation6 + $0x450] sm:$0xff]  ;;  %v248_v49 = vld [vmem:[#allocation6 + $0x488] sm:$0xff] }
  0xa1   :  { %3016 = vmatpush1.bf16.msra.mxu0 %v3015_v28  ;;  %v3031_v28 = vpack.c.bf16 %v227_v18, %v223_v17  ;;  %v3229_v47 = vpack.c.bf16 %v246_v40, %v242_v39  ;;  %v245_v48 = vld [vmem:[#allocation6 + $0x470] sm:$0xff]  ;;  %v250_v52 = vld [vmem:[#allocation6 + $0x498] sm:$0xff]  ;;  %v247_v57 = vld [vmem:[#allocation6 + $0x480] sm:$0xff] }
  0xa2   :  { %3208 = vmatpush1.bf16.msra.mxu1 %v3207_v29  ;;  %3018 = vmatprep.subr.bf16.mxu0 %v3017_v30  ;;  %v3223_v29 = vpack.c.bf16 %v229_v22, %v225_v19  ;;  %v3033_v30 = vpack.c.bf16 %v236_v24, %v232_v23  ;;  %v254_v53 = vld [vmem:[#allocation6 + $0x4b8] sm:$0xff]  ;;  %v3231_v55 = vpack.c.bf16 %v245_v48, %v241_v46  ;;  %v249_v59 = vld [vmem:[#allocation6 + $0x490] sm:$0xff]  ;;  %v260_v0 = vld [vmem:[#allocation6 + $0x4e8] sm:$0xff] }
  0xa3   :  { %3210 = vmatprep.subr.bf16.mxu1 %v3209_v33  ;;  %v233_v33 = vld [vmem:[#allocation6 + $0x410] sm:$0xff]  ;;  %v3233_v61 = vpack.c.bf16 %v254_v53, %v250_v52  ;;  %v258_v60 = vld [vmem:[#allocation6 + $0x4d8] sm:$0xff]  ;;  %v255_v5 = vld [vmem:[#allocation6 + $0x4c0] sm:$0xff] }
  0xa4   :  { %v262_v1 = vld [vmem:[#allocation6 + $0x4f8] sm:$0xff]  ;;  %v259_v6 = vld [vmem:[#allocation6 + $0x4e0] sm:$0xff]  ;;  %v257_v7 = vld [vmem:[#allocation6 + $0x4d0] sm:$0xff] }
  0xa5   :  { %3020 = vmatpush1.bf16.msra.mxu0 %v3019_v41  ;;  %v3035_v41 = vpack.c.bf16 %v235_v32, %v231_v31  ;;  %v3237_v8 = vpack.c.bf16 %v262_v1, %v258_v60  ;;  %v261_v10 = vld [vmem:[#allocation6 + $0x4f0] sm:$0xff]  ;;  %v264_v11 = vld [vmem:[#allocation6 + $0x508] sm:$0xff]  ;;  %v270_v14 = vld [vmem:[#allocation6 + $0x538] sm:$0xff] }
  0xa6   :  { %3212 = vmatpush1.bf16.msra.mxu1 %v3211_v42  ;;  %3022 = vmatprep.subr.bf16.mxu0 %v3021_v44  ;;  %v3227_v42 = vpack.c.bf16 %v237_v35, %v233_v33  ;;  %v239_v44 = vld [vmem:[#allocation6 + $0x440] sm:$0xff]  ;;  %v268_v12 = vld [vmem:[#allocation6 + $0x528] sm:$0xff]  ;;  %v269_v23 = vld [vmem:[#allocation6 + $0x530] sm:$0xff] }
  0xa7   :  { %3214 = vmatprep.subr.bf16.mxu1 %v3213_v50  ;;  %v252_v50 = vld [vmem:[#allocation6 + $0x4a8] sm:$0xff]  ;;  %v3039_v54 = vpack.c.bf16 %v243_v45, %v239_v44  ;;  %v3049_v17 = vpack.c.bf16 %v268_v12, %v264_v11  ;;  %v263_v18 = vld [vmem:[#allocation6 + $0x500] sm:$0xff]  ;;  %v274_v26 = vld [vmem:[#allocation6 + $0x558] sm:$0xff] }
  0xa8   :  { %v3041_v56 = vpack.c.bf16 %v252_v50, %v248_v49  ;;  %v267_v19 = vld [vmem:[#allocation6 + $0x520] sm:$0xff]  ;;  %v272_v24 = vld [vmem:[#allocation6 + $0x548] sm:$0xff]  ;;  %v277_v36 = vld [vmem:[#allocation6 + $0x570] sm:$0xff] }
  0xa9   :  { %3024 = vmatpush1.bf16.msra.mxu0 %v3023_v58  ;;  %v251_v58 = vld [vmem:[#allocation6 + $0x4a0] sm:$0xff]  ;;  %v276_v25 = vld [vmem:[#allocation6 + $0x568] sm:$0xff]  ;;  %v282_v39 = vld [vmem:[#allocation6 + $0x598] sm:$0xff] }
  0xaa   :  { %3216 = vmatpush1.bf16.msra.mxu1 %v3215_v62  ;;  %3026 = vmatprep.subr.bf16.mxu0 %v3025_v63  ;;  %v253_v62 = vld [vmem:[#allocation6 + $0x4b0] sm:$0xff]  ;;  %v256_v63 = vld [vmem:[#allocation6 + $0x4c8] sm:$0xff]  ;;  %v3043_v2 = vpack.c.bf16 %v251_v58, %v247_v57  ;;  %v3053_v31 = vpack.c.bf16 %v276_v25, %v272_v24  ;;  %v271_v32 = vld [vmem:[#allocation6 + $0x540] sm:$0xff] }
  0xab   :  { %3218 = vmatprep.subr.bf16.mxu1 %v3217_v3  ;;  %v3235_v3 = vpack.c.bf16 %v253_v62, %v249_v59  ;;  %v3045_v4 = vpack.c.bf16 %v260_v0, %v256_v63  ;;  %v275_v33 = vld [vmem:[#allocation6 + $0x560] sm:$0xff]  ;;  %v280_v37 = vld [vmem:[#allocation6 + $0x588] sm:$0xff]  ;;  %v286_v40 = vld [vmem:[#allocation6 + $0x5b8] sm:$0xff] }
  0xac   :  { %v279_v44 = vld [vmem:[#allocation6 + $0x580] sm:$0xff]  ;;  %v281_v46 = vld [vmem:[#allocation6 + $0x590] sm:$0xff]  ;;  %v288_v49 = vld [vmem:[#allocation6 + $0x5c8] sm:$0xff] }
  0xad   :  { %3028 = vmatpush1.bf16.msra.mxu0 %v3027_v13  ;;  %v266_v13 = vld [vmem:[#allocation6 + $0x518] sm:$0xff]  ;;  %v283_v45 = vld [vmem:[#allocation6 + $0x5a0] sm:$0xff]  ;;  %v285_v48 = vld [vmem:[#allocation6 + $0x5b0] sm:$0xff] }
  0xae   :  { %3220 = vmatpush1.bf16.msra.mxu1 %v3219_v15  ;;  %3030 = vmatprep.subr.bf16.mxu0 %v3029_v16  ;;  %v3047_v15 = vpack.c.bf16 %v259_v6, %v255_v5  ;;  %v3239_v16 = vpack.c.bf16 %v261_v10, %v257_v7  ;;  %v3241_v22 = vpack.c.bf16 %v270_v14, %v266_v13  ;;  %v292_v50 = vld [vmem:[#allocation6 + $0x5e8] sm:$0xff]  ;;  %v294_v52 = vld [vmem:[#allocation6 + $0x5f8] sm:$0xff]  ;;  %v291_v57 = vld [vmem:[#allocation6 + $0x5e0] sm:$0xff] }
  0xaf   :  { %3222 = vmatprep.subr.bf16.mxu1 %v3221_v21  ;;  %v265_v21 = vld [vmem:[#allocation6 + $0x510] sm:$0xff]  ;;  %v3059_v53 = vpack.c.bf16 %v283_v45, %v279_v44  ;;  %v296_v62 = vld [vmem:[#allocation6 + $0x608] sm:$0xff]  ;;  %v298_v0 = vld [vmem:[#allocation6 + $0x618] sm:$0xff] }
  0xb0   :  { %v289_v58 = vld [vmem:[#allocation6 + $0x5d0] sm:$0xff]  ;;  %v300_v63 = vld [vmem:[#allocation6 + $0x628] sm:$0xff]  ;;  %v302_v60 = vld [vmem:[#allocation6 + $0x638] sm:$0xff] }
  0xb1   :  { %3032 = vmatpush1.bf16.msra.mxu0 %v3031_v28  ;;  %v278_v28 = vld [vmem:[#allocation6 + $0x578] sm:$0xff]  ;;  %v299_v5 = vld [vmem:[#allocation6 + $0x620] sm:$0xff]  ;;  %v297_v6 = vld [vmem:[#allocation6 + $0x610] sm:$0xff]  ;;  %v3257_v7 = vpack.c.bf16 %v302_v60, %v298_v0 }
  0xb2   :  { %3224 = vmatpush1.bf16.msra.mxu1 %v3223_v29  ;;  %3034 = vmatprep.subr.bf16.mxu0 %v3033_v30  ;;  %v3051_v29 = vpack.c.bf16 %v267_v19, %v263_v18  ;;  %v3243_v30 = vpack.c.bf16 %v269_v23, %v265_v21  ;;  %v3245_v35 = vpack.c.bf16 %v278_v28, %v274_v26  ;;  %v304_v10 = vld [vmem:[#allocation6 + $0x648] sm:$0xff]  ;;  %v306_v12 = vld [vmem:[#allocation6 + $0x658] sm:$0xff]  ;;  %v307_v18 = vld [vmem:[#allocation6 + $0x660] sm:$0xff] }
  0xb3   :  { %3226 = vmatprep.subr.bf16.mxu1 %v3225_v34  ;;  %v273_v34 = vld [vmem:[#allocation6 + $0x550] sm:$0xff]  ;;  %v308_v11 = vld [vmem:[#allocation6 + $0x668] sm:$0xff]  ;;  %v310_v13 = vld [vmem:[#allocation6 + $0x678] sm:$0xff] }
  0xb4   :  { %722 = vmatmul.mubr.f32.vlgmr.msra.gmra.mrb[0].mxu0 %v645_v38  ;;  %v305_v19 = vld [vmem:[#allocation6 + $0x650] sm:$0xff]  ;;  %v3261_v21 = vpack.c.bf16 %v310_v13, %v306_v12  ;;  %v312_v23 = vld [vmem:[#allocation6 + $0x688] sm:$0xff]  ;;  %v314_v25 = vld [vmem:[#allocation6 + $0x698] sm:$0xff] }
  0xb5   :  { %3036 = vmatpush1.bf16.msra.mxu0 %v3035_v41  ;;  %935 = vmatmul.mubr.f32.vlgmr.msra.gmra.mrb[0].mxu1 %v645_v38  ;;  %v284_v38 = vld [vmem:[#allocation6 + $0x5a8] sm:$0xff]  ;;  %v3055_v41 = vpack.c.bf16 %v275_v33, %v271_v32  ;;  %v318_v26 = vld [vmem:[#allocation6 + $0x6b8] sm:$0xff]  ;;  %v315_v32 = vld [vmem:[#allocation6 + $0x6a0] sm:$0xff] }
  0xb6   :  { %3228 = vmatpush1.bf16.msra.mxu1 %v3227_v42  ;;  %3038 = vmatprep.subr.bf16.mxu0 %v3037_v43  ;;  %v3247_v42 = vpack.c.bf16 %v277_v36, %v273_v34  ;;  %v3057_v43 = vpack.c.bf16 %v284_v38, %v280_v37  ;;  %v316_v24 = vld [vmem:[#allocation6 + $0x6a8] sm:$0xff]  ;;  %v313_v33 = vld [vmem:[#allocation6 + $0x690] sm:$0xff]  ;;  %v3265_v34 = vpack.c.bf16 %v318_v26, %v314_v25  ;;  %v322_v38 = vld [vmem:[#allocation6 + $0x6d8] sm:$0xff] }
  0xb7   :  { %3230 = vmatprep.subr.bf16.mxu1 %v3229_v47  ;;  %792 = vmatprep.mubr.f32.mxu0 %v649_v51  ;;  %v3249_v47 = vpack.c.bf16 %v286_v40, %v282_v39  ;;  %v320_v36 = vld [vmem:[#allocation6 + $0x6c8] sm:$0xff]  ;;  %v326_v39 = vld [vmem:[#allocation6 + $0x6f8] sm:$0xff]  ;;  %v323_v44 = vld [vmem:[#allocation6 + $0x6e0] sm:$0xff] }
  0xb8   :  { %1005 = vmatprep.mubr.f32.mxu1 %v649_v51  ;;  %v290_v51 = vld [vmem:[#allocation6 + $0x5d8] sm:$0xff]  ;;  %v324_v37 = vld [vmem:[#allocation6 + $0x6e8] sm:$0xff]  ;;  %v321_v45 = vld [vmem:[#allocation6 + $0x6d0] sm:$0xff] }
  0xb9   :  { %3040 = vmatpush1.bf16.msra.mxu0 %v3039_v54  ;;  %v3251_v54 = vpack.c.bf16 %v285_v48, %v281_v46  ;;  %v3253_v59 = vpack.c.bf16 %v294_v52, %v290_v51  ;;  %v3269_v46 = vpack.c.bf16 %v326_v39, %v322_v38  ;;  %v328_v48 = vld [vmem:[#allocation6 + $0x708] sm:$0xff]  ;;  %v334_v51 = vld [vmem:[#allocation6 + $0x738] sm:$0xff]  ;;  %v341_v12 = vld [vmem:[#allocation6 + $0x770] sm:$0xff] }
  0xba   :  { %3232 = vmatpush1.bf16.msra.mxu1 %v3231_v55  ;;  %3042 = vmatprep.subr.bf16.mxu0 %v3041_v56  ;;  %v3061_v55 = vpack.c.bf16 %v292_v50, %v288_v49  ;;  %v287_v56 = vld [vmem:[#allocation6 + $0x5c0] sm:$0xff]  ;;  %v332_v49 = vld [vmem:[#allocation6 + $0x728] sm:$0xff]  ;;  %v330_v50 = vld [vmem:[#allocation6 + $0x718] sm:$0xff] }
  0xbb   :  { %3234 = vmatprep.subr.bf16.mxu1 %v3233_v61  ;;  %v293_v61 = vld [vmem:[#allocation6 + $0x5f0] sm:$0xff]  ;;  %v3063_v1 = vpack.c.bf16 %v291_v57, %v287_v56  ;;  %v331_v56 = vld [vmem:[#allocation6 + $0x720] sm:$0xff]  ;;  %v338_v0 = vld [vmem:[#allocation6 + $0x758] sm:$0xff] }
  0xbc   :  { %v329_v57 = vld [vmem:[#allocation6 + $0x710] sm:$0xff]  ;;  %v342_v60 = vld [vmem:[#allocation6 + $0x778] sm:$0xff]  ;;  %v344_v13 = vld [vmem:[#allocation6 + $0x788] sm:$0xff] }
  0xbd   :  { %3044 = vmatpush1.bf16.msra.mxu0 %v3043_v2  ;;  %v3255_v2 = vpack.c.bf16 %v293_v61, %v289_v58  ;;  %v3273_v58 = vpack.c.bf16 %v334_v51, %v330_v50  ;;  %v336_v61 = vld [vmem:[#allocation6 + $0x748] sm:$0xff]  ;;  %v349_v26 = vld [vmem:[#allocation6 + $0x7b0] sm:$0xff]  ;;  %v351_v38 = vld [vmem:[#allocation6 + $0x7c0] sm:$0xff] }
  0xbe   :  { %3236 = vmatpush1.bf16.msra.mxu1 %v3235_v3  ;;  %3046 = vmatprep.subr.bf16.mxu0 %v3045_v4  ;;  %v3065_v3 = vpack.c.bf16 %v300_v63, %v296_v62  ;;  %v295_v4 = vld [vmem:[#allocation6 + $0x600] sm:$0xff]  ;;  %v340_v62 = vld [vmem:[#allocation6 + $0x768] sm:$0xff]  ;;  %v3920_v63 = vld [vmem:[#allocation2 + $0x4] ss:$6 sps:$4 sm:$0x33]  }
  0xbf   :  { %3238 = vmatprep.subr.bf16.mxu1 %v3237_v8  ;;  %v301_v8 = vld [vmem:[#allocation6 + $0x630] sm:$0xff]  ;;  %v3067_v14 = vpack.c.bf16 %v299_v5, %v295_v4  ;;  %v355_v39 = vld [vmem:[#allocation6 + $0x7e0] sm:$0xff] }
  0xc1   :  { %3048 = vmatpush1.bf16.msra.mxu0 %v3047_v15  ;;  %v3259_v15 = vpack.c.bf16 %v301_v8, %v297_v6  ;;  %v3085_v6 = vpack.c.bf16 %v340_v62, %v336_v61  ;;  %v339_v8 = vld [vmem:[#allocation6 + $0x760] sm:$0xff]  ;;  %v370_v62 = vld [vmem:[#allocation6 + $0x858] sm:$0xff] }
  0xc2   :  { %3240 = vmatpush1.bf16.msra.mxu1 %v3239_v16  ;;  %3050 = vmatprep.subr.bf16.mxu0 %v3049_v17  ;;  %v3069_v16 = vpack.c.bf16 %v308_v11, %v304_v10  ;;  %v303_v17 = vld [vmem:[#allocation6 + $0x640] sm:$0xff]  ;;  %v337_v10 = vld [vmem:[#allocation6 + $0x750] sm:$0xff]  ;;  %v3277_v11 = vpack.c.bf16 %v342_v60, %v338_v0 }
  0xc3   :  { %3242 = vmatprep.subr.bf16.mxu1 %v3241_v22  ;;  %v309_v22 = vld [vmem:[#allocation6 + $0x670] sm:$0xff]  ;;  %v3071_v28 = vpack.c.bf16 %v307_v18, %v303_v17  ;;  %v3279_v18 = vpack.c.bf16 %v341_v12, %v337_v10  ;;  %v382_v12 = vld [vmem:[#allocation6 + $0x8b8] sm:$0xff] }
  0xc5   :  { %3052 = vmatpush1.bf16.msra.mxu0 %v3051_v29  ;;  %v3263_v29 = vpack.c.bf16 %v309_v22, %v305_v19  ;;  %v347_v22 = vld [vmem:[#allocation6 + $0x7a0] sm:$0xff] }
  0xc6   :  { %3244 = vmatpush1.bf16.msra.mxu1 %v3243_v30  ;;  %3054 = vmatprep.subr.bf16.mxu0 %v3053_v31  ;;  %v3073_v30 = vpack.c.bf16 %v316_v24, %v312_v23  ;;  %v311_v31 = vld [vmem:[#allocation6 + $0x680] sm:$0xff]  ;;  %v345_v23 = vld [vmem:[#allocation6 + $0x790] sm:$0xff]  ;;  %v4337_v24 = vrot.slane %v3920_v63, %v4320_v27  ;;  %v374_v63 = vld [vmem:[#allocation6 + $0x878] sm:$0xff] }
  0xc7   :  { %3246 = vmatprep.subr.bf16.mxu1 %v3245_v35  ;;  %v317_v35 = vld [vmem:[#allocation6 + $0x6b0] sm:$0xff]  ;;  %v3075_v40 = vpack.c.bf16 %v315_v32, %v311_v31 }
  0xc9   :  { %3056 = vmatpush1.bf16.msra.mxu0 %v3055_v41  ;;  %v3267_v41 = vpack.c.bf16 %v317_v35, %v313_v33  ;;  %v354_v33 = vld [vmem:[#allocation6 + $0x7d8] sm:$0xff] }
  0xca   :  { %3248 = vmatpush1.bf16.msra.mxu1 %v3247_v42  ;;  %3058 = vmatprep.subr.bf16.mxu0 %v3057_v43  ;;  %v3077_v42 = vpack.c.bf16 %v324_v37, %v320_v36  ;;  %v319_v43 = vld [vmem:[#allocation6 + $0x6c0] sm:$0xff]  ;;  %v3283_v36 = vpack.c.bf16 %v349_v26, %v345_v23  ;;  %v388_v23 = vld [vmem:[#allocation6 + $0x8e8] sm:$0xff]  ;;  %v390_v26 = vld [vmem:[#allocation6 + $0x8f8] sm:$0xff] }
  0xcb   :  { %3250 = vmatprep.subr.bf16.mxu1 %v3249_v47  ;;  %v325_v47 = vld [vmem:[#allocation6 + $0x6f0] sm:$0xff]  ;;  %v3079_v52 = vpack.c.bf16 %v323_v44, %v319_v43  ;;  %v360_v43 = vld [vmem:[#allocation6 + $0x808] sm:$0xff] }
  0xcc   :  { %v364_v44 = vld [vmem:[#allocation6 + $0x828] sm:$0xff] }
  0xcd   :  { %3060 = vmatpush1.bf16.msra.mxu0 %v3059_v53  ;;  %v3271_v53 = vpack.c.bf16 %v325_v47, %v321_v45  ;;  %v362_v47 = vld [vmem:[#allocation6 + $0x818] sm:$0xff]  ;;  %v3097_v51 = vpack.c.bf16 %v364_v44, %v360_v43 }
  0xce   :  { %3252 = vmatpush1.bf16.msra.mxu1 %v3251_v54  ;;  %3062 = vmatprep.subr.bf16.mxu0 %v3061_v55  ;;  %v3081_v54 = vpack.c.bf16 %v332_v49, %v328_v48  ;;  %v327_v55 = vld [vmem:[#allocation6 + $0x700] sm:$0xff]  ;;  %v366_v48 = vld [vmem:[#allocation6 + $0x838] sm:$0xff]  ;;  %v3095_v49 = vpack.c.bf16 %v355_v39, %v351_v38  ;;  %v392_v38 = vld [vmem:[#allocation6 + $0x908] sm:$0xff] }
  0xcf   :  { %3254 = vmatprep.subr.bf16.mxu1 %v3253_v59  ;;  %v333_v59 = vld [vmem:[#allocation6 + $0x730] sm:$0xff]  ;;  %v3083_v4 = vpack.c.bf16 %v331_v56, %v327_v55  ;;  %v3289_v55 = vpack.c.bf16 %v366_v48, %v362_v47  ;;  %v396_v39 = vld [vmem:[#allocation6 + $0x928] sm:$0xff] }
  0xd0   :  { %v3275_v5 = vpack.c.bf16 %v333_v59, %v329_v57  ;;  %v365_v56 = vld [vmem:[#allocation6 + $0x830] sm:$0xff]  ;;  %v368_v57 = vld [vmem:[#allocation6 + $0x848] sm:$0xff]  ;;  %v3113_v44 = vpack.c.bf16 %v396_v39, %v392_v38 }
  0xd1   :  { %3064 = vmatpush1.bf16.msra.mxu0 %v3063_v1  ;;  %v3923_v1 = vld [vmem:[#allocation2 + $0x10] ss:$6 sps:$4 sm:$0x33]   ;;  %v393_v47 = vld [vmem:[#allocation6 + $0x910] sm:$0xff] }
  0xd2   :  { %3256 = vmatpush1.bf16.msra.mxu1 %v3255_v2  ;;  %3066 = vmatprep.subr.bf16.mxu0 %v3065_v3  ;;  %v3926_v2 = vld [vmem:[#allocation2 + $0x1c] ss:$6 sps:$4 sm:$0x33]   ;;  %v3929_v3 = vld [vmem:[#allocation2 + $0x28] ss:$6 sps:$4 sm:$0x33]  }
  0xd3   :  { %3258 = vmatprep.subr.bf16.mxu1 %v3257_v7  ;;  %v335_v7 = vld [vmem:[#allocation6 + $0x740] sm:$0xff]  ;;  %v4343_v31 = vrot.slane %v3926_v2, %v4320_v27  ;;  %v4346_v32 = vrot.slane %v3929_v3, %v4320_v27  ;;  %v429_v39 = vld [vmem:[#allocation6 + $0xa30] sm:$0xff] }
  0xd4   :  { %v3087_v17 = vpack.c.bf16 %v339_v8, %v335_v7  ;;  %v367_v2 = vld [vmem:[#allocation6 + $0x840] sm:$0xff]  ;;  %v376_v7 = vld [vmem:[#allocation6 + $0x888] sm:$0xff] }
  0xd5   :  { %3068 = vmatpush1.bf16.msra.mxu0 %v3067_v14  ;;  %v348_v14 = vld [vmem:[#allocation6 + $0x7a8] sm:$0xff]  ;;  %v371_v3 = vld [vmem:[#allocation6 + $0x860] sm:$0xff] }
  0xd6   :  { %3260 = vmatpush1.bf16.msra.mxu1 %v3259_v15  ;;  %3070 = vmatprep.subr.bf16.mxu0 %v3069_v16  ;;  %v346_v15 = vld [vmem:[#allocation6 + $0x798] sm:$0xff]  ;;  %v3089_v19 = vpack.c.bf16 %v348_v14, %v344_v13  ;;  %v380_v8 = vld [vmem:[#allocation6 + $0x8a8] sm:$0xff]  ;;  %v3103_v13 = vpack.c.bf16 %v371_v3, %v367_v2 }
  0xd7   :  { %3262 = vmatprep.subr.bf16.mxu1 %v3261_v21  ;;  %v350_v16 = vld [vmem:[#allocation6 + $0x7b8] sm:$0xff]  ;;  %v343_v21 = vld [vmem:[#allocation6 + $0x780] sm:$0xff] }
  0xd8   :  { %v3281_v25 = vpack.c.bf16 %v350_v16, %v346_v15  ;;  %v3091_v35 = vpack.c.bf16 %v347_v22, %v343_v21  ;;  %v3105_v15 = vpack.c.bf16 %v380_v8, %v376_v7  ;;  %v375_v16 = vld [vmem:[#allocation6 + $0x880] sm:$0xff]  ;;  %v381_v21 = vld [vmem:[#allocation6 + $0x8b0] sm:$0xff]  ;;  %v384_v22 = vld [vmem:[#allocation6 + $0x8c8] sm:$0xff] }
  0xd9   :  { %3072 = vmatpush1.bf16.msra.mxu0 %v3071_v28  ;;  %v352_v28 = vld [vmem:[#allocation6 + $0x7c8] sm:$0xff]  ;;  %v409_v7 = vld [vmem:[#allocation6 + $0x990] sm:$0xff] }
  0xda   :  { %3264 = vmatpush1.bf16.msra.mxu1 %v3263_v29  ;;  %3074 = vmatprep.subr.bf16.mxu0 %v3073_v30  ;;  %v356_v29 = vld [vmem:[#allocation6 + $0x7e8] sm:$0xff]  ;;  %v4340_v30 = vrot.slane %v3923_v1, %v4320_v27 }
  0xdb   :  { %3266 = vmatprep.subr.bf16.mxu1 %v3265_v34  ;;  %v358_v34 = vld [vmem:[#allocation6 + $0x7f8] sm:$0xff]  ;;  %v3093_v37 = vpack.c.bf16 %v356_v29, %v352_v28  ;;  %v3109_v29 = vpack.c.bf16 %v388_v23, %v384_v22  ;;  %v421_v23 = vld [vmem:[#allocation6 + $0x9f0] sm:$0xff] }
  0xdc   :  { %v584_v45 = vcombine.high %v4337_v24, %v4340_v30 }
  0xdd   :  { %3076 = vmatpush1.bf16.msra.mxu0 %v3075_v40  ;;  %v353_v40 = vld [vmem:[#allocation6 + $0x7d0] sm:$0xff] }
  0xde   :  { %3268 = vmatpush1.bf16.msra.mxu1 %v3267_v41  ;;  %3078 = vmatprep.subr.bf16.mxu0 %v3077_v42  ;;  %v3285_v41 = vpack.c.bf16 %v358_v34, %v354_v33  ;;  %v357_v42 = vld [vmem:[#allocation6 + $0x7f0] sm:$0xff]  ;;  %v616_v59 = vrot.slane %v584_v45, %v4320_v27  ;;  %v383_v33 = vld [vmem:[#allocation6 + $0x8c0] sm:$0xff] }
  0xdf   :  { %3270 = vmatprep.subr.bf16.mxu1 %v3269_v46  ;;  %v588_v46 = vcombine.high %v4343_v31, %v4346_v32  ;;  %v3287_v50 = vpack.c.bf16 %v357_v42, %v353_v40  ;;  %v387_v34 = vld [vmem:[#allocation6 + $0x8e0] sm:$0xff]  ;;  %v394_v40 = vld [vmem:[#allocation6 + $0x918] sm:$0xff] }
  0xe0   :  { %v3111_v42 = vpack.c.bf16 %v387_v34, %v383_v33  ;;  %v391_v45 = vld [vmem:[#allocation6 + $0x900] sm:$0xff] }
  0xe1   :  { %3080 = vmatpush1.bf16.msra.mxu0 %v3079_v52  ;;  %v359_v52 = vld [vmem:[#allocation6 + $0x800] sm:$0xff]  ;;  %v644_v61 = vrot.slane %v588_v46, %v4320_v27 }
  0xe2   :  { %3272 = vmatpush1.bf16.msra.mxu1 %v3271_v53  ;;  %3082 = vmatprep.subr.bf16.mxu0 %v3081_v54  ;;  %v363_v53 = vld [vmem:[#allocation6 + $0x820] sm:$0xff]  ;;  %v361_v54 = vld [vmem:[#allocation6 + $0x810] sm:$0xff] }
  0xe3   :  { %3274 = vmatprep.subr.bf16.mxu1 %v3273_v58  ;;  %v372_v58 = vld [vmem:[#allocation6 + $0x868] sm:$0xff]  ;;  %v3099_v0 = vpack.c.bf16 %v363_v53, %v359_v52  ;;  %v3291_v60 = vpack.c.bf16 %v365_v56, %v361_v54  ;;  %v650_v10 = vcombine.low %v616_v59, %v644_v61  ;;  %v395_v46 = vld [vmem:[#allocation6 + $0x920] sm:$0xff]  ;;  %v402_v52 = vld [vmem:[#allocation6 + $0x958] sm:$0xff] }
  0xe4   :  { %v3101_v1 = vpack.c.bf16 %v372_v58, %v368_v57  ;;  %v406_v53 = vld [vmem:[#allocation6 + $0x978] sm:$0xff]  ;;  %v3115_v54 = vpack.c.bf16 %v395_v46, %v391_v45  ;;  %v399_v57 = vld [vmem:[#allocation6 + $0x940] sm:$0xff]  ;;  %v401_v59 = vld [vmem:[#allocation6 + $0x950] sm:$0xff] }
  0xe5   :  { %3084 = vmatpush1.bf16.msra.mxu0 %v3083_v4  ;;  %v369_v4 = vld [vmem:[#allocation6 + $0x850] sm:$0xff]  ;;  %v403_v58 = vld [vmem:[#allocation6 + $0x960] sm:$0xff]  ;;  %v3309_v61 = vpack.c.bf16 %v406_v53, %v402_v52  ;;  %v440_v52 = vld [vmem:[#allocation6 + $0xa88] sm:$0xff] }
  0xe6   :  { %3276 = vmatpush1.bf16.msra.mxu1 %v3275_v5  ;;  %3086 = vmatprep.subr.bf16.mxu0 %v3085_v6  ;;  %v3293_v5 = vpack.c.bf16 %v374_v63, %v370_v62  ;;  %v373_v6 = vld [vmem:[#allocation6 + $0x870] sm:$0xff]  ;;  %v408_v63 = vld [vmem:[#allocation6 + $0x988] sm:$0xff]  ;;  %v3119_v2 = vpack.c.bf16 %v403_v58, %v399_v57 }
  0xe7   :  { %3278 = vmatprep.subr.bf16.mxu1 %v3277_v11  ;;  %v378_v11 = vld [vmem:[#allocation6 + $0x898] sm:$0xff]  ;;  %v3295_v14 = vpack.c.bf16 %v373_v6, %v369_v4  ;;  %v405_v62 = vld [vmem:[#allocation6 + $0x970] sm:$0xff]  ;;  %v411_v6 = vld [vmem:[#allocation6 + $0x9a0] sm:$0xff] }
  0xe8   :  { %v3311_v3 = vpack.c.bf16 %v405_v62, %v401_v59  ;;  %v444_v53 = vld [vmem:[#allocation6 + $0xaa8] sm:$0xff]  ;;  %v439_v59 = vld [vmem:[#allocation6 + $0xa80] sm:$0xff]  ;;  %v441_v62 = vld [vmem:[#allocation6 + $0xa90] sm:$0xff] }
  0xe9   :  { %3088 = vmatpush1.bf16.msra.mxu0 %v3087_v17  ;;  %v379_v17 = vld [vmem:[#allocation6 + $0x8a0] sm:$0xff]  ;;  %v3137_v58 = vpack.c.bf16 %v444_v53, %v440_v52  ;;  %v477_v53 = vld [vmem:[#allocation6 + $0xbb0] sm:$0xff] }
  0xea   :  { %3280 = vmatpush1.bf16.msra.mxu1 %v3279_v18  ;;  %3090 = vmatprep.subr.bf16.mxu0 %v3089_v19  ;;  %v377_v18 = vld [vmem:[#allocation6 + $0x890] sm:$0xff]  ;;  %v3297_v19 = vpack.c.bf16 %v382_v12, %v378_v11  ;;  %v3107_v28 = vpack.c.bf16 %v379_v17, %v375_v16  ;;  %v416_v11 = vld [vmem:[#allocation6 + $0x9c8] sm:$0xff] }
  0xeb   :  { %3282 = vmatprep.subr.bf16.mxu1 %v3281_v25  ;;  %v386_v25 = vld [vmem:[#allocation6 + $0x8d8] sm:$0xff]  ;;  %v420_v12 = vld [vmem:[#allocation6 + $0x9e8] sm:$0xff] }
  0xec   :  { %v3125_v17 = vpack.c.bf16 %v420_v12, %v416_v11  ;;  %v453_v12 = vld [vmem:[#allocation6 + $0xaf0] sm:$0xff] }
  0xed   :  { %3092 = vmatpush1.bf16.msra.mxu0 %v3091_v35  ;;  %v385_v35 = vld [vmem:[#allocation6 + $0x8d0] sm:$0xff] }
  0xee   :  { %3284 = vmatpush1.bf16.msra.mxu1 %v3283_v36  ;;  %3094 = vmatprep.subr.bf16.mxu0 %v3093_v37  ;;  %v3301_v36 = vpack.c.bf16 %v390_v26, %v386_v25  ;;  %v389_v37 = vld [vmem:[#allocation6 + $0x8f0] sm:$0xff]  ;;  %v424_v25 = vld [vmem:[#allocation6 + $0xa08] sm:$0xff] }
  0xef   :  { %3286 = vmatprep.subr.bf16.mxu1 %v3285_v41  ;;  %v398_v41 = vld [vmem:[#allocation6 + $0x938] sm:$0xff]  ;;  %v3303_v43 = vpack.c.bf16 %v389_v37, %v385_v35  ;;  %v428_v26 = vld [vmem:[#allocation6 + $0xa28] sm:$0xff]  ;;  %v423_v35 = vld [vmem:[#allocation6 + $0xa00] sm:$0xff] }
  0xf0   :  { %v3305_v48 = vpack.c.bf16 %v398_v41, %v394_v40  ;;  %v3129_v34 = vpack.c.bf16 %v428_v26, %v424_v25  ;;  %v425_v37 = vld [vmem:[#allocation6 + $0xa10] sm:$0xff]  ;;  %v432_v40 = vld [vmem:[#allocation6 + $0xa48] sm:$0xff] }
  0xf1   :  { %3096 = vmatpush1.bf16.msra.mxu0 %v3095_v49  ;;  %v397_v49 = vld [vmem:[#allocation6 + $0x930] sm:$0xff]  ;;  %v436_v41 = vld [vmem:[#allocation6 + $0xa68] sm:$0xff]  ;;  %v3323_v45 = vpack.c.bf16 %v429_v39, %v425_v37  ;;  %v463_v37 = vld [vmem:[#allocation6 + $0xb40] sm:$0xff] }
  0xf2   :  { %3288 = vmatpush1.bf16.msra.mxu1 %v3287_v50  ;;  %3098 = vmatprep.subr.bf16.mxu0 %v3097_v51  ;;  %v400_v50 = vld [vmem:[#allocation6 + $0x948] sm:$0xff]  ;;  %v3133_v46 = vpack.c.bf16 %v436_v41, %v432_v40  ;;  %v461_v26 = vld [vmem:[#allocation6 + $0xb30] sm:$0xff] }
  0xf3   :  { %3290 = vmatprep.subr.bf16.mxu1 %v3289_v55  ;;  %v404_v51 = vld [vmem:[#allocation6 + $0x968] sm:$0xff]  ;;  %v3307_v55 = vpack.c.bf16 %v397_v49, %v393_v47  ;;  %v431_v47 = vld [vmem:[#allocation6 + $0xa40] sm:$0xff]  ;;  %v433_v49 = vld [vmem:[#allocation6 + $0xa50] sm:$0xff] }
  0xf4   :  { %793 = vmatmul.mubr.f32.vlgmr.msra.gmra.mrb[0].mxu0 %v4333_v20  ;;  %v3117_v56 = vpack.c.bf16 %v404_v51, %v400_v50  ;;  %v437_v51 = vld [vmem:[#allocation6 + $0xa70] sm:$0xff] }
  0xf5   :  { %3100 = vmatpush1.bf16.msra.mxu0 %v3099_v0  ;;  %1006 = vmatmul.mubr.f32.vlgmr.msra.gmra.mrb[0].mxu1 %v4333_v20  ;;  %v3299_v20 = vpack.c.bf16 %v381_v21, %v377_v18  ;;  %v412_v0 = vld [vmem:[#allocation6 + $0x9a8] sm:$0xff]  ;;  %v415_v18 = vld [vmem:[#allocation6 + $0x9c0] sm:$0xff]  ;;  %v417_v21 = vld [vmem:[#allocation6 + $0x9d0] sm:$0xff]  ;;  %v3327_v57 = vpack.c.bf16 %v437_v51, %v433_v49 }
  0xf6   :  { %3292 = vmatpush1.bf16.msra.mxu1 %v3291_v60  ;;  %3102 = vmatprep.subr.bf16.mxu0 %v3101_v1  ;;  %v410_v60 = vld [vmem:[#allocation6 + $0x998] sm:$0xff]  ;;  %v3121_v4 = vpack.c.bf16 %v412_v0, %v408_v63  ;;  %v3319_v33 = vpack.c.bf16 %v421_v23, %v417_v21  ;;  %v445_v0 = vld [vmem:[#allocation6 + $0xab0] sm:$0xff]  ;;  %v455_v21 = vld [vmem:[#allocation6 + $0xb00] sm:$0xff] }
  0xf7   :  { %3294 = vmatprep.subr.bf16.mxu1 %v3293_v5  ;;  %863 = vmatprep.mubr.f32.mxu0 %v650_v10  ;;  %v414_v1 = vld [vmem:[#allocation6 + $0x9b8] sm:$0xff]  ;;  %v407_v5 = vld [vmem:[#allocation6 + $0x980] sm:$0xff]  ;;  %v457_v23 = vld [vmem:[#allocation6 + $0xb10] sm:$0xff] }
  0xf8   :  { %1076 = vmatprep.mubr.f32.mxu1 %v650_v10  ;;  %v3313_v8 = vpack.c.bf16 %v414_v1, %v410_v60  ;;  %v413_v10 = vld [vmem:[#allocation6 + $0x9b0] sm:$0xff]  ;;  %v448_v60 = vld [vmem:[#allocation6 + $0xac8] sm:$0xff]  ;;  %v471_v49 = vld [vmem:[#allocation6 + $0xb80] sm:$0xff] }
  0xf9   :  { %3104 = vmatpush1.bf16.msra.mxu0 %v3103_v13  ;;  %v418_v13 = vld [vmem:[#allocation6 + $0x9d8] sm:$0xff]  ;;  %v3315_v16 = vpack.c.bf16 %v413_v10, %v409_v7  ;;  %v452_v1 = vld [vmem:[#allocation6 + $0xae8] sm:$0xff]  ;;  %v447_v7 = vld [vmem:[#allocation6 + $0xac0] sm:$0xff] }
  0xfa   :  { %3296 = vmatpush1.bf16.msra.mxu1 %v3295_v14  ;;  %3106 = vmatprep.subr.bf16.mxu0 %v3105_v15  ;;  %v422_v14 = vld [vmem:[#allocation6 + $0x9f8] sm:$0xff]  ;;  %v3123_v15 = vpack.c.bf16 %v411_v6, %v407_v5  ;;  %v3331_v5 = vpack.c.bf16 %v445_v0, %v441_v62  ;;  %v3141_v6 = vpack.c.bf16 %v452_v1, %v448_v60  ;;  %v449_v10 = vld [vmem:[#allocation6 + $0xad0] sm:$0xff]  ;;  %v479_v0 = vld [vmem:[#allocation6 + $0xbc0] sm:$0xff] }
  0xfb   :  { %3298 = vmatprep.subr.bf16.mxu1 %v3297_v19  ;;  %v419_v19 = vld [vmem:[#allocation6 + $0x9e0] sm:$0xff]  ;;  %v3317_v22 = vpack.c.bf16 %v422_v14, %v418_v13  ;;  %v456_v13 = vld [vmem:[#allocation6 + $0xb08] sm:$0xff]  ;;  %v465_v39 = vld [vmem:[#allocation6 + $0xb50] sm:$0xff] }
  0xfc   :  { %v460_v14 = vld [vmem:[#allocation6 + $0xb28] sm:$0xff]  ;;  %v469_v41 = vld [vmem:[#allocation6 + $0xb70] sm:$0xff]  ;;  %v483_v60 = vld [vmem:[#allocation6 + $0xbe0] sm:$0xff] }
  0xfd   :  { %3108 = vmatpush1.bf16.msra.mxu0 %v3107_v28  ;;  %v426_v28 = vld [vmem:[#allocation6 + $0xa18] sm:$0xff]  ;;  %v473_v51 = vld [vmem:[#allocation6 + $0xb90] sm:$0xff] }
  0xfe   :  { %3300 = vmatpush1.bf16.msra.mxu1 %v3299_v20  ;;  %3110 = vmatprep.subr.bf16.mxu0 %v3109_v29  ;;  %v430_v20 = vld [vmem:[#allocation6 + $0xa38] sm:$0xff]  ;;  %v3127_v29 = vpack.c.bf16 %v419_v19, %v415_v18  ;;  %v3335_v18 = vpack.c.bf16 %v453_v12, %v449_v10  ;;  %v3145_v19 = vpack.c.bf16 %v460_v14, %v456_v13  ;;  %v481_v1 = vld [vmem:[#allocation6 + $0xbd0] sm:$0xff]  ;;  %v1087_v10 = vld [vmem:[#allocation9] sm:$0xff] }
  0xff   :  { %3302 = vmatprep.subr.bf16.mxu1 %v3301_v36  ;;  %v427_v36 = vld [vmem:[#allocation6 + $0xa20] sm:$0xff]  ;;  %v3321_v38 = vpack.c.bf16 %v430_v20, %v426_v28  ;;  %v464_v28 = vld [vmem:[#allocation6 + $0xb48] sm:$0xff]  ;;  %v3347_v62 = vpack.c.bf16 %v477_v53, %v473_v51  ;;  %v1089_v12 = vld [vmem:[#allocation9 + $0x10] sm:$0xff] }
 0x100   :  { %v468_v20 = vld [vmem:[#allocation6 + $0xb68] sm:$0xff]  ;;  %v1093_v14 = vld [vmem:[#allocation9 + $0x30] sm:$0xff]  ;;  %v1111_v53 = vld [vmem:[#allocation9 + $0xc0] sm:$0xff] }
 0x101   :  { %3112 = vmatpush1.bf16.msra.mxu0 %v3111_v42  ;;  %v434_v42 = vld [vmem:[#allocation6 + $0xa58] sm:$0xff] }
 0x102   :  { %3304 = vmatpush1.bf16.msra.mxu1 %v3303_v43  ;;  %3114 = vmatprep.subr.bf16.mxu0 %v3113_v44  ;;  %v438_v43 = vld [vmem:[#allocation6 + $0xa78] sm:$0xff]  ;;  %v3131_v44 = vpack.c.bf16 %v427_v36, %v423_v35  ;;  %v3339_v35 = vpack.c.bf16 %v461_v26, %v457_v23  ;;  %v3149_v36 = vpack.c.bf16 %v468_v20, %v464_v28  ;;  %v1099_v26 = vld [vmem:[#allocation9 + $0x60] sm:$0xff]  ;;  %v1097_v28 = vld [vmem:[#allocation9 + $0x50] sm:$0xff] }
 0x103   :  { %3306 = vmatprep.subr.bf16.mxu1 %v3305_v48  ;;  %v435_v48 = vld [vmem:[#allocation6 + $0xa60] sm:$0xff]  ;;  %v3325_v50 = vpack.c.bf16 %v438_v43, %v434_v42  ;;  %v472_v42 = vld [vmem:[#allocation6 + $0xb88] sm:$0xff] }
 0x104   :  { %v476_v43 = vld [vmem:[#allocation6 + $0xba8] sm:$0xff] }
 0x105   :  { %3116 = vmatpush1.bf16.msra.mxu0 %v3115_v54  ;;  %v442_v54 = vld [vmem:[#allocation6 + $0xa98] sm:$0xff] }
 0x106   :  { %3308 = vmatpush1.bf16.msra.mxu1 %v3307_v55  ;;  %3118 = vmatprep.subr.bf16.mxu0 %v3117_v56  ;;  %v446_v55 = vld [vmem:[#allocation6 + $0xab8] sm:$0xff]  ;;  %v3135_v56 = vpack.c.bf16 %v435_v48, %v431_v47  ;;  %v3343_v47 = vpack.c.bf16 %v469_v41, %v465_v39  ;;  %v3153_v48 = vpack.c.bf16 %v476_v43, %v472_v42  ;;  %v1107_v41 = vld [vmem:[#allocation9 + $0xa0] sm:$0xff]  ;;  %v1105_v42 = vld [vmem:[#allocation9 + $0x90] sm:$0xff] }
 0x107   :  { %3310 = vmatprep.subr.bf16.mxu1 %v3309_v61  ;;  %v443_v61 = vld [vmem:[#allocation6 + $0xaa0] sm:$0xff]  ;;  %v3329_v63 = vpack.c.bf16 %v446_v55, %v442_v54  ;;  %v480_v54 = vld [vmem:[#allocation6 + $0xbc8] sm:$0xff] }
 0x108   :  { %v484_v55 = vld [vmem:[#allocation6 + $0xbe8] sm:$0xff] }
 0x109   :  { %3120 = vmatpush1.bf16.msra.mxu0 %v3119_v2  ;;  %v450_v2 = vld [vmem:[#allocation6 + $0xad8] sm:$0xff] }
 0x10a   :  { %3312 = vmatpush1.bf16.msra.mxu1 %v3311_v3  ;;  %3122 = vmatprep.subr.bf16.mxu0 %v3121_v4  ;;  %v454_v3 = vld [vmem:[#allocation6 + $0xaf8] sm:$0xff]  ;;  %v3139_v4 = vpack.c.bf16 %v443_v61, %v439_v59  ;;  %v587_v59 = vcombine.low %v4343_v31, %v4346_v32  ;;  %v3159_v32 = vpack.c.bf16 %v483_v60, %v479_v0 }
 0x10b   :  { %3314 = vmatprep.subr.bf16.mxu1 %v3313_v8  ;;  %v451_v8 = vld [vmem:[#allocation6 + $0xae0] sm:$0xff]  ;;  %v3333_v11 = vpack.c.bf16 %v454_v3, %v450_v2  ;;  %v485_v3 = vld [vmem:[#allocation6 + $0xbf0] sm:$0xff]  ;;  %v1094_v31 = vld [vmem:[#allocation9 + $0x38] sm:$0xff] }
 0x10d   :  { %3124 = vmatpush1.bf16.msra.mxu0 %v3123_v15  ;;  %v458_v15 = vld [vmem:[#allocation6 + $0xb18] sm:$0xff] }
 0x10e   :  { %3316 = vmatpush1.bf16.msra.mxu1 %v3315_v16  ;;  %3126 = vmatprep.subr.bf16.mxu0 %v3125_v17  ;;  %v462_v16 = vld [vmem:[#allocation6 + $0xb38] sm:$0xff]  ;;  %v3143_v17 = vpack.c.bf16 %v451_v8, %v447_v7  ;;  %v3351_v7 = vpack.c.bf16 %v485_v3, %v481_v1  ;;  %v1119_v1 = vld [vmem:[#allocation9 + $0x100] sm:$0xff]  ;;  %v1121_v3 = vld [vmem:[#allocation9 + $0x110] sm:$0xff] }
 0x10f   :  { %3318 = vmatprep.subr.bf16.mxu1 %v3317_v22  ;;  %v459_v22 = vld [vmem:[#allocation6 + $0xb20] sm:$0xff]  ;;  %v3337_v25 = vpack.c.bf16 %v462_v16, %v458_v15  ;;  %v1096_v15 = vld [vmem:[#allocation9 + $0x48] sm:$0xff] }
 0x110   :  { %v1100_v16 = vld [vmem:[#allocation9 + $0x68] sm:$0xff] }
 0x111   :  { %3128 = vmatpush1.bf16.msra.mxu0 %v3127_v29  ;;  %v466_v29 = vld [vmem:[#allocation6 + $0xb58] sm:$0xff]  ;;  %v4371_v23 = vpack.c.bf16 %v1100_v16, %v1096_v15  ;;  %v1133_v16 = vld [vmem:[#allocation9 + $0x170] sm:$0xff] }
 0x112   :  { %3320 = vmatpush1.bf16.msra.mxu1 %v3319_v33  ;;  %3130 = vmatprep.subr.bf16.mxu0 %v3129_v34  ;;  %v470_v33 = vld [vmem:[#allocation6 + $0xb78] sm:$0xff]  ;;  %v3147_v34 = vpack.c.bf16 %v459_v22, %v455_v21  ;;  %v4369_v22 = vpack.c.bf16 %v1093_v14, %v1089_v12  ;;  %v1131_v12 = vld [vmem:[#allocation9 + $0x160] sm:$0xff]  ;;  %v1129_v14 = vld [vmem:[#allocation9 + $0x150] sm:$0xff] }
 0x113   :  { %3322 = vmatprep.subr.bf16.mxu1 %v3321_v38  ;;  %v467_v38 = vld [vmem:[#allocation6 + $0xb60] sm:$0xff]  ;;  %v3341_v40 = vpack.c.bf16 %v470_v33, %v466_v29  ;;  %v1101_v29 = vld [vmem:[#allocation9 + $0x70] sm:$0xff]  ;;  %v1104_v33 = vld [vmem:[#allocation9 + $0x88] sm:$0xff] }
 0x115   :  { %3132 = vmatpush1.bf16.msra.mxu0 %v3131_v44  ;;  %v474_v44 = vld [vmem:[#allocation6 + $0xb98] sm:$0xff] }
 0x116   :  { %3324 = vmatpush1.bf16.msra.mxu1 %v3323_v45  ;;  %3134 = vmatprep.subr.bf16.mxu0 %v3133_v46  ;;  %v478_v45 = vld [vmem:[#allocation6 + $0xbb8] sm:$0xff]  ;;  %v3151_v46 = vpack.c.bf16 %v467_v38, %v463_v37  ;;  %v4381_v38 = vpack.c.bf16 %v1101_v29, %v1097_v28  ;;  %v4431_v28 = vpack.c.bf16 %v1133_v16, %v1129_v14 }
 0x117   :  { %3326 = vmatprep.subr.bf16.mxu1 %v3325_v50  ;;  %v475_v50 = vld [vmem:[#allocation6 + $0xba0] sm:$0xff]  ;;  %v3345_v52 = vpack.c.bf16 %v478_v45, %v474_v44  ;;  %v1109_v44 = vld [vmem:[#allocation9 + $0xb0] sm:$0xff]  ;;  %v1112_v45 = vld [vmem:[#allocation9 + $0xc8] sm:$0xff] }
 0x118   :  { %v3155_v61 = vpack.c.bf16 %v475_v50, %v471_v49  ;;  %v1118_v49 = vld [vmem:[#allocation9 + $0xf8] sm:$0xff]  ;;  %v4395_v51 = vpack.c.bf16 %v1109_v44, %v1105_v42  ;;  %v1148_v42 = vld [vmem:[#allocation9 + $0x1e8] sm:$0xff] }
 0x119   :  { %3136 = vmatpush1.bf16.msra.mxu0 %v3135_v56  ;;  %v482_v56 = vld [vmem:[#allocation6 + $0xbd8] sm:$0xff] }
 0x11a   :  { %3328 = vmatpush1.bf16.msra.mxu1 %v3327_v57  ;;  %3138 = vmatprep.subr.bf16.mxu0 %v3137_v58  ;;  %v486_v57 = vld [vmem:[#allocation6 + $0xbf8] sm:$0xff]  ;;  %v583_v58 = vcombine.low %v4337_v24, %v4340_v30  ;;  %v630_v24 = vrot.slane %v587_v59, %v4320_v27  ;;  %v1124_v59 = vld [vmem:[#allocation9 + $0x128] sm:$0xff] }
 0x11b   :  { %3330 = vmatprep.subr.bf16.mxu1 %v3329_v63  ;;  %v3157_v63 = vpack.c.bf16 %v484_v55, %v480_v54  ;;  %v3349_v2 = vpack.c.bf16 %v486_v57, %v482_v56  ;;  %v1090_v30 = vld [vmem:[#allocation9 + $0x18] sm:$0xff]  ;;  %v1115_v54 = vld [vmem:[#allocation9 + $0xe0] sm:$0xff]  ;;  %v1113_v55 = vld [vmem:[#allocation9 + $0xd0] sm:$0xff] }
 0x11c   :  { %v4364_v13 = vpack.c.bf16 %v1094_v31, %v1090_v30  ;;  %v1117_v57 = vld [vmem:[#allocation9 + $0xf0] sm:$0xff]  ;;  %v1130_v30 = vld [vmem:[#allocation9 + $0x158] sm:$0xff] }
 0x11d   :  { %3140 = vmatpush1.bf16.msra.mxu0 %v3139_v4  ;;  %v1088_v4 = vld [vmem:[#allocation9 + $0x8] sm:$0xff]  ;;  %v4407_v0 = vpack.c.bf16 %v1117_v57, %v1113_v55  ;;  %v1134_v31 = vld [vmem:[#allocation9 + $0x178] sm:$0xff]  ;;  %v1145_v57 = vld [vmem:[#allocation9 + $0x1d0] sm:$0xff] }
 0x11e   :  { %3332 = vmatpush1.bf16.msra.mxu1 %v3331_v5  ;;  %3142 = vmatprep.subr.bf16.mxu0 %v3141_v6  ;;  %v1092_v5 = vld [vmem:[#allocation9 + $0x28] sm:$0xff]  ;;  %v602_v6 = vrot.slane %v583_v58, %v4320_v27  ;;  %v4424_v15 = vpack.c.bf16 %v1134_v31, %v1130_v30  ;;  %v1146_v44 = vld [vmem:[#allocation9 + $0x1d8] sm:$0xff] }
 0x11f   :  { %3334 = vmatprep.subr.bf16.mxu1 %v3333_v11  ;;  %v4362_v8 = vpack.c.bf16 %v1092_v5, %v1088_v4  ;;  %v1091_v11 = vld [vmem:[#allocation9 + $0x20] sm:$0xff]  ;;  %v1120_v58 = vld [vmem:[#allocation9 + $0x108] sm:$0xff]  ;;  %v1125_v5 = vld [vmem:[#allocation9 + $0x130] sm:$0xff] }
 0x120   :  { %v4366_v21 = vpack.c.bf16 %v1091_v11, %v1087_v10  ;;  %v4409_v60 = vpack.c.bf16 %v1124_v59, %v1120_v58  ;;  %v1127_v11 = vld [vmem:[#allocation9 + $0x140] sm:$0xff]  ;;  %v1149_v58 = vld [vmem:[#allocation9 + $0x1f0] sm:$0xff] }
 0x121   :  { %3144 = vmatpush1.bf16.msra.mxu0 %v3143_v17  ;;  %v647_v17 = vcombine.low %v602_v6, %v630_v24  ;;  %v1128_v6 = vld [vmem:[#allocation9 + $0x148] sm:$0xff] }
 0x122   :  { %3336 = vmatpush1.bf16.msra.mxu1 %v3335_v18  ;;  %3146 = vmatprep.subr.bf16.mxu0 %v3145_v19  ;;  %v1098_v18 = vld [vmem:[#allocation9 + $0x58] sm:$0xff]  ;;  %v1132_v24 = vld [vmem:[#allocation9 + $0x168] sm:$0xff] }
 0x123   :  { %3338 = vmatprep.subr.bf16.mxu1 %v3337_v25  ;;  %v1102_v19 = vld [vmem:[#allocation9 + $0x78] sm:$0xff]  ;;  %v1095_v25 = vld [vmem:[#allocation9 + $0x40] sm:$0xff]  ;;  %v4421_v10 = vpack.c.bf16 %v1132_v24, %v1128_v6 }
 0x124   :  { %v4374_v20 = vpack.c.bf16 %v1102_v19, %v1098_v18  ;;  %v4377_v37 = vpack.c.bf16 %v1099_v26, %v1095_v25  ;;  %v1140_v18 = vld [vmem:[#allocation9 + $0x1a8] sm:$0xff]  ;;  %v1138_v19 = vld [vmem:[#allocation9 + $0x198] sm:$0xff]  ;;  %v4427_v26 = vpack.c.bf16 %v1131_v12, %v1127_v11 }
 0x125   :  { %3148 = vmatpush1.bf16.msra.mxu0 %v3147_v34  ;;  %v1108_v34 = vld [vmem:[#allocation9 + $0xa8] sm:$0xff]  ;;  %v1142_v25 = vld [vmem:[#allocation9 + $0x1b8] sm:$0xff] }
 0x126   :  { %3340 = vmatpush1.bf16.msra.mxu1 %v3339_v35  ;;  %3150 = vmatprep.subr.bf16.mxu0 %v3149_v36  ;;  %v1106_v35 = vld [vmem:[#allocation9 + $0x98] sm:$0xff]  ;;  %v4383_v39 = vpack.c.bf16 %v1108_v34, %v1104_v33  ;;  %v1135_v33 = vld [vmem:[#allocation9 + $0x180] sm:$0xff] }
 0x127   :  { %3342 = vmatprep.subr.bf16.mxu1 %v3341_v40  ;;  %v1110_v36 = vld [vmem:[#allocation9 + $0xb8] sm:$0xff]  ;;  %v1103_v40 = vld [vmem:[#allocation9 + $0x80] sm:$0xff] }
 0x128   :  { %v4386_v43 = vpack.c.bf16 %v1110_v36, %v1106_v35  ;;  %v4391_v50 = vpack.c.bf16 %v1107_v41, %v1103_v40  ;;  %v1139_v34 = vld [vmem:[#allocation9 + $0x1a0] sm:$0xff]  ;;  %v1137_v35 = vld [vmem:[#allocation9 + $0x190] sm:$0xff]  ;;  %v4436_v36 = vpack.c.bf16 %v1142_v25, %v1138_v19  ;;  %v1144_v41 = vld [vmem:[#allocation9 + $0x1c8] sm:$0xff] }
 0x129   :  { %3152 = vmatpush1.bf16.msra.mxu0 %v3151_v46  ;;  %v1116_v46 = vld [vmem:[#allocation9 + $0xe8] sm:$0xff]  ;;  %v1141_v40 = vld [vmem:[#allocation9 + $0x1b0] sm:$0xff] }
 0x12a   :  { %3344 = vmatpush1.bf16.msra.mxu1 %v3343_v47  ;;  %3154 = vmatprep.subr.bf16.mxu0 %v3153_v48  ;;  %v4187_v47 = vmov 0.0   ;;  %v1114_v48 = vld [vmem:[#allocation9 + $0xd8] sm:$0xff] }
 0x12b   :  { %3346 = vmatprep.subr.bf16.mxu1 %v3345_v52  ;;  %v4397_v52 = vpack.c.bf16 %v1116_v46, %v1112_v45  ;;  %v4400_v56 = vpack.c.bf16 %v1118_v49, %v1114_v48  ;;  %v1150_v45 = vld [vmem:[#allocation9 + $0x1f8] sm:$0xff]  ;;  %v4439_v46 = vpack.c.bf16 %v1139_v34, %v1135_v33  ;;  %v4443_v48 = vpack.c.bf16 %v1141_v40, %v1137_v35 }
 0x12c   :  { %v4445_v49 = vpack.c.bf16 %v1148_v42, %v1144_v41  ;;  %v4448_v55 = vpack.c.bf16 %v1150_v45, %v1146_v44 }
 0x12d   :  { %3156 = vmatpush1.bf16.msra.mxu0 %v3155_v61  ;;  %v1122_v61 = vld [vmem:[#allocation9 + $0x118] sm:$0xff] }
 0x12e   :  { %3348 = vmatpush1.bf16.msra.mxu1 %v3347_v62  ;;  %3158 = vmatprep.subr.bf16.mxu0 %v3157_v63  ;;  %v1126_v62 = vld [vmem:[#allocation9 + $0x138] sm:$0xff]  ;;  %v4403_v63 = vpack.c.bf16 %v1115_v54, %v1111_v53  ;;  %v1143_v53 = vld [vmem:[#allocation9 + $0x1c0] sm:$0xff] }
 0x12f   :  { %3350 = vmatprep.subr.bf16.mxu1 %v3349_v2  ;;  %v1123_v2 = vld [vmem:[#allocation9 + $0x120] sm:$0xff]  ;;  %v4412_v4 = vpack.c.bf16 %v1126_v62, %v1122_v61  ;;  %v4455_v61 = vpack.c.bf16 %v1149_v58, %v1145_v57  ;;  %v4499_v62 = vsub.s32 0, %v4317_v9 }
 0x130   :  { %v1147_v54 = vld [vmem:[#allocation9 + $0x1e0] sm:$0xff] }
 0x131   :  { %3160 = vmatpush1.bf16.msra.mxu0 %v3159_v32  ;;  %v4415_v32 = vpack.c.bf16 %v1123_v2, %v1119_v1  ;;  %v4451_v59 = vpack.c.bf16 %v1147_v54, %v1143_v53  ;;  %v487_v1 = vld [vmem:[#allocation11] sm:$0xf]  ;;  %v499_v2 = vsub.s32 2, %v4317_v9 }
 0x132   :  { %3352 = vmatpush1.bf16.msra.mxu1 %v3351_v7  ;;  %3354 = vmatprep.subr.bf16.mxu0 %v4362_v8  ;;  %v4419_v7 = vpack.c.bf16 %v1125_v5, %v1121_v3  ;;  %v495_v3 = vsub.s32 1, %v4317_v9  ;;  %v503_v5 = vsub.s32 3, %v4317_v9  ;;  %v492_v6 = vrot.slane %v487_v1, %v4499_v62 }
 0x133   :  { %3386 = vmatprep.subr.bf16.mxu1 %v4364_v13  ;;  %v500_v24 = vrot.slane %v487_v1, %v499_v2 }
 0x134   :  { %864 = vmatmul.mubr.f32.vlgmr.msra.gmra.mrb[0].mxu0 %v647_v17  ;;  %v496_v30 = vrot.slane %v487_v1, %v495_v3  ;;  %v504_v31 = vrot.slane %v487_v1, %v503_v5 }
 0x135   :  { %1077 = vmatmul.mubr.f32.vlgmr.msra.gmra.mrb[0].mxu1 %v647_v17  ;;  %3356 = vmatpush1.bf16.msra.mxu0 %v4366_v21  ;;  %v1136_v17 = vld [vmem:[#allocation9 + $0x188] sm:$0xff] }
 0x136   :  { %3388 = vmatpush1.bf16.msra.mxu1 %v4369_v22  ;;  %3358 = vmatprep.subr.bf16.mxu0 %v4371_v23  ;;  %v4433_v29 = vpack.c.bf16 %v1140_v18, %v1136_v17 }
 0x137   :  { %3390 = vmatprep.subr.bf16.mxu1 %v4374_v20  ;;  %1216 = vmatprep.mubr.f32.mxu0 %v4187_v47 }
 0x138   :  { %1287 = vmatprep.mubr.f32.mxu1 %v4187_v47 }
 0x139   :  { %3360 = vmatpush1.bf16.msra.mxu0 %v4377_v37 }
 0x13a   :  { %3392 = vmatpush1.bf16.msra.mxu1 %v4381_v38  ;;  %3362 = vmatprep.subr.bf16.mxu0 %v4383_v39 }
 0x13b   :  { %3394 = vmatprep.subr.bf16.mxu1 %v4386_v43 }
 0x13d   :  { %3364 = vmatpush1.bf16.msra.mxu0 %v4391_v50 }
 0x13e   :  { %3396 = vmatpush1.bf16.msra.mxu1 %v4395_v51  ;;  %3366 = vmatprep.subr.bf16.mxu0 %v4397_v52 }
 0x13f   :  { %3398 = vmatprep.subr.bf16.mxu1 %v4400_v56 }
 0x141   :  { %3368 = vmatpush1.bf16.msra.mxu0 %v4403_v63 }
 0x142   :  { %3400 = vmatpush1.bf16.msra.mxu1 %v4407_v0  ;;  %3370 = vmatprep.subr.bf16.mxu0 %v4409_v60 }
 0x143   :  { %3402 = vmatprep.subr.bf16.mxu1 %v4412_v4 }
 0x145   :  { %3372 = vmatpush1.bf16.msra.mxu0 %v4415_v32 }
 0x146   :  { %3404 = vmatpush1.bf16.msra.mxu1 %v4419_v7  ;;  %3374 = vmatprep.subr.bf16.mxu0 %v4421_v10 }
 0x147   :  { %3406 = vmatprep.subr.bf16.mxu1 %v4424_v15 }
 0x149   :  { %3376 = vmatpush1.bf16.msra.mxu0 %v4427_v26 }
 0x14a   :  { %3408 = vmatpush1.bf16.msra.mxu1 %v4431_v28  ;;  %3378 = vmatprep.subr.bf16.mxu0 %v4433_v29 }
 0x14b   :  { %3410 = vmatprep.subr.bf16.mxu1 %v4436_v36 }
 0x14d   :  { %3380 = vmatpush1.bf16.msra.mxu0 %v4439_v46 }
 0x14e   :  { %3412 = vmatpush1.bf16.msra.mxu1 %v4443_v48  ;;  %3382 = vmatprep.subr.bf16.mxu0 %v4445_v49 }
 0x14f   :  { %3414 = vmatprep.subr.bf16.mxu1 %v4448_v55 }
 0x151   :  { %3384 = vmatpush1.bf16.msra.mxu0 %v4451_v59 }
 0x152   :  { %3416 = vmatpush1.bf16.msra.mxu1 %v4455_v61  ;;  %3418 = vmatprep.subr.bf16.mxu0 %v4362_v8 }
 0x153   :  { %3450 = vmatprep.subr.bf16.mxu1 %v4364_v13 }
 0x154   :  { %1217 = vmatmul.mubr.f32.vlgmr.msra.gmra.mrb[2].mxu0 %v4187_v47 }
 0x155   :  { %1288 = vmatmul.mubr.f32.vlgmr.msra.gmra.mrb[2].mxu1 %v4187_v47  ;;  %3420 = vmatpush1.bf16.msra.mxu0 %v4366_v21 }
 0x156   :  { %3452 = vmatpush1.bf16.msra.mxu1 %v4369_v22  ;;  %3422 = vmatprep.subr.bf16.mxu0 %v4371_v23 }
 0x157   :  { %3454 = vmatprep.subr.bf16.mxu1 %v4374_v20  ;;  %1415 = vmatprep.mubr.f32.mxu0 %v4187_v47 }
 0x158   :  { %1486 = vmatprep.mubr.f32.mxu1 %v4187_v47 }
 0x159   :  { %3424 = vmatpush1.bf16.msra.mxu0 %v4377_v37 }
 0x15a   :  { %3456 = vmatpush1.bf16.msra.mxu1 %v4381_v38  ;;  %3426 = vmatprep.subr.bf16.mxu0 %v4383_v39 }
 0x15b   :  { %3458 = vmatprep.subr.bf16.mxu1 %v4386_v43 }
 0x15d   :  { %3428 = vmatpush1.bf16.msra.mxu0 %v4391_v50 }
 0x15e   :  { %3460 = vmatpush1.bf16.msra.mxu1 %v4395_v51  ;;  %3430 = vmatprep.subr.bf16.mxu0 %v4397_v52 }
 0x15f   :  { %3462 = vmatprep.subr.bf16.mxu1 %v4400_v56 }
 0x161   :  { %3432 = vmatpush1.bf16.msra.mxu0 %v4403_v63 }
 0x162   :  { %3464 = vmatpush1.bf16.msra.mxu1 %v4407_v0  ;;  %3434 = vmatprep.subr.bf16.mxu0 %v4409_v60 }
 0x163   :  { %3466 = vmatprep.subr.bf16.mxu1 %v4412_v4 }
 0x165   :  { %3436 = vmatpush1.bf16.msra.mxu0 %v4415_v32 }
 0x166   :  { %3468 = vmatpush1.bf16.msra.mxu1 %v4419_v7  ;;  %3438 = vmatprep.subr.bf16.mxu0 %v4421_v10 }
 0x167   :  { %3470 = vmatprep.subr.bf16.mxu1 %v4424_v15 }
 0x169   :  { %3440 = vmatpush1.bf16.msra.mxu0 %v4427_v26 }
 0x16a   :  { %3472 = vmatpush1.bf16.msra.mxu1 %v4431_v28  ;;  %3442 = vmatprep.subr.bf16.mxu0 %v4433_v29 }
 0x16b   :  { %3474 = vmatprep.subr.bf16.mxu1 %v4436_v36 }
 0x16d   :  { %3444 = vmatpush1.bf16.msra.mxu0 %v4439_v46 }
 0x16e   :  { %3476 = vmatpush1.bf16.msra.mxu1 %v4443_v48  ;;  %3446 = vmatprep.subr.bf16.mxu0 %v4445_v49 }
 0x16f   :  { %3478 = vmatprep.subr.bf16.mxu1 %v4448_v55 }
 0x171   :  { %3448 = vmatpush1.bf16.msra.mxu0 %v4451_v59 }
 0x172   :  { %3480 = vmatpush1.bf16.msra.mxu1 %v4455_v61  ;;  %3482 = vmatprep.subr.bf16.mxu0 %v4362_v8 }
 0x173   :  { %3514 = vmatprep.subr.bf16.mxu1 %v4364_v13 }
 0x207   :  { %v865_v11 = vpop.f32.mrb[0].mxu0 }
 0x208   :  { %v3889_v12 = vadd.f32 %v865_v11, %v492_v6  ;;  %v1078_v14 = vpop.f32.mrb[0].mxu1  ;;  %v867_v16 = vpop.f32.mrb[1].mxu0 }
 0x209   :  { %v3891_v17 = vadd.f32 %v1078_v14, %v500_v24  ;;  %v3890_v18 = vadd.f32 %v867_v16, %v496_v30  ;;  %v1080_v19 = vpop.f32.mrb[1].mxu1 }
 0x20a   :  { %1083 = vst [vmem:[#allocation3] sm:$0xff] %v3889_v12  ;;  %v3892_v25 = vadd.f32 %v1080_v19, %v504_v31 }
 0x20b   :  { %1085 = vst [vmem:[#allocation3 + $0x10] sm:$0xff] %v3891_v17  ;;  %1084 = vst [vmem:[#allocation3 + $0x8] sm:$0xff] %v3890_v18 }
 0x20c   :  { %1086 = vst [vmem:[#allocation3 + $0x18] sm:$0xff] %v3892_v25 }
 0x213   :  { %v1151_v54 = vld [vmem:[#allocation3] ss:$8 sm:$0xf] }
 0x227   :  { %v1218_v33 = vpop.f32.mrb[2].mxu0 }
 0x228   :  { %v1289_v34 = vpop.f32.mrb[2].mxu1  ;;  %v1220_v9 = vpop.f32.mrb[3].mxu0 }
 0x229   :  { %v1298_v35 = vcombine.low %v1218_v33, %v1220_v9  ;;  %v1291_v40 = vpop.f32.mrb[3].mxu1 }
 0x22a   :  { %v1299_v41 = vcombine.low %v1289_v34, %v1291_v40 }
 0x22b   :  { %v1306_v42 = vrot.slane %v1298_v35, %v4320_v27 }
 0x22c   :  { %v1313_v44 = vrot.slane %v1299_v41, %v4320_v27 }
 0x22e   :  { %v1314_v45 = vcombine.low %v1306_v42, %v1313_v44 }
 0x230   :  { %v1321_v53 = vrot.slane %v1314_v45, %v4320_v27 }
 0x232   :  { %v1323_v57 = vadd.f32 %v1321_v53, %v1151_v54 }
 0x234   :  { %v1324_v58 = vmul.f32 0.5, %v1323_v57  ;;  %v1329_v1 = vrot.slane %v1323_v57, 1  ;;  %v1335_v3 = vrot.slane %v1323_v57, 2  ;;  %v1338_v5 = vrot.slane %v1323_v57, 3 }
 0x236   :  { %3930 = vtanh.f32 %v1324_v58  ;;  %v1331_v2 = vmul.f32 0.5, %v1329_v1  ;;  %v1340_v6 = vmul.f32 0.5, %v1338_v5 }
 0x238   :  { %3932 = vtanh.f32 %v1331_v2  ;;  %v1350_v2 = vld [vmem:[#allocation3 + $0x1] ss:$8 sm:$0xf] }
 0x239   :  { %3934 = vtanh.f32 %v1335_v3 }
 0x23a   :  { %3936 = vtanh.f32 %v1340_v6 }
 0x240   :  { %v3931_v24 = vpop.eup %3930 }
 0x241   :  { %v1326_v30 = vadd.f32 1.0, %v3931_v24 }
 0x242   :  { %v3933_v31 = vpop.eup %3932 }
 0x243   :  { %v1327_v11 = vmul.f32 0.5, %v1326_v30  ;;  %v1333_v12 = vadd.f32 1.0, %v3933_v31  ;;  %v3935_v16 = vpop.eup %3934 }
 0x244   :  { %v3937_v25 = vpop.eup %3936 }
 0x245   :  { %v1334_v14 = vmul.f32 0.5, %v1333_v12  ;;  %v1345_v18 = vmul.f32 %v3935_v16, %v1327_v11  ;;  %v1342_v33 = vadd.f32 1.0, %v3937_v25 }
 0x247   :  { %v1344_v17 = vmul.f32 0.0, %v1334_v14  ;;  %v1343_v34 = vmul.f32 0.5, %v1342_v33 }
 0x249   :  { %v4508_v19 = vadd.f32 %v1345_v18, %v1344_v17 }
 0x24b   :  { %3938 = vtanh.f32 %v4508_v19 }
 0x255   :  { %v3939_v9 = vpop.eup %3938 }
 0x256   :  { %v4511_v35 = vmul.f32 %v3939_v9, %v1343_v34 }
 0x258   :  { %1416 = vmatmul.mubr.f32.vlgmr.msra.gmra.mrb[4].mxu0 %v4511_v35  ;;  %1487 = vmatmul.mubr.f32.vlgmr.msra.gmra.mrb[4].mxu1 %v4511_v35 }
 0x259   :  { %3484 = vmatpush1.bf16.msra.mxu0 %v4366_v21  ;;  %3516 = vmatpush1.bf16.msra.mxu1 %v4369_v22 }
 0x25a   :  { %3486 = vmatprep.subr.bf16.mxu0 %v4371_v23  ;;  %3518 = vmatprep.subr.bf16.mxu1 %v4374_v20 }
 0x25b   :  { %1614 = vmatprep.mubr.f32.mxu0 %v4187_v47  ;;  %1685 = vmatprep.mubr.f32.mxu1 %v4187_v47 }
 0x25d   :  { %3488 = vmatpush1.bf16.msra.mxu0 %v4377_v37  ;;  %3520 = vmatpush1.bf16.msra.mxu1 %v4381_v38 }
 0x25e   :  { %3490 = vmatprep.subr.bf16.mxu0 %v4383_v39  ;;  %3522 = vmatprep.subr.bf16.mxu1 %v4386_v43 }
 0x261   :  { %3492 = vmatpush1.bf16.msra.mxu0 %v4391_v50  ;;  %3524 = vmatpush1.bf16.msra.mxu1 %v4395_v51 }
 0x262   :  { %3494 = vmatprep.subr.bf16.mxu0 %v4397_v52  ;;  %3526 = vmatprep.subr.bf16.mxu1 %v4400_v56 }
 0x265   :  { %3496 = vmatpush1.bf16.msra.mxu0 %v4403_v63  ;;  %3528 = vmatpush1.bf16.msra.mxu1 %v4407_v0 }
 0x266   :  { %3498 = vmatprep.subr.bf16.mxu0 %v4409_v60  ;;  %3530 = vmatprep.subr.bf16.mxu1 %v4412_v4 }
 0x269   :  { %3500 = vmatpush1.bf16.msra.mxu0 %v4415_v32  ;;  %3532 = vmatpush1.bf16.msra.mxu1 %v4419_v7 }
 0x26a   :  { %3502 = vmatprep.subr.bf16.mxu0 %v4421_v10  ;;  %3534 = vmatprep.subr.bf16.mxu1 %v4424_v15 }
 0x26d   :  { %3504 = vmatpush1.bf16.msra.mxu0 %v4427_v26  ;;  %3536 = vmatpush1.bf16.msra.mxu1 %v4431_v28 }
 0x26e   :  { %3506 = vmatprep.subr.bf16.mxu0 %v4433_v29  ;;  %3538 = vmatprep.subr.bf16.mxu1 %v4436_v36 }
 0x271   :  { %3508 = vmatpush1.bf16.msra.mxu0 %v4439_v46  ;;  %3540 = vmatpush1.bf16.msra.mxu1 %v4443_v48 }
 0x272   :  { %3510 = vmatprep.subr.bf16.mxu0 %v4445_v49  ;;  %3542 = vmatprep.subr.bf16.mxu1 %v4448_v55 }
 0x275   :  { %3512 = vmatpush1.bf16.msra.mxu0 %v4451_v59  ;;  %3544 = vmatpush1.bf16.msra.mxu1 %v4455_v61 }
 0x276   :  { %3546 = vmatprep.subr.bf16.mxu0 %v4362_v8  ;;  %3578 = vmatprep.subr.bf16.mxu1 %v4364_v13 }
 0x32b   :  { %v1417_v40 = vpop.f32.mrb[4].mxu0  ;;  %v1488_v41 = vpop.f32.mrb[4].mxu1 }
 0x32c   :  { %v1419_v42 = vpop.f32.mrb[5].mxu0  ;;  %v1490_v44 = vpop.f32.mrb[5].mxu1 }
 0x32d   :  { %v1497_v45 = vcombine.low %v1417_v40, %v1419_v42  ;;  %v1498_v53 = vcombine.low %v1488_v41, %v1490_v44 }
 0x32f   :  { %v1505_v54 = vrot.slane %v1497_v45, %v4320_v27  ;;  %v1512_v57 = vrot.slane %v1498_v53, %v4320_v27 }
 0x331   :  { %v1513_v58 = vcombine.low %v1505_v54, %v1512_v57 }
 0x333   :  { %v1520_v1 = vrot.slane %v1513_v58, %v4320_v27 }
 0x335   :  { %v1522_v3 = vadd.f32 %v1520_v1, %v1350_v2 }
 0x337   :  { %v1523_v5 = vmul.f32 0.5, %v1522_v3  ;;  %v1528_v6 = vrot.slane %v1522_v3, 1  ;;  %v1534_v30 = vrot.slane %v1522_v3, 2  ;;  %v1537_v31 = vrot.slane %v1522_v3, 3 }
 0x339   :  { %3940 = vtanh.f32 %v1523_v5  ;;  %v1530_v24 = vmul.f32 0.5, %v1528_v6  ;;  %v1539_v11 = vmul.f32 0.5, %v1537_v31 }
 0x33b   :  { %3942 = vtanh.f32 %v1530_v24 }
 0x33c   :  { %3944 = vtanh.f32 %v1534_v30  ;;  %v1549_v30 = vld [vmem:[#allocation3 + $0x2] ss:$8 sm:$0xf] }
 0x33d   :  { %3946 = vtanh.f32 %v1539_v11 }
 0x343   :  { %v3941_v12 = vpop.eup %3940 }
 0x344   :  { %v1525_v14 = vadd.f32 1.0, %v3941_v12 }
 0x345   :  { %v3943_v16 = vpop.eup %3942 }
 0x346   :  { %v1526_v17 = vmul.f32 0.5, %v1525_v14  ;;  %v1532_v18 = vadd.f32 1.0, %v3943_v16  ;;  %v3945_v33 = vpop.eup %3944 }
 0x347   :  { %v3947_v41 = vpop.eup %3946 }
 0x348   :  { %v1533_v25 = vmul.f32 0.5, %v1532_v18  ;;  %v1544_v34 = vmul.f32 %v3945_v33, %v1526_v17  ;;  %v1541_v42 = vadd.f32 1.0, %v3947_v41 }
 0x34a   :  { %v1543_v9 = vmul.f32 %v1533_v25, %v4508_v19  ;;  %v1542_v44 = vmul.f32 0.5, %v1541_v42 }
 0x34c   :  { %v4553_v40 = vadd.f32 %v1544_v34, %v1543_v9 }
 0x34e   :  { %3948 = vtanh.f32 %v4553_v40 }
 0x358   :  { %v3949_v45 = vpop.eup %3948 }
 0x359   :  { %v4556_v53 = vmul.f32 %v3949_v45, %v1542_v44 }
 0x35b   :  { %1615 = vmatmul.mubr.f32.vlgmr.msra.gmra.mrb[6].mxu0 %v4556_v53  ;;  %1686 = vmatmul.mubr.f32.vlgmr.msra.gmra.mrb[6].mxu1 %v4556_v53 }
 0x35c   :  { %3548 = vmatpush1.bf16.msra.mxu0 %v4366_v21  ;;  %3580 = vmatpush1.bf16.msra.mxu1 %v4369_v22 }
 0x35d   :  { %3550 = vmatprep.subr.bf16.mxu0 %v4371_v23  ;;  %3582 = vmatprep.subr.bf16.mxu1 %v4374_v20 }
 0x35e   :  { %1813 = vmatprep.mubr.f32.mxu0 %v4187_v47  ;;  %1884 = vmatprep.mubr.f32.mxu1 %v4187_v47 }
 0x360   :  { %3552 = vmatpush1.bf16.msra.mxu0 %v4377_v37  ;;  %3584 = vmatpush1.bf16.msra.mxu1 %v4381_v38 }
 0x361   :  { %3554 = vmatprep.subr.bf16.mxu0 %v4383_v39  ;;  %3586 = vmatprep.subr.bf16.mxu1 %v4386_v43 }
 0x364   :  { %3556 = vmatpush1.bf16.msra.mxu0 %v4391_v50  ;;  %3588 = vmatpush1.bf16.msra.mxu1 %v4395_v51 }
 0x365   :  { %3558 = vmatprep.subr.bf16.mxu0 %v4397_v52  ;;  %3590 = vmatprep.subr.bf16.mxu1 %v4400_v56 }
 0x368   :  { %3560 = vmatpush1.bf16.msra.mxu0 %v4403_v63  ;;  %3592 = vmatpush1.bf16.msra.mxu1 %v4407_v0 }
 0x369   :  { %3562 = vmatprep.subr.bf16.mxu0 %v4409_v60  ;;  %3594 = vmatprep.subr.bf16.mxu1 %v4412_v4 }
 0x36c   :  { %3564 = vmatpush1.bf16.msra.mxu0 %v4415_v32  ;;  %3596 = vmatpush1.bf16.msra.mxu1 %v4419_v7 }
 0x36d   :  { %3566 = vmatprep.subr.bf16.mxu0 %v4421_v10  ;;  %3598 = vmatprep.subr.bf16.mxu1 %v4424_v15 }
 0x370   :  { %3568 = vmatpush1.bf16.msra.mxu0 %v4427_v26  ;;  %3600 = vmatpush1.bf16.msra.mxu1 %v4431_v28 }
 0x371   :  { %3570 = vmatprep.subr.bf16.mxu0 %v4433_v29  ;;  %3602 = vmatprep.subr.bf16.mxu1 %v4436_v36 }
 0x374   :  { %3572 = vmatpush1.bf16.msra.mxu0 %v4439_v46  ;;  %3604 = vmatpush1.bf16.msra.mxu1 %v4443_v48 }
 0x375   :  { %3574 = vmatprep.subr.bf16.mxu0 %v4445_v49  ;;  %3606 = vmatprep.subr.bf16.mxu1 %v4448_v55 }
 0x378   :  { %3576 = vmatpush1.bf16.msra.mxu0 %v4451_v59  ;;  %3608 = vmatpush1.bf16.msra.mxu1 %v4455_v61 }
 0x379   :  { %3610 = vmatprep.subr.bf16.mxu0 %v4362_v8  ;;  %3642 = vmatprep.subr.bf16.mxu1 %v4364_v13 }
 0x42e   :  { %v1616_v19 = vpop.f32.mrb[6].mxu0  ;;  %v1687_v54 = vpop.f32.mrb[6].mxu1 }
 0x42f   :  { %v1618_v57 = vpop.f32.mrb[7].mxu0  ;;  %v1689_v58 = vpop.f32.mrb[7].mxu1 }
 0x430   :  { %v1696_v1 = vcombine.low %v1616_v19, %v1618_v57  ;;  %v1697_v2 = vcombine.low %v1687_v54, %v1689_v58 }
 0x432   :  { %v1704_v3 = vrot.slane %v1696_v1, %v4320_v27  ;;  %v1711_v5 = vrot.slane %v1697_v2, %v4320_v27 }
 0x434   :  { %v1712_v6 = vcombine.low %v1704_v3, %v1711_v5  ;;  %v2746_v3 = vrot.slane %v4556_v53, %v4499_v62 }
 0x436   :  { %v1719_v24 = vrot.slane %v1712_v6, %v4320_v27 }
 0x438   :  { %v1721_v31 = vadd.f32 %v1719_v24, %v1549_v30 }
 0x43a   :  { %v1722_v11 = vmul.f32 0.5, %v1721_v31  ;;  %v1727_v12 = vrot.slane %v1721_v31, 1  ;;  %v1733_v16 = vrot.slane %v1721_v31, 2  ;;  %v1736_v17 = vrot.slane %v1721_v31, 3 }
 0x43c   :  { %3950 = vtanh.f32 %v1722_v11  ;;  %v1729_v14 = vmul.f32 0.5, %v1727_v12  ;;  %v1738_v18 = vmul.f32 0.5, %v1736_v17 }
 0x43e   :  { %3952 = vtanh.f32 %v1729_v14 }
 0x43f   :  { %3954 = vtanh.f32 %v1733_v16 }
 0x440   :  { %3956 = vtanh.f32 %v1738_v18 }
 0x446   :  { %v3951_v25 = vpop.eup %3950 }
 0x447   :  { %v1724_v33 = vadd.f32 1.0, %v3951_v25  ;;  %v1748_v25 = vld [vmem:[#allocation3 + $0x3] ss:$8 sm:$0xf] }
 0x448   :  { %v3953_v34 = vpop.eup %3952 }
 0x449   :  { %v1725_v9 = vmul.f32 0.5, %v1724_v33  ;;  %v1731_v41 = vadd.f32 1.0, %v3953_v34  ;;  %v3955_v44 = vpop.eup %3954 }
 0x44a   :  { %v3957_v57 = vpop.eup %3956 }
 0x44b   :  { %v1732_v42 = vmul.f32 0.5, %v1731_v41  ;;  %v1743_v45 = vmul.f32 %v3955_v44, %v1725_v9  ;;  %v1740_v58 = vadd.f32 1.0, %v3957_v57 }
 0x44d   :  { %v1742_v19 = vmul.f32 %v1732_v42, %v4553_v40  ;;  %v1741_v1 = vmul.f32 0.5, %v1740_v58  ;;  %v2785_v40 = vsel %vm2784_vm0, %v4511_v35, %v2746_v3 }
 0x44f   :  { %v4598_v54 = vadd.f32 %v1743_v45, %v1742_v19 }
 0x451   :  { %3958 = vtanh.f32 %v4598_v54 }
 0x45b   :  { %v3959_v2 = vpop.eup %3958 }
 0x45c   :  { %v1746_v5 = vmul.f32 %v3959_v2, %v1741_v1 }
 0x45e   :  { %1814 = vmatmul.mubr.f32.vlgmr.msra.gmra.mrb[8].mxu0 %v1746_v5  ;;  %v2752_v6 = vrot.slane %v1746_v5, %v4499_v62  ;;  %1885 = vmatmul.mubr.f32.vlgmr.msra.gmra.mrb[8].mxu1 %v1746_v5 }
 0x45f   :  { %3612 = vmatpush1.bf16.msra.mxu0 %v4366_v21  ;;  %3644 = vmatpush1.bf16.msra.mxu1 %v4369_v22 }
 0x460   :  { %3614 = vmatprep.subr.bf16.mxu0 %v4371_v23  ;;  %3646 = vmatprep.subr.bf16.mxu1 %v4374_v20  ;;  %v4609_v24 = vsel %vm2786_vm1, %v2785_v40, %v2752_v6 }
 0x461   :  { %2012 = vmatprep.mubr.f32.mxu0 %v4187_v47  ;;  %2083 = vmatprep.mubr.f32.mxu1 %v4187_v47 }
 0x463   :  { %3616 = vmatpush1.bf16.msra.mxu0 %v4377_v37  ;;  %3648 = vmatpush1.bf16.msra.mxu1 %v4381_v38 }
 0x464   :  { %3618 = vmatprep.subr.bf16.mxu0 %v4383_v39  ;;  %3650 = vmatprep.subr.bf16.mxu1 %v4386_v43 }
 0x467   :  { %3620 = vmatpush1.bf16.msra.mxu0 %v4391_v50  ;;  %3652 = vmatpush1.bf16.msra.mxu1 %v4395_v51 }
 0x468   :  { %3622 = vmatprep.subr.bf16.mxu0 %v4397_v52  ;;  %3654 = vmatprep.subr.bf16.mxu1 %v4400_v56 }
 0x46b   :  { %3624 = vmatpush1.bf16.msra.mxu0 %v4403_v63  ;;  %3656 = vmatpush1.bf16.msra.mxu1 %v4407_v0 }
 0x46c   :  { %3626 = vmatprep.subr.bf16.mxu0 %v4409_v60  ;;  %3658 = vmatprep.subr.bf16.mxu1 %v4412_v4 }
 0x46f   :  { %3628 = vmatpush1.bf16.msra.mxu0 %v4415_v32  ;;  %3660 = vmatpush1.bf16.msra.mxu1 %v4419_v7 }
 0x470   :  { %3630 = vmatprep.subr.bf16.mxu0 %v4421_v10  ;;  %3662 = vmatprep.subr.bf16.mxu1 %v4424_v15 }
 0x473   :  { %3632 = vmatpush1.bf16.msra.mxu0 %v4427_v26  ;;  %3664 = vmatpush1.bf16.msra.mxu1 %v4431_v28 }
 0x474   :  { %3634 = vmatprep.subr.bf16.mxu0 %v4433_v29  ;;  %3666 = vmatprep.subr.bf16.mxu1 %v4436_v36 }
 0x477   :  { %3636 = vmatpush1.bf16.msra.mxu0 %v4439_v46  ;;  %3668 = vmatpush1.bf16.msra.mxu1 %v4443_v48 }
 0x478   :  { %3638 = vmatprep.subr.bf16.mxu0 %v4445_v49  ;;  %3670 = vmatprep.subr.bf16.mxu1 %v4448_v55 }
 0x47b   :  { %3640 = vmatpush1.bf16.msra.mxu0 %v4451_v59  ;;  %3672 = vmatpush1.bf16.msra.mxu1 %v4455_v61 }
 0x47c   :  { %3674 = vmatprep.subr.bf16.mxu0 %v4362_v8  ;;  %3706 = vmatprep.subr.bf16.mxu1 %v4364_v13 }
 0x531   :  { %v1815_v35 = vpop.f32.mrb[8].mxu0  ;;  %v1886_v53 = vpop.f32.mrb[8].mxu1 }
 0x532   :  { %v1817_v30 = vpop.f32.mrb[9].mxu0  ;;  %v1888_v31 = vpop.f32.mrb[9].mxu1 }
 0x533   :  { %v1895_v11 = vcombine.low %v1815_v35, %v1817_v30  ;;  %v1896_v12 = vcombine.low %v1886_v53, %v1888_v31 }
 0x535   :  { %v1903_v14 = vrot.slane %v1895_v11, %v4320_v27  ;;  %v1910_v16 = vrot.slane %v1896_v12, %v4320_v27 }
 0x537   :  { %v1911_v17 = vcombine.low %v1903_v14, %v1910_v16 }
 0x539   :  { %v1918_v18 = vrot.slane %v1911_v17, %v4320_v27 }
 0x53b   :  { %v1920_v33 = vadd.f32 %v1918_v18, %v1748_v25 }
 0x53d   :  { %v1921_v34 = vmul.f32 0.5, %v1920_v33  ;;  %v1926_v9 = vrot.slane %v1920_v33, 1  ;;  %v1932_v42 = vrot.slane %v1920_v33, 2  ;;  %v1935_v44 = vrot.slane %v1920_v33, 3 }
 0x53f   :  { %3960 = vtanh.f32 %v1921_v34  ;;  %v1928_v41 = vmul.f32 0.5, %v1926_v9  ;;  %v1937_v45 = vmul.f32 0.5, %v1935_v44  ;;  %v1947_v44 = vld [vmem:[#allocation3 + $0x4] ss:$8 sm:$0xf] }
 0x541   :  { %3962 = vtanh.f32 %v1928_v41 }
 0x542   :  { %3964 = vtanh.f32 %v1932_v42 }
 0x543   :  { %3966 = vtanh.f32 %v1937_v45 }
 0x549   :  { %v3961_v19 = vpop.eup %3960 }
 0x54a   :  { %v1923_v57 = vadd.f32 1.0, %v3961_v19 }
 0x54b   :  { %v3963_v58 = vpop.eup %3962 }
 0x54c   :  { %v1924_v1 = vmul.f32 0.5, %v1923_v57  ;;  %v1930_v2 = vadd.f32 1.0, %v3963_v58  ;;  %v3965_v5 = vpop.eup %3964 }
 0x54d   :  { %v3967_v53 = vpop.eup %3966 }
 0x54e   :  { %v1931_v3 = vmul.f32 0.5, %v1930_v2  ;;  %v1942_v6 = vmul.f32 %v3965_v5, %v1924_v1  ;;  %v1939_v30 = vadd.f32 1.0, %v3967_v53 }
 0x550   :  { %v1941_v40 = vmul.f32 %v1931_v3, %v4598_v54  ;;  %v1940_v31 = vmul.f32 0.5, %v1939_v30 }
 0x552   :  { %v4645_v35 = vadd.f32 %v1942_v6, %v1941_v40 }
 0x554   :  { %3968 = vtanh.f32 %v4645_v35 }
 0x55e   :  { %v3969_v11 = vpop.eup %3968 }
 0x55f   :  { %v1945_v12 = vmul.f32 %v3969_v11, %v1940_v31 }
 0x561   :  { %2013 = vmatmul.mubr.f32.vlgmr.msra.gmra.mrb[10].mxu0 %v1945_v12  ;;  %v2758_v14 = vrot.slane %v1945_v12, %v4499_v62  ;;  %2084 = vmatmul.mubr.f32.vlgmr.msra.gmra.mrb[10].mxu1 %v1945_v12 }
 0x562   :  { %3676 = vmatpush1.bf16.msra.mxu0 %v4366_v21  ;;  %3708 = vmatpush1.bf16.msra.mxu1 %v4369_v22 }
 0x563   :  { %3678 = vmatprep.subr.bf16.mxu0 %v4371_v23  ;;  %3710 = vmatprep.subr.bf16.mxu1 %v4374_v20  ;;  %v4654_v54 = vsel %vm2788_vm2, %v4609_v24, %v2758_v14 }
 0x564   :  { %2211 = vmatprep.mubr.f32.mxu0 %v4187_v47  ;;  %2282 = vmatprep.mubr.f32.mxu1 %v4187_v47 }
 0x566   :  { %3680 = vmatpush1.bf16.msra.mxu0 %v4377_v37  ;;  %3712 = vmatpush1.bf16.msra.mxu1 %v4381_v38 }
 0x567   :  { %3682 = vmatprep.subr.bf16.mxu0 %v4383_v39  ;;  %3714 = vmatprep.subr.bf16.mxu1 %v4386_v43 }
 0x56a   :  { %3684 = vmatpush1.bf16.msra.mxu0 %v4391_v50  ;;  %3716 = vmatpush1.bf16.msra.mxu1 %v4395_v51 }
 0x56b   :  { %3686 = vmatprep.subr.bf16.mxu0 %v4397_v52  ;;  %3718 = vmatprep.subr.bf16.mxu1 %v4400_v56 }
 0x56e   :  { %3688 = vmatpush1.bf16.msra.mxu0 %v4403_v63  ;;  %3720 = vmatpush1.bf16.msra.mxu1 %v4407_v0 }
 0x56f   :  { %3690 = vmatprep.subr.bf16.mxu0 %v4409_v60  ;;  %3722 = vmatprep.subr.bf16.mxu1 %v4412_v4 }
 0x572   :  { %3692 = vmatpush1.bf16.msra.mxu0 %v4415_v32  ;;  %3724 = vmatpush1.bf16.msra.mxu1 %v4419_v7 }
 0x573   :  { %3694 = vmatprep.subr.bf16.mxu0 %v4421_v10  ;;  %3726 = vmatprep.subr.bf16.mxu1 %v4424_v15 }
 0x576   :  { %3696 = vmatpush1.bf16.msra.mxu0 %v4427_v26  ;;  %3728 = vmatpush1.bf16.msra.mxu1 %v4431_v28 }
 0x577   :  { %3698 = vmatprep.subr.bf16.mxu0 %v4433_v29  ;;  %3730 = vmatprep.subr.bf16.mxu1 %v4436_v36 }
 0x57a   :  { %3700 = vmatpush1.bf16.msra.mxu0 %v4439_v46  ;;  %3732 = vmatpush1.bf16.msra.mxu1 %v4443_v48 }
 0x57b   :  { %3702 = vmatprep.subr.bf16.mxu0 %v4445_v49  ;;  %3734 = vmatprep.subr.bf16.mxu1 %v4448_v55 }
 0x57e   :  { %3704 = vmatpush1.bf16.msra.mxu0 %v4451_v59  ;;  %3736 = vmatpush1.bf16.msra.mxu1 %v4455_v61 }
 0x57f   :  { %3738 = vmatprep.subr.bf16.mxu0 %v4362_v8  ;;  %3770 = vmatprep.subr.bf16.mxu1 %v4364_v13 }
 0x634   :  { %v2014_v24 = vpop.f32.mrb[10].mxu0  ;;  %v2085_v16 = vpop.f32.mrb[10].mxu1 }
 0x635   :  { %v2016_v17 = vpop.f32.mrb[11].mxu0  ;;  %v2087_v18 = vpop.f32.mrb[11].mxu1 }
 0x636   :  { %v2094_v25 = vcombine.low %v2014_v24, %v2016_v17  ;;  %v2095_v33 = vcombine.low %v2085_v16, %v2087_v18 }
 0x638   :  { %v2102_v34 = vrot.slane %v2094_v25, %v4320_v27  ;;  %v2109_v9 = vrot.slane %v2095_v33, %v4320_v27 }
 0x63a   :  { %v2110_v41 = vcombine.low %v2102_v34, %v2109_v9 }
 0x63c   :  { %v2117_v42 = vrot.slane %v2110_v41, %v4320_v27 }
 0x63e   :  { %v2119_v45 = vadd.f32 %v2117_v42, %v1947_v44 }
 0x640   :  { %v2120_v19 = vmul.f32 0.5, %v2119_v45  ;;  %v2125_v57 = vrot.slane %v2119_v45, 1  ;;  %v2131_v1 = vrot.slane %v2119_v45, 2  ;;  %v2134_v2 = vrot.slane %v2119_v45, 3 }
 0x642   :  { %3970 = vtanh.f32 %v2120_v19  ;;  %v2127_v58 = vmul.f32 0.5, %v2125_v57  ;;  %v2136_v3 = vmul.f32 0.5, %v2134_v2  ;;  %v2146_v2 = vld [vmem:[#allocation3 + $0x5] ss:$8 sm:$0xf] }
 0x644   :  { %3972 = vtanh.f32 %v2127_v58 }
 0x645   :  { %3974 = vtanh.f32 %v2131_v1 }
 0x646   :  { %3976 = vtanh.f32 %v2136_v3 }
 0x64c   :  { %v3971_v5 = vpop.eup %3970 }
 0x64d   :  { %v2122_v6 = vadd.f32 1.0, %v3971_v5 }
 0x64e   :  { %v3973_v40 = vpop.eup %3972 }
 0x64f   :  { %v2123_v53 = vmul.f32 0.5, %v2122_v6  ;;  %v2129_v30 = vadd.f32 1.0, %v3973_v40  ;;  %v3975_v11 = vpop.eup %3974 }
 0x650   :  { %v3977_v16 = vpop.eup %3976 }
 0x651   :  { %v2130_v31 = vmul.f32 0.5, %v2129_v30  ;;  %v2141_v12 = vmul.f32 %v3975_v11, %v2123_v53  ;;  %v2138_v17 = vadd.f32 1.0, %v3977_v16 }
 0x653   :  { %v2140_v14 = vmul.f32 %v2130_v31, %v4645_v35  ;;  %v2139_v18 = vmul.f32 0.5, %v2138_v17 }
 0x655   :  { %v4690_v24 = vadd.f32 %v2141_v12, %v2140_v14 }
 0x657   :  { %3978 = vtanh.f32 %v4690_v24 }
 0x661   :  { %v3979_v25 = vpop.eup %3978 }
 0x662   :  { %v2144_v33 = vmul.f32 %v3979_v25, %v2139_v18 }
 0x664   :  { %2212 = vmatmul.mubr.f32.vlgmr.msra.gmra.mrb[12].mxu0 %v2144_v33  ;;  %v2764_v34 = vrot.slane %v2144_v33, %v4499_v62  ;;  %2283 = vmatmul.mubr.f32.vlgmr.msra.gmra.mrb[12].mxu1 %v2144_v33 }
 0x665   :  { %3740 = vmatpush1.bf16.msra.mxu0 %v4366_v21  ;;  %3772 = vmatpush1.bf16.msra.mxu1 %v4369_v22 }
 0x666   :  { %3742 = vmatprep.subr.bf16.mxu0 %v4371_v23  ;;  %3774 = vmatprep.subr.bf16.mxu1 %v4374_v20  ;;  %v4699_v35 = vsel %vm2790_vm3, %v4654_v54, %v2764_v34 }
 0x667   :  { %2410 = vmatprep.mubr.f32.mxu0 %v4187_v47  ;;  %2481 = vmatprep.mubr.f32.mxu1 %v4187_v47 }
 0x669   :  { %3744 = vmatpush1.bf16.msra.mxu0 %v4377_v37  ;;  %3776 = vmatpush1.bf16.msra.mxu1 %v4381_v38 }
 0x66a   :  { %3746 = vmatprep.subr.bf16.mxu0 %v4383_v39  ;;  %3778 = vmatprep.subr.bf16.mxu1 %v4386_v43 }
 0x66d   :  { %3748 = vmatpush1.bf16.msra.mxu0 %v4391_v50  ;;  %3780 = vmatpush1.bf16.msra.mxu1 %v4395_v51 }
 0x66e   :  { %3750 = vmatprep.subr.bf16.mxu0 %v4397_v52  ;;  %3782 = vmatprep.subr.bf16.mxu1 %v4400_v56 }
 0x671   :  { %3752 = vmatpush1.bf16.msra.mxu0 %v4403_v63  ;;  %3784 = vmatpush1.bf16.msra.mxu1 %v4407_v0 }
 0x672   :  { %3754 = vmatprep.subr.bf16.mxu0 %v4409_v60  ;;  %3786 = vmatprep.subr.bf16.mxu1 %v4412_v4 }
 0x675   :  { %3756 = vmatpush1.bf16.msra.mxu0 %v4415_v32  ;;  %3788 = vmatpush1.bf16.msra.mxu1 %v4419_v7 }
 0x676   :  { %3758 = vmatprep.subr.bf16.mxu0 %v4421_v10  ;;  %3790 = vmatprep.subr.bf16.mxu1 %v4424_v15 }
 0x679   :  { %3760 = vmatpush1.bf16.msra.mxu0 %v4427_v26  ;;  %3792 = vmatpush1.bf16.msra.mxu1 %v4431_v28 }
 0x67a   :  { %3762 = vmatprep.subr.bf16.mxu0 %v4433_v29  ;;  %3794 = vmatprep.subr.bf16.mxu1 %v4436_v36 }
 0x67d   :  { %3764 = vmatpush1.bf16.msra.mxu0 %v4439_v46  ;;  %3796 = vmatpush1.bf16.msra.mxu1 %v4443_v48 }
 0x67e   :  { %3766 = vmatprep.subr.bf16.mxu0 %v4445_v49  ;;  %3798 = vmatprep.subr.bf16.mxu1 %v4448_v55 }
 0x681   :  { %3768 = vmatpush1.bf16.msra.mxu0 %v4451_v59  ;;  %3800 = vmatpush1.bf16.msra.mxu1 %v4455_v61 }
 0x682   :  { %3802 = vmatprep.subr.bf16.mxu0 %v4362_v8  ;;  %3834 = vmatprep.subr.bf16.mxu1 %v4364_v13 }
 0x737   :  { %v2213_v54 = vpop.f32.mrb[12].mxu0  ;;  %v2284_v9 = vpop.f32.mrb[12].mxu1 }
 0x738   :  { %v2215_v41 = vpop.f32.mrb[13].mxu0  ;;  %v2286_v42 = vpop.f32.mrb[13].mxu1 }
 0x739   :  { %v2293_v44 = vcombine.low %v2213_v54, %v2215_v41  ;;  %v2294_v45 = vcombine.low %v2284_v9, %v2286_v42 }
 0x73b   :  { %v2301_v19 = vrot.slane %v2293_v44, %v4320_v27  ;;  %v2308_v57 = vrot.slane %v2294_v45, %v4320_v27 }
 0x73d   :  { %v2309_v58 = vcombine.low %v2301_v19, %v2308_v57 }
 0x73f   :  { %v2316_v1 = vrot.slane %v2309_v58, %v4320_v27 }
 0x741   :  { %v2318_v3 = vadd.f32 %v2316_v1, %v2146_v2  ;;  %v2798_v1 = vld [vmem:[#allocation12] sm:$0xff]  ;;  %v2799_v2 = vld [vmem:[#allocation12 + $0x8] sm:$0xff] }
 0x743   :  { %v2319_v5 = vmul.f32 0.5, %v2318_v3  ;;  %v2324_v6 = vrot.slane %v2318_v3, 1  ;;  %v2330_v13 = vrot.slane %v2318_v3, 2  ;;  %v2333_v40 = vrot.slane %v2318_v3, 3 }
 0x744   :  { %v3866_v3 = vpack.c.bf16 %v2799_v2, %v2798_v1 }
 0x745   :  { %3980 = vtanh.f32 %v2319_v5  ;;  %v2326_v8 = vmul.f32 0.5, %v2324_v6  ;;  %v2335_v53 = vmul.f32 0.5, %v2333_v40  ;;  %v4188_v5 = vmov 0.0|0.0   ;;  %v2800_v6 = vld [vmem:[#allocation12 + $0x10] sm:$0xff]  ;;  %v2802_v40 = vld [vmem:[#allocation12 + $0x20] sm:$0xff] }
 0x747   :  { %3982 = vtanh.f32 %v2326_v8  ;;  %v2801_v8 = vld [vmem:[#allocation12 + $0x18] sm:$0xff] }
 0x748   :  { %3984 = vtanh.f32 %v2330_v13  ;;  %v3869_v13 = vpack.c.bf16 %v2801_v8, %v2800_v6 }
 0x749   :  { %3986 = vtanh.f32 %v2335_v53  ;;  %v2803_v53 = vld [vmem:[#allocation12 + $0x28] sm:$0xff] }
 0x74f   :  { %v3981_v30 = vpop.eup %3980 }
 0x750   :  { %v2321_v31 = vadd.f32 1.0, %v3981_v30  ;;  %v3872_v30 = vpack.c.bf16 %v2803_v53, %v2802_v40 }
 0x751   :  { %v3983_v11 = vpop.eup %3982 }
 0x752   :  { %v2322_v12 = vmul.f32 0.5, %v2321_v31  ;;  %v2328_v14 = vadd.f32 1.0, %v3983_v11  ;;  %v3985_v17 = vpop.eup %3984  ;;  %v2804_v31 = vld [vmem:[#allocation12 + $0x30] sm:$0xff]  ;;  %v2805_v11 = vld [vmem:[#allocation12 + $0x38] sm:$0xff] }
 0x753   :  { %v3987_v34 = vpop.eup %3986 }
 0x754   :  { %v2329_v16 = vmul.f32 0.5, %v2328_v14  ;;  %v2340_v18 = vmul.f32 %v3985_v17, %v2322_v12  ;;  %v2337_v54 = vadd.f32 1.0, %v3987_v34  ;;  %v3875_v12 = vpack.c.bf16 %v2805_v11, %v2804_v31  ;;  %v2806_v14 = vld [vmem:[#allocation12 + $0x40] sm:$0xff] }
 0x755   :  { %v2810_v34 = vld [vmem:[#allocation12 + $0x60] sm:$0xff] }
 0x756   :  { %v2339_v25 = vmul.f32 %v2329_v16, %v4690_v24  ;;  %v2338_v9 = vmul.f32 0.5, %v2337_v54  ;;  %v2807_v16 = vld [vmem:[#allocation12 + $0x48] sm:$0xff] }
 0x757   :  { %v3878_v17 = vpack.c.bf16 %v2807_v16, %v2806_v14  ;;  %v2811_v54 = vld [vmem:[#allocation12 + $0x68] sm:$0xff] }
 0x758   :  { %v4735_v33 = vadd.f32 %v2340_v18, %v2339_v25  ;;  %v2808_v18 = vld [vmem:[#allocation12 + $0x50] sm:$0xff]  ;;  %v2809_v25 = vld [vmem:[#allocation12 + $0x58] sm:$0xff] }
 0x75a   :  { %3988 = vtanh.f32 %v4735_v33 }
 0x764   :  { %v3989_v41 = vpop.eup %3988 }
 0x765   :  { %v2343_v42 = vmul.f32 %v3989_v41, %v2338_v9  ;;  %v3884_v9 = vpack.c.bf16 %v2811_v54, %v2810_v34  ;;  %v2812_v41 = vld [vmem:[#allocation12 + $0x70] sm:$0xff] }
 0x767   :  { %2411 = vmatmul.mubr.f32.vlgmr.msra.gmra.mrb[14].mxu0 %v2343_v42  ;;  %v2770_v44 = vrot.slane %v2343_v42, %v4499_v62  ;;  %2482 = vmatmul.mubr.f32.vlgmr.msra.gmra.mrb[14].mxu1 %v2343_v42  ;;  %v2813_v42 = vld [vmem:[#allocation12 + $0x78] sm:$0xff] }
 0x768   :  { %3804 = vmatpush1.bf16.msra.mxu0 %v4366_v21  ;;  %3836 = vmatpush1.bf16.msra.mxu1 %v4369_v22 }
 0x769   :  { %3806 = vmatprep.subr.bf16.mxu0 %v4371_v23  ;;  %3838 = vmatprep.subr.bf16.mxu1 %v4374_v20  ;;  %v4744_v24 = vsel %vm2792_vm4, %v4699_v35, %v2770_v44  ;;  %v3887_v44 = vpack.c.bf16 %v2813_v42, %v2812_v41 }
 0x76a   :  { %2609 = vmatprep.mubr.f32.mxu0 %v4187_v47  ;;  %2680 = vmatprep.mubr.f32.mxu1 %v4187_v47 }
 0x76c   :  { %3808 = vmatpush1.bf16.msra.mxu0 %v4377_v37  ;;  %3840 = vmatpush1.bf16.msra.mxu1 %v4381_v38 }
 0x76d   :  { %3810 = vmatprep.subr.bf16.mxu0 %v4383_v39  ;;  %3842 = vmatprep.subr.bf16.mxu1 %v4386_v43 }
 0x770   :  { %3812 = vmatpush1.bf16.msra.mxu0 %v4391_v50  ;;  %3844 = vmatpush1.bf16.msra.mxu1 %v4395_v51 }
 0x771   :  { %3814 = vmatprep.subr.bf16.mxu0 %v4397_v52  ;;  %3846 = vmatprep.subr.bf16.mxu1 %v4400_v56  ;;  %v2345_v52 = vld [vmem:[#allocation3 + $0x6] ss:$8 sm:$0xf] }
 0x774   :  { %3816 = vmatpush1.bf16.msra.mxu0 %v4403_v63  ;;  %3848 = vmatpush1.bf16.msra.mxu1 %v4407_v0 }
 0x775   :  { %3818 = vmatprep.subr.bf16.mxu0 %v4409_v60  ;;  %3850 = vmatprep.subr.bf16.mxu1 %v4412_v4 }
 0x778   :  { %3820 = vmatpush1.bf16.msra.mxu0 %v4415_v32  ;;  %3852 = vmatpush1.bf16.msra.mxu1 %v4419_v7 }
 0x779   :  { %3822 = vmatprep.subr.bf16.mxu0 %v4421_v10  ;;  %3854 = vmatprep.subr.bf16.mxu1 %v4424_v15 }
 0x77c   :  { %3824 = vmatpush1.bf16.msra.mxu0 %v4427_v26  ;;  %3856 = vmatpush1.bf16.msra.mxu1 %v4431_v28 }
 0x77d   :  { %3826 = vmatprep.subr.bf16.mxu0 %v4433_v29  ;;  %3858 = vmatprep.subr.bf16.mxu1 %v4436_v36 }
 0x780   :  { %3828 = vmatpush1.bf16.msra.mxu0 %v4439_v46  ;;  %3860 = vmatpush1.bf16.msra.mxu1 %v4443_v48 }
 0x781   :  { %3830 = vmatprep.subr.bf16.mxu0 %v4445_v49  ;;  %3862 = vmatprep.subr.bf16.mxu1 %v4448_v55 }
 0x784   :  { %3832 = vmatpush1.bf16.msra.mxu0 %v4451_v59  ;;  %3864 = vmatpush1.bf16.msra.mxu1 %v4455_v61 }
 0x785   :  { %3865 = vmatprep.subr.bf16.mxu0 %v4188_v5 }
 0x83a   :  { %v2412_v21 = vpop.f32.mrb[14].mxu0  ;;  %v2483_v22 = vpop.f32.mrb[14].mxu1 }
 0x83b   :  { %v2414_v23 = vpop.f32.mrb[15].mxu0  ;;  %v2485_v20 = vpop.f32.mrb[15].mxu1 }
 0x83c   :  { %v2492_v37 = vcombine.low %v2412_v21, %v2414_v23  ;;  %v2493_v38 = vcombine.low %v2483_v22, %v2485_v20 }
 0x83e   :  { %v2500_v39 = vrot.slane %v2492_v37, %v4320_v27  ;;  %v2507_v43 = vrot.slane %v2493_v38, %v4320_v27 }
 0x840   :  { %v2508_v50 = vcombine.low %v2500_v39, %v2507_v43 }
 0x842   :  { %v2515_v51 = vrot.slane %v2508_v50, %v4320_v27  ;;  %v2544_v50 = vld [vmem:[#allocation3 + $0x7] ss:$8 sm:$0xf] }
 0x844   :  { %v2517_v56 = vadd.f32 %v2515_v51, %v2345_v52 }
 0x846   :  { %v2518_v63 = vmul.f32 0.5, %v2517_v56  ;;  %v2523_v0 = vrot.slane %v2517_v56, 1  ;;  %v2529_v4 = vrot.slane %v2517_v56, 2  ;;  %v2532_v32 = vrot.slane %v2517_v56, 3 }
 0x848   :  { %3990 = vtanh.f32 %v2518_v63  ;;  %v2525_v60 = vmul.f32 0.5, %v2523_v0  ;;  %v2534_v7 = vmul.f32 0.5, %v2532_v32 }
 0x84a   :  { %3992 = vtanh.f32 %v2525_v60 }
 0x84b   :  { %3994 = vtanh.f32 %v2529_v4 }
 0x84c   :  { %3996 = vtanh.f32 %v2534_v7 }
 0x852   :  { %v3991_v10 = vpop.eup %3990 }
 0x853   :  { %v2520_v15 = vadd.f32 1.0, %v3991_v10 }
 0x854   :  { %v3993_v26 = vpop.eup %3992 }
 0x855   :  { %v2521_v28 = vmul.f32 0.5, %v2520_v15  ;;  %v2527_v29 = vadd.f32 1.0, %v3993_v26  ;;  %v3995_v46 = vpop.eup %3994 }
 0x856   :  { %v3997_v59 = vpop.eup %3996 }
 0x857   :  { %v2528_v36 = vmul.f32 0.5, %v2527_v29  ;;  %v2539_v48 = vmul.f32 %v3995_v46, %v2521_v28  ;;  %v2536_v61 = vadd.f32 1.0, %v3997_v59 }
 0x859   :  { %v2538_v49 = vmul.f32 %v2528_v36, %v4735_v33  ;;  %v2537_v35 = vmul.f32 0.5, %v2536_v61  ;;  %v3881_v33 = vpack.c.bf16 %v2809_v25, %v2808_v18 }
 0x85b   :  { %v4778_v55 = vadd.f32 %v2539_v48, %v2538_v49 }
 0x85d   :  { %3998 = vtanh.f32 %v4778_v55 }
 0x867   :  { %v3999_v45 = vpop.eup %3998 }
 0x868   :  { %v2542_v19 = vmul.f32 %v3999_v45, %v2537_v35 }
 0x86a   :  { %2610 = vmatmul.mubr.f32.vlgmr.msra.gmra.mrb[16].mxu0 %v2542_v19  ;;  %2681 = vmatmul.mubr.f32.vlgmr.msra.gmra.mrb[16].mxu1 %v2542_v19  ;;  %v2776_v57 = vrot.slane %v2542_v19, %v4499_v62 }
 0x86b   :  { %3867 = vmatpush3.bf16.msra.mxu0 %v3866_v3  ;;  %2966 = vmatprep.mubr.msk.f32.mxu0 %vm4189_vm6, %v4187_v47 }
 0x86c   :  { %v4783_v58 = vsel %vm2794_vm5, %v4744_v24, %v2776_v57  ;;  %3868 = vmatprep.subr.bf16.mxu0 %v4188_v5  ;;  %v2915_v57 = vld [vmem:[#allocation14] ss:$0 sm:$0xff] }
 0x86f   :  { %3870 = vmatpush3.bf16.msra.mxu0 %v3869_v13 }
 0x870   :  { %3871 = vmatprep.subr.bf16.mxu0 %v4188_v5 }
 0x873   :  { %3873 = vmatpush3.bf16.msra.mxu0 %v3872_v30 }
 0x874   :  { %3874 = vmatprep.subr.bf16.mxu0 %v4188_v5 }
 0x877   :  { %3876 = vmatpush3.bf16.msra.mxu0 %v3875_v12 }
 0x878   :  { %3877 = vmatprep.subr.bf16.mxu0 %v4188_v5 }
 0x87b   :  { %3879 = vmatpush3.bf16.msra.mxu0 %v3878_v17 }
 0x87c   :  { %3880 = vmatprep.subr.bf16.mxu0 %v4188_v5 }
 0x87f   :  { %3882 = vmatpush3.bf16.msra.mxu0 %v3881_v33 }
 0x880   :  { %3883 = vmatprep.subr.bf16.mxu0 %v4188_v5 }
 0x883   :  { %3885 = vmatpush3.bf16.msra.mxu0 %v3884_v9 }
 0x884   :  { %3886 = vmatprep.subr.bf16.mxu0 %v4188_v5 }
 0x887   :  { %3888 = vmatpush3.bf16.msra.mxu0 %v3887_v44 }
 0x93d   :  { %v2611_v47 = vpop.f32.mrb[16].mxu0  ;;  %v2682_v24 = vpop.f32.mrb[16].mxu1 }
 0x93e   :  { %v2613_v21 = vpop.f32.mrb[17].mxu0  ;;  %v2684_v22 = vpop.f32.mrb[17].mxu1 }
 0x93f   :  { %v2691_v23 = vcombine.low %v2611_v47, %v2613_v21  ;;  %v2692_v20 = vcombine.low %v2682_v24, %v2684_v22 }
 0x941   :  { %v2699_v37 = vrot.slane %v2691_v23, %v4320_v27  ;;  %v2706_v38 = vrot.slane %v2692_v20, %v4320_v27 }
 0x943   :  { %v2707_v39 = vcombine.low %v2699_v37, %v2706_v38 }
 0x945   :  { %v2714_v43 = vrot.slane %v2707_v39, %v4320_v27 }
 0x947   :  { %v2716_v51 = vadd.f32 %v2714_v43, %v2544_v50 }
 0x949   :  { %v2717_v52 = vmul.f32 0.5, %v2716_v51  ;;  %v2722_v56 = vrot.slane %v2716_v51, 1  ;;  %v2728_v0 = vrot.slane %v2716_v51, 2  ;;  %v2731_v60 = vrot.slane %v2716_v51, 3 }
 0x94b   :  { %4000 = vtanh.f32 %v2717_v52  ;;  %v2724_v63 = vmul.f32 0.5, %v2722_v56  ;;  %v2733_v4 = vmul.f32 0.5, %v2731_v60 }
 0x94d   :  { %4002 = vtanh.f32 %v2724_v63 }
 0x94e   :  { %4004 = vtanh.f32 %v2728_v0 }
 0x94f   :  { %4006 = vtanh.f32 %v2733_v4 }
 0x955   :  { %v4001_v32 = vpop.eup %4000 }
 0x956   :  { %v2719_v7 = vadd.f32 1.0, %v4001_v32 }
 0x957   :  { %v4003_v10 = vpop.eup %4002 }
 0x958   :  { %v2720_v15 = vmul.f32 0.5, %v2719_v7  ;;  %v2726_v26 = vadd.f32 1.0, %v4003_v10  ;;  %v4005_v29 = vpop.eup %4004 }
 0x959   :  { %v4007_v48 = vpop.eup %4006 }
 0x95a   :  { %v2727_v28 = vmul.f32 0.5, %v2726_v26  ;;  %v2738_v36 = vmul.f32 %v4005_v29, %v2720_v15  ;;  %v2735_v49 = vadd.f32 1.0, %v4007_v48 }
 0x95c   :  { %v2737_v27 = vmul.f32 %v2727_v28, %v4778_v55  ;;  %v2736_v59 = vmul.f32 0.5, %v2735_v49 }
 0x95e   :  { %v2739_v46 = vadd.f32 %v2738_v36, %v2737_v27 }
 0x960   :  { %4008 = vtanh.f32 %v2739_v46 }
 0x96a   :  { %v4009_v61 = vpop.eup %4008 }
 0x96b   :  { %v2741_v35 = vmul.f32 %v4009_v61, %v2736_v59 }
 0x96d   :  { %v2782_v45 = vrot.slane %v2741_v35, %v4499_v62 }
 0x96f   :  { %v2797_v19 = vsel %vm2796_vm7, %v4783_v58, %v2782_v45 }
 0x970   :  { %2967 = vmatmul.mubr.f32.vlgmr.msra.gmra.mrb[18].mxu0 %v2797_v19 }
 0xa43   :  { %v2887_v1 = vpop.f32.mrb[18].mxu0 }
 0xa44   :  { %v2888_v2 = vadd.f32 %v2915_v57, %v2887_v1  ;;  %v2968_v55 = vpop.f32.mrb[19].mxu0 }
 0xa46   :  { %2891 = vst [vmem:[#allocation15] sm:$0xff] %v2888_v2 }
 0xa47   :  { %4153 = shalt.err (!%p4150_p12)
}
 0xa48   :  { %s4154_s29 = scalar_lea.hbm %s4810_s6, 128 }
 0xa49   :  { %p4155_p13 = scmp.ne.s32.totalorder %s4810_s6, %s4154_s29  ;;  %p4158_p0 = scmp.lt.u32.totalorder %s4154_s29, %s4810_s6 }
 0xa4b   :  { %p4160_p1 = pnand %p4158_p0, %p4155_p13 }
 0xa4d   :  { %4163 = shalt.err (!%p4160_p1)
}
 0xa4e   :  { %2901 = dma.vmem_to_hbm [thread:$0]  %s2899_s2, 128, %s4810_s6, [#allocation8]  }
 0xa4f   :  { %4172 = dma.done.wait [#allocation8], 128  }
 0xa50   :  { %4173 = vsyncadd [#allocation8], 4294967168 }
 0xa51   :  { %2905 = vsyncpa [#allocation7], 1 }
 0xa52   :  { %2906 = vsyncpa [#allocation10], 1 }
 0xa53   :  { %2907 = vsyncpa [#allocation13], 1 }
 0xa54   :  { %2908 = vsyncpa [#allocation8], 1 }
 0xa55   :  { %2909 = vsyncmov [#allocation5] }
 0xa58   :  { %s2910_s12 = vpop.sfrf %2909 }
 0xa59   :  { %p2916_p2 = scmp.ne.s32.totalorder %s2910_s12, 0 }
 0xa5b   :  { %2914 = shalt.err (%p2916_p2)  }

</bundles_post_ra>
